<compile_context>
chip_gen: v7x
topology: tpu7x:2x2x1
jax: 0.10.0
libtpu: 0.0.40
codegen_flags: <defaults>
</compile_context>

<pallas_src>
import functools

import jax
import jax.numpy as jnp
from jax.experimental import pallas as pl
from jax.experimental.pallas import tpu as pltpu


def _layernorm(x, gamma, beta, eps=1e-5):
    # PyTorch nn.LayerNorm: biased variance over last dim, eps inside rsqrt.
    mean = jnp.mean(x, axis=-1, keepdims=True)
    var = jnp.mean((x - mean) ** 2, axis=-1, keepdims=True)
    return (x - mean) * jax.lax.rsqrt(var + eps) * gamma + beta


def fused_transformer_kernel(
    x_ref,
    ln1g_ref, ln1b_ref, wqkv_ref, wo_ref, bo_ref,
    ln2g_ref, ln2b_ref, w1_ref, b1_ref, w2_ref, b2_ref,
    o_ref,
    *, depth, heads, channels_head, group, tokens, matmul_dtype,
):
    """Processes `group` (b,p) slices of `tokens` tokens through all layers."""
    H, D, G, N = heads, channels_head, group, tokens
    hd = H * D
    T = G * N
    scale = D ** -0.5
    md = matmul_dtype

    x = x_ref[...]  # (T, C), float32

    def heads_to_batch(mat):
        # (T, H*D) -> (H*G, N, D); batch index = h*G + g.  Leading-dim
        # reshapes + an axis-0 concat only (no sublane/lane transpose).
        return jnp.concatenate(
            [mat[:, h * D:(h + 1) * D].reshape(G, N, D) for h in range(H)],
            axis=0)

    for d in range(depth):  # static depth -> unrolled; x stays in vregs/VMEM
        # ------------- PreNorm + multi-head self-attention (all heads batched)
        xn = _layernorm(x, ln1g_ref[d], ln1b_ref[d])
        qkv = jnp.dot(xn.astype(md), wqkv_ref[d],
                      preferred_element_type=jnp.float32)           # (T, 3*hd)

        qb = heads_to_batch(qkv[:, :hd] * scale).astype(md)          # scale in q
        kb = heads_to_batch(qkv[:, hd:2 * hd]).astype(md)
        vb = heads_to_batch(qkv[:, 2 * hd:]).astype(md)

        dots = jnp.einsum("bnd,bmd->bnm", qb, kb,
                          preferred_element_type=jnp.float32)        # (H*G, N, N)
        dots = dots - jnp.max(dots, axis=-1, keepdims=True)
        p = jnp.exp(dots)
        inv = pl.reciprocal(jnp.sum(p, axis=-1, keepdims=True), approx=True)
        attn = p * inv
        out = jnp.einsum("bnm,bmd->bnd", attn.astype(md), vb,
                         preferred_element_type=jnp.float32)         # (H*G, N, D)

        # back to (T, hd): cheap adjacent-lane concat, then ONE to_out matmul.
        out = jnp.concatenate(
            [out[h * G:(h + 1) * G].reshape(T, D) for h in range(H)], axis=-1)
        proj = jnp.dot(out.astype(md), wo_ref[d],
                       preferred_element_type=jnp.float32)           # (T, C)
        x = x + proj + bo_ref[d]                                     # residual

        # ------------- PreNorm + FeedForward (SiLU) -------------
        xn = _layernorm(x, ln2g_ref[d], ln2b_ref[d])
        h1 = jnp.dot(xn.astype(md), w1_ref[d],
                     preferred_element_type=jnp.float32) + b1_ref[d]
        h1 = h1 * jax.nn.sigmoid(h1)                                 # SiLU (f32)
        y = jnp.dot(h1.astype(md), w2_ref[d],
                    preferred_element_type=jnp.float32) + b2_ref[d]
        x = x + y                                                    # residual

    o_ref[...] = x.astype(o_ref.dtype)


def transformer_forward(x, layer_params, *, heads, channels_head,
                        matmul_dtype=jnp.bfloat16, num_core_blocks=1):
    """x: (B, P, N, C) -> (B, P, N, C); all layers fused into one pallas_call.

    num_core_blocks: 1 for single-TensorCore chips (v5e/v6e, the default);
    pass 2 on a 2-TensorCore chip (v7x) to shard the token slab across cores.
    """
    B, P, N, C = x.shape
    BP = B * P
    depth = len(layer_params)
    hd = heads * channels_head
    cmlp = layer_params[0]["w1"].shape[1]

    # Stack per-layer params along a leading depth axis so one kernel holds
    # every layer's weights (loaded once, resident across grid steps).
    def stack(name, dtype=jnp.float32):
        return jnp.stack([p[name] for p in layer_params]).astype(dtype)

    ln1_g, ln1_b = stack("ln1_g"), stack("ln1_b")
    ln2_g, ln2_b = stack("ln2_g"), stack("ln2_b")
    bo, b1, b2 = stack("bo"), stack("b1"), stack("b2")
    wqkv = stack("wqkv", matmul_dtype)
    wo = stack("wo", matmul_dtype)
    w1 = stack("w1", matmul_dtype)
    w2 = stack("w2", matmul_dtype)

    # Tokens on sublanes, channels on lanes (C is the contraction dim for the
    # weight matmuls, so it must stay minor).
    x_flat = x.reshape(BP * N, C)

    # Generation-aware grid: one step by default (v5e/v6e single TensorCore —
    # extra steps only add ~0.35us per-step overhead and shrink the attention
    # batch).  On v7x request 2 blocks and core-parallel semantics.
    nblk = 1
    if (num_core_blocks > 1 and BP % num_core_blocks == 0
            and ((BP // num_core_blocks) * N) % 8 == 0):
        nblk = num_core_blocks
    G = BP // nblk  # (b, p) slices handled per grid step

    if nblk > 1:
        dim_sem = (getattr(pltpu, "CORE_PARALLEL", "parallel"),)
    else:
        dim_sem = ("arbitrary",)

    kernel = functools.partial(
        fused_transformer_kernel,
        depth=depth, heads=heads, channels_head=channels_head,
        group=G, tokens=N, matmul_dtype=matmul_dtype,
    )

    # Constant weights/biases: whole-array VMEM residents -> single copy, no
    # double-buffering / pipeline bookkeeping for never-changing blocks.
    wspec = pl.BlockSpec(memory_space=pltpu.MemorySpace.VMEM)

    # Advisory cost hint for XLA scheduling around the fused call.
    tok = BP * N
    flops = depth * (
        2 * tok * C * 3 * hd                       # QKV
        + 4 * BP * heads * N * N * channels_head   # QK^T + AV
        + 2 * tok * hd * C                         # to_out
        + 4 * tok * C * cmlp)                      # FF1 + FF2
    transcendentals = depth * (BP * heads * N * N + tok * cmlp)  # exp + sigmoid
    weight_bytes = sum(int(a.size) * a.dtype.itemsize
                       for a in (ln1_g, ln1_b, wqkv, wo, bo,
                                 ln2_g, ln2_b, w1, b1, w2, b2))
    bytes_accessed = 2 * int(x_flat.size) * x_flat.dtype.itemsize + weight_bytes

    y_flat = pl.pallas_call(
        kernel,
        out_shape=jax.ShapeDtypeStruct((BP * N, C), x.dtype),
        grid=(nblk,),
        in_specs=[pl.BlockSpec((G * N, C), lambda i: (i, 0))] + [wspec] * 11,
        out_specs=pl.BlockSpec((G * N, C), lambda i: (i, 0)),
        compiler_params=pltpu.CompilerParams(dimension_semantics=dim_sem),
        cost_estimate=pl.CostEstimate(
            flops=flops, transcendentals=transcendentals,
            bytes_accessed=bytes_accessed),
    )(x_flat, ln1_g, ln1_b, wqkv, wo, bo, ln2_g, ln2_b, w1, b1, w2, b2)

    return y_flat.reshape(B, P, N, C)


# ------------------------- reference (pure JAX, f32) -------------------------
def transformer_reference(x, layer_params, *, heads, channels_head):
    H, D = heads, channels_head
    scale = D ** -0.5
    for p in layer_params:
        # attention
        xn = _layernorm(x, p["ln1_g"], p["ln1_b"])
        qkv = xn @ p["wqkv"]
        q, k, v = jnp.split(qkv, 3, axis=-1)

        def split_heads(t):
            b, pp, n, _ = t.shape
            return t.reshape(b, pp, n, H, D).transpose(0, 1, 3, 2, 4)

        q, k, v = map(split_heads, (q, k, v))
        dots = jnp.einsum("bphnd,bphmd->bphnm", q, k) * scale
        attn = jax.nn.softmax(dots, axis=-1)
        out = jnp.einsum("bphnm,bphmd->bphnd", attn, v)
        out = out.transpose(0, 1, 3, 2, 4).reshape(x.shape[:-1] + (H * D,))
        x = x + (out @ p["wo"] + p["bo"])
        # feed forward
        xn = _layernorm(x, p["ln2_g"], p["ln2_b"])
        h1 = xn @ p["w1"] + p["b1"]
        h1 = h1 * jax.nn.sigmoid(h1)
        x = x + (h1 @ p["w2"] + p["b2"])
    return x


def init_layer_params(key, channels, heads, channels_head, channels_mlp):
    hd = heads * channels_head
    ks = jax.random.split(key, 6)
    s = 0.05
    return {
        "ln1_g": jnp.ones((channels,), jnp.float32),
        "ln1_b": jnp.zeros((channels,), jnp.float32),
        "wqkv": s * jax.random.normal(ks[0], (channels, 3 * hd), jnp.float32),
        "wo":   s * jax.random.normal(ks[1], (hd, channels), jnp.float32),
        "bo":   s * jax.random.normal(ks[2], (channels,), jnp.float32),
        "ln2_g": jnp.ones((channels,), jnp.float32),
        "ln2_b": jnp.zeros((channels,), jnp.float32),
        "w1":   s * jax.random.normal(ks[3], (channels, channels_mlp), jnp.float32),
        "b1":   s * jax.random.normal(ks[4], (channels_mlp,), jnp.float32),
        "w2":   s * jax.random.normal(ks[5], (channels_mlp, channels), jnp.float32),
        "b2":   jnp.zeros((channels,), jnp.float32),
    }


if __name__ == "__main__":
    # Shapes consistent with the module:
    #   channels=16, depth=2, heads=2, channels_head=8, channels_mlp=32
    #   x: (B=2, P=4, N=8, C=16)
    B, P, N, C = 2, 4, 8, 16
    heads, channels_head, channels_mlp, depth = 2, 8, 32, 2

    key = jax.random.PRNGKey(0)
    kx, *kl = jax.random.split(key, depth + 1)
    x = jax.random.normal(kx, (B, P, N, C), jnp.float32)
    layer_params = [
        init_layer_params(kl[d], C, heads, channels_head, channels_mlp)
        for d in range(depth)
    ]

    y_ref = transformer_reference(x, layer_params, heads=heads,
                                  channels_head=channels_head)

    # f32-matmul path: tight check against the pure-JAX f32 reference.
    # (Tolerance allows for the approx softmax reciprocal.)
    y_f32 = transformer_forward(x, layer_params, heads=heads,
                                channels_head=channels_head,
                                matmul_dtype=jnp.float32)
    y_f32 = jax.block_until_ready(y_f32)
    assert y_f32.shape == (B, P, N, C)
    assert jnp.allclose(y_f32, y_ref, atol=5e-4, rtol=5e-4), \
        "f32 kernel mismatch vs JAX reference"

    # bf16-MXU path (f32 accumulation & f32 LN/softmax/SiLU): looser tolerance
    # accounts for bf16 operand rounding.
    y_bf16 = transformer_forward(x, layer_params, heads=heads,
                                 channels_head=channels_head,
                                 matmul_dtype=jnp.bfloat16)
    y_bf16 = jax.block_until_ready(y_bf16)
    assert jnp.allclose(y_bf16, y_ref, atol=2e-2, rtol=2e-2), \
        "bf16 kernel mismatch vs JAX reference"

    print("KERNEL_OK")
</pallas_src>

<mosaic_0001>
module attributes {stable_mosaic.version = 11 : i64} {
  func.func @fused_transformer_kernel(%arg0: i32, %arg1: memref<64x16xf32, #tpu.memory_space<vmem>>, %arg2: memref<2x16xf32, #tpu.memory_space<vmem>>, %arg3: memref<2x16xf32, #tpu.memory_space<vmem>>, %arg4: memref<2x16x48xf32, #tpu.memory_space<vmem>>, %arg5: memref<2x16x16xf32, #tpu.memory_space<vmem>>, %arg6: memref<2x16xf32, #tpu.memory_space<vmem>>, %arg7: memref<2x16xf32, #tpu.memory_space<vmem>>, %arg8: memref<2x16xf32, #tpu.memory_space<vmem>>, %arg9: memref<2x16x32xf32, #tpu.memory_space<vmem>>, %arg10: memref<2x32xf32, #tpu.memory_space<vmem>>, %arg11: memref<2x32x16xf32, #tpu.memory_space<vmem>>, %arg12: memref<2x16xf32, #tpu.memory_space<vmem>>, %arg13: memref<64x16xf32, #tpu.memory_space<vmem>>) attributes {dimension_semantics = [#tpu.dimension_semantics<arbitrary>], iteration_bounds = array<i64: 1>, scalar_prefetch = 0 : i64, scratch_operands = 0 : i64, tpu.core_type = #tpu.core_type<tc>, window_params = [{transform_indices = @transform_0, window_bounds = array<i64: 64, 16>}, {pipeline_mode = #tpu.pipeline_mode<synchronous>, transform_indices = @transform_1, window_bounds = array<i64: 2, 16>}, {pipeline_mode = #tpu.pipeline_mode<synchronous>, transform_indices = @transform_2, window_bounds = array<i64: 2, 16>}, {pipeline_mode = #tpu.pipeline_mode<synchronous>, transform_indices = @transform_3, window_bounds = array<i64: 2, 16, 48>}, {pipeline_mode = #tpu.pipeline_mode<synchronous>, transform_indices = @transform_4, window_bounds = array<i64: 2, 16, 16>}, {pipeline_mode = #tpu.pipeline_mode<synchronous>, transform_indices = @transform_5, window_bounds = array<i64: 2, 16>}, {pipeline_mode = #tpu.pipeline_mode<synchronous>, transform_indices = @transform_6, window_bounds = array<i64: 2, 16>}, {pipeline_mode = #tpu.pipeline_mode<synchronous>, transform_indices = @transform_7, window_bounds = array<i64: 2, 16>}, {pipeline_mode = #tpu.pipeline_mode<synchronous>, transform_indices = @transform_8, window_bounds = array<i64: 2, 16, 32>}, {pipeline_mode = #tpu.pipeline_mode<synchronous>, transform_indices = @transform_9, window_bounds = array<i64: 2, 32>}, {pipeline_mode = #tpu.pipeline_mode<synchronous>, transform_indices = @transform_10, window_bounds = array<i64: 2, 32, 16>}, {pipeline_mode = #tpu.pipeline_mode<synchronous>, transform_indices = @transform_11, window_bounds = array<i64: 2, 16>}, {transform_indices = @transform_12, window_bounds = array<i64: 64, 16>}]} {
    %c0 = arith.constant 0 : index
    %c0_0 = arith.constant 0 : index
    %0 = vector.load %arg1[%c0, %c0_0] : memref<64x16xf32, #tpu.memory_space<vmem>>, vector<64x16xf32>
    %c0_1 = arith.constant 0 : index
    %c0_2 = arith.constant 0 : index
    %1 = vector.load %arg2[%c0_1, %c0_2] : memref<2x16xf32, #tpu.memory_space<vmem>>, vector<1x16xf32>
    %2 = vector.shape_cast %1 : vector<1x16xf32> to vector<16xf32>
    %c0_3 = arith.constant 0 : index
    %c0_4 = arith.constant 0 : index
    %3 = vector.load %arg3[%c0_3, %c0_4] : memref<2x16xf32, #tpu.memory_space<vmem>>, vector<1x16xf32>
    %4 = vector.shape_cast %3 : vector<1x16xf32> to vector<16xf32>
    %cst = arith.constant dense<0.000000e+00> : vector<64xf32>
    %5 = vector.multi_reduction <add>, %0, %cst [1] : vector<64x16xf32> to vector<64xf32>
    %6 = vector.shape_cast %5 : vector<64xf32> to vector<64x1xf32>
    %cst_5 = arith.constant 1.600000e+01 : f32
    %7 = vector.broadcast %cst_5 : f32 to vector<64x1xf32>
    %8 = arith.divf %6, %7 : vector<64x1xf32>
    %9 = vector.broadcast %8 : vector<64x1xf32> to vector<64x16xf32>
    %10 = arith.subf %0, %9 : vector<64x16xf32>
    %11 = arith.mulf %10, %10 : vector<64x16xf32>
    %cst_6 = arith.constant dense<0.000000e+00> : vector<64xf32>
    %12 = vector.multi_reduction <add>, %11, %cst_6 [1] : vector<64x16xf32> to vector<64xf32>
    %13 = vector.shape_cast %12 : vector<64xf32> to vector<64x1xf32>
    %cst_7 = arith.constant 1.600000e+01 : f32
    %14 = vector.broadcast %cst_7 : f32 to vector<64x1xf32>
    %15 = arith.divf %13, %14 : vector<64x1xf32>
    %16 = vector.broadcast %8 : vector<64x1xf32> to vector<64x16xf32>
    %17 = arith.subf %0, %16 : vector<64x16xf32>
    %cst_8 = arith.constant 9.99999974E-6 : f32
    %18 = vector.broadcast %cst_8 : f32 to vector<64x1xf32>
    %19 = arith.addf %15, %18 : vector<64x1xf32>
    %20 = math.rsqrt %19 : vector<64x1xf32>
    %21 = vector.broadcast %20 : vector<64x1xf32> to vector<64x16xf32>
    %22 = arith.mulf %17, %21 : vector<64x16xf32>
    %23 = vector.shape_cast %2 : vector<16xf32> to vector<1x16xf32>
    %24 = vector.broadcast %23 : vector<1x16xf32> to vector<64x16xf32>
    %25 = arith.mulf %22, %24 : vector<64x16xf32>
    %26 = vector.shape_cast %4 : vector<16xf32> to vector<1x16xf32>
    %27 = vector.broadcast %26 : vector<1x16xf32> to vector<64x16xf32>
    %28 = arith.addf %25, %27 : vector<64x16xf32>
    %c0_9 = arith.constant 0 : index
    %c0_10 = arith.constant 0 : index
    %c0_11 = arith.constant 0 : index
    %29 = vector.load %arg4[%c0_9, %c0_10, %c0_11] : memref<2x16x48xf32, #tpu.memory_space<vmem>>, vector<1x16x48xf32>
    %30 = vector.shape_cast %29 : vector<1x16x48xf32> to vector<16x48xf32>
    %cst_12 = arith.constant dense<0.000000e+00> : vector<64x48xf32>
    %31 = tpu.matmul %28, %30, %cst_12 {dimension_numbers = #tpu.dot_dimension_numbers<[1], [0], [0], [1], [0, 0, 1, 1], [], []>} : vector<64x16xf32>, vector<16x48xf32>, vector<64x48xf32> -> vector<64x48xf32>
    %32 = vector.extract_strided_slice %31 {offsets = [0, 0], sizes = [64, 16], strides = [1, 1]} : vector<64x48xf32> to vector<64x16xf32>
    %cst_13 = arith.constant 0.353553385 : f32
    %33 = vector.broadcast %cst_13 : f32 to vector<64x16xf32>
    %34 = arith.mulf %32, %33 : vector<64x16xf32>
    %35 = vector.extract_strided_slice %34 {offsets = [0, 0], sizes = [64, 8], strides = [1, 1]} : vector<64x16xf32> to vector<64x8xf32>
    %36 = vector.shape_cast %35 : vector<64x8xf32> to vector<8x8x8xf32>
    %37 = vector.extract_strided_slice %34 {offsets = [0, 8], sizes = [64, 8], strides = [1, 1]} : vector<64x16xf32> to vector<64x8xf32>
    %38 = vector.shape_cast %37 : vector<64x8xf32> to vector<8x8x8xf32>
    %39 = tpu.concatenate %36, %38 in 0 : vector<8x8x8xf32>, vector<8x8x8xf32> -> vector<16x8x8xf32>
    %40 = vector.extract_strided_slice %31 {offsets = [0, 16], sizes = [64, 16], strides = [1, 1]} : vector<64x48xf32> to vector<64x16xf32>
    %41 = vector.extract_strided_slice %40 {offsets = [0, 0], sizes = [64, 8], strides = [1, 1]} : vector<64x16xf32> to vector<64x8xf32>
    %42 = vector.shape_cast %41 : vector<64x8xf32> to vector<8x8x8xf32>
    %43 = vector.extract_strided_slice %40 {offsets = [0, 8], sizes = [64, 8], strides = [1, 1]} : vector<64x16xf32> to vector<64x8xf32>
    %44 = vector.shape_cast %43 : vector<64x8xf32> to vector<8x8x8xf32>
    %45 = tpu.concatenate %42, %44 in 0 : vector<8x8x8xf32>, vector<8x8x8xf32> -> vector<16x8x8xf32>
    %46 = vector.extract_strided_slice %31 {offsets = [0, 32], sizes = [64, 16], strides = [1, 1]} : vector<64x48xf32> to vector<64x16xf32>
    %47 = vector.extract_strided_slice %46 {offsets = [0, 0], sizes = [64, 8], strides = [1, 1]} : vector<64x16xf32> to vector<64x8xf32>
    %48 = vector.shape_cast %47 : vector<64x8xf32> to vector<8x8x8xf32>
    %49 = vector.extract_strided_slice %46 {offsets = [0, 8], sizes = [64, 8], strides = [1, 1]} : vector<64x16xf32> to vector<64x8xf32>
    %50 = vector.shape_cast %49 : vector<64x8xf32> to vector<8x8x8xf32>
    %51 = tpu.concatenate %48, %50 in 0 : vector<8x8x8xf32>, vector<8x8x8xf32> -> vector<16x8x8xf32>
    "tpu.trace_start"() <{level = 10 : i32, message = "bnd,bmd->bnm"}> : () -> ()
    %cst_14 = arith.constant dense<0.000000e+00> : vector<16x8x8xf32>
    %52 = tpu.matmul %39, %45, %cst_14 {dimension_numbers = #tpu.dot_dimension_numbers<[2], [2], [1], [1], [0, 0, 0, 1, 1, 1], [0], [0]>} : vector<16x8x8xf32>, vector<16x8x8xf32>, vector<16x8x8xf32> -> vector<16x8x8xf32>
    "tpu.trace_stop"() : () -> ()
    %cst_15 = arith.constant dense<0xFF800000> : vector<16x8xf32>
    %53 = vector.multi_reduction <maximumf>, %52, %cst_15 [2] : vector<16x8x8xf32> to vector<16x8xf32>
    %54 = vector.shape_cast %53 : vector<16x8xf32> to vector<16x8x1xf32>
    %55 = vector.broadcast %54 : vector<16x8x1xf32> to vector<16x8x8xf32>
    %56 = arith.subf %52, %55 : vector<16x8x8xf32>
    %57 = math.exp %56 : vector<16x8x8xf32>
    %cst_16 = arith.constant dense<0.000000e+00> : vector<16x8xf32>
    %58 = vector.multi_reduction <add>, %57, %cst_16 [2] : vector<16x8x8xf32> to vector<16x8xf32>
    %59 = vector.shape_cast %58 : vector<16x8xf32> to vector<16x8x1xf32>
    %60 = tpu.reciprocal %59 {approx = true} : vector<16x8x1xf32> -> vector<16x8x1xf32>
    %61 = vector.broadcast %60 : vector<16x8x1xf32> to vector<16x8x8xf32>
    %62 = arith.mulf %57, %61 : vector<16x8x8xf32>
    "tpu.trace_start"() <{level = 10 : i32, message = "bnm,bmd->bnd"}> : () -> ()
    %cst_17 = arith.constant dense<0.000000e+00> : vector<16x8x8xf32>
    %63 = tpu.matmul %62, %51, %cst_17 {dimension_numbers = #tpu.dot_dimension_numbers<[2], [1], [1], [2], [0, 0, 0, 1, 1, 2], [0], [0]>} : vector<16x8x8xf32>, vector<16x8x8xf32>, vector<16x8x8xf32> -> vector<16x8x8xf32>
    "tpu.trace_stop"() : () -> ()
    %64 = vector.extract_strided_slice %63 {offsets = [0, 0, 0], sizes = [8, 8, 8], strides = [1, 1, 1]} : vector<16x8x8xf32> to vector<8x8x8xf32>
    %65 = vector.shape_cast %64 : vector<8x8x8xf32> to vector<64x8xf32>
    %66 = vector.extract_strided_slice %63 {offsets = [8, 0, 0], sizes = [8, 8, 8], strides = [1, 1, 1]} : vector<16x8x8xf32> to vector<8x8x8xf32>
    %67 = vector.shape_cast %66 : vector<8x8x8xf32> to vector<64x8xf32>
    %68 = tpu.concatenate %65, %67 in 1 : vector<64x8xf32>, vector<64x8xf32> -> vector<64x16xf32>
    %c0_18 = arith.constant 0 : index
    %c0_19 = arith.constant 0 : index
    %c0_20 = arith.constant 0 : index
    %69 = vector.load %arg5[%c0_18, %c0_19, %c0_20] : memref<2x16x16xf32, #tpu.memory_space<vmem>>, vector<1x16x16xf32>
    %70 = vector.shape_cast %69 : vector<1x16x16xf32> to vector<16x16xf32>
    %cst_21 = arith.constant dense<0.000000e+00> : vector<64x16xf32>
    %71 = tpu.matmul %68, %70, %cst_21 {dimension_numbers = #tpu.dot_dimension_numbers<[1], [0], [0], [1], [0, 0, 1, 1], [], []>} : vector<64x16xf32>, vector<16x16xf32>, vector<64x16xf32> -> vector<64x16xf32>
    %72 = arith.addf %0, %71 : vector<64x16xf32>
    %c0_22 = arith.constant 0 : index
    %c0_23 = arith.constant 0 : index
    %73 = vector.load %arg6[%c0_22, %c0_23] : memref<2x16xf32, #tpu.memory_space<vmem>>, vector<1x16xf32>
    %74 = vector.shape_cast %73 : vector<1x16xf32> to vector<16xf32>
    %75 = vector.shape_cast %74 : vector<16xf32> to vector<1x16xf32>
    %76 = vector.broadcast %75 : vector<1x16xf32> to vector<64x16xf32>
    %77 = arith.addf %72, %76 : vector<64x16xf32>
    %c0_24 = arith.constant 0 : index
    %c0_25 = arith.constant 0 : index
    %78 = vector.load %arg7[%c0_24, %c0_25] : memref<2x16xf32, #tpu.memory_space<vmem>>, vector<1x16xf32>
    %79 = vector.shape_cast %78 : vector<1x16xf32> to vector<16xf32>
    %c0_26 = arith.constant 0 : index
    %c0_27 = arith.constant 0 : index
    %80 = vector.load %arg8[%c0_26, %c0_27] : memref<2x16xf32, #tpu.memory_space<vmem>>, vector<1x16xf32>
    %81 = vector.shape_cast %80 : vector<1x16xf32> to vector<16xf32>
    %cst_28 = arith.constant dense<0.000000e+00> : vector<64xf32>
    %82 = vector.multi_reduction <add>, %77, %cst_28 [1] : vector<64x16xf32> to vector<64xf32>
    %83 = vector.shape_cast %82 : vector<64xf32> to vector<64x1xf32>
    %cst_29 = arith.constant 1.600000e+01 : f32
    %84 = vector.broadcast %cst_29 : f32 to vector<64x1xf32>
    %85 = arith.divf %83, %84 : vector<64x1xf32>
    %86 = vector.broadcast %85 : vector<64x1xf32> to vector<64x16xf32>
    %87 = arith.subf %77, %86 : vector<64x16xf32>
    %88 = arith.mulf %87, %87 : vector<64x16xf32>
    %cst_30 = arith.constant dense<0.000000e+00> : vector<64xf32>
    %89 = vector.multi_reduction <add>, %88, %cst_30 [1] : vector<64x16xf32> to vector<64xf32>
    %90 = vector.shape_cast %89 : vector<64xf32> to vector<64x1xf32>
    %cst_31 = arith.constant 1.600000e+01 : f32
    %91 = vector.broadcast %cst_31 : f32 to vector<64x1xf32>
    %92 = arith.divf %90, %91 : vector<64x1xf32>
    %93 = vector.broadcast %85 : vector<64x1xf32> to vector<64x16xf32>
    %94 = arith.subf %77, %93 : vector<64x16xf32>
    %cst_32 = arith.constant 9.99999974E-6 : f32
    %95 = vector.broadcast %cst_32 : f32 to vector<64x1xf32>
    %96 = arith.addf %92, %95 : vector<64x1xf32>
    %97 = math.rsqrt %96 : vector<64x1xf32>
    %98 = vector.broadcast %97 : vector<64x1xf32> to vector<64x16xf32>
    %99 = arith.mulf %94, %98 : vector<64x16xf32>
    %100 = vector.shape_cast %79 : vector<16xf32> to vector<1x16xf32>
    %101 = vector.broadcast %100 : vector<1x16xf32> to vector<64x16xf32>
    %102 = arith.mulf %99, %101 : vector<64x16xf32>
    %103 = vector.shape_cast %81 : vector<16xf32> to vector<1x16xf32>
    %104 = vector.broadcast %103 : vector<1x16xf32> to vector<64x16xf32>
    %105 = arith.addf %102, %104 : vector<64x16xf32>
    %c0_33 = arith.constant 0 : index
    %c0_34 = arith.constant 0 : index
    %c0_35 = arith.constant 0 : index
    %106 = vector.load %arg9[%c0_33, %c0_34, %c0_35] : memref<2x16x32xf32, #tpu.memory_space<vmem>>, vector<1x16x32xf32>
    %107 = vector.shape_cast %106 : vector<1x16x32xf32> to vector<16x32xf32>
    %cst_36 = arith.constant dense<0.000000e+00> : vector<64x32xf32>
    %108 = tpu.matmul %105, %107, %cst_36 {dimension_numbers = #tpu.dot_dimension_numbers<[1], [0], [0], [1], [0, 0, 1, 1], [], []>} : vector<64x16xf32>, vector<16x32xf32>, vector<64x32xf32> -> vector<64x32xf32>
    %c0_37 = arith.constant 0 : index
    %c0_38 = arith.constant 0 : index
    %109 = vector.load %arg10[%c0_37, %c0_38] : memref<2x32xf32, #tpu.memory_space<vmem>>, vector<1x32xf32>
    %110 = vector.shape_cast %109 : vector<1x32xf32> to vector<32xf32>
    %111 = vector.shape_cast %110 : vector<32xf32> to vector<1x32xf32>
    %112 = vector.broadcast %111 : vector<1x32xf32> to vector<64x32xf32>
    %113 = arith.addf %108, %112 : vector<64x32xf32>
    %114 = arith.negf %113 : vector<64x32xf32>
    %115 = math.exp %114 : vector<64x32xf32>
    %cst_39 = arith.constant 1.000000e+00 : f32
    %116 = vector.broadcast %cst_39 : f32 to vector<64x32xf32>
    %117 = arith.addf %116, %115 : vector<64x32xf32>
    %118 = arith.divf %116, %117 : vector<64x32xf32>
    %119 = arith.mulf %113, %118 : vector<64x32xf32>
    %c0_40 = arith.constant 0 : index
    %c0_41 = arith.constant 0 : index
    %c0_42 = arith.constant 0 : index
    %120 = vector.load %arg11[%c0_40, %c0_41, %c0_42] : memref<2x32x16xf32, #tpu.memory_space<vmem>>, vector<1x32x16xf32>
    %121 = vector.shape_cast %120 : vector<1x32x16xf32> to vector<32x16xf32>
    %cst_43 = arith.constant dense<0.000000e+00> : vector<64x16xf32>
    %122 = tpu.matmul %119, %121, %cst_43 {dimension_numbers = #tpu.dot_dimension_numbers<[1], [0], [0], [1], [0, 0, 1, 1], [], []>} : vector<64x32xf32>, vector<32x16xf32>, vector<64x16xf32> -> vector<64x16xf32>
    %c0_44 = arith.constant 0 : index
    %c0_45 = arith.constant 0 : index
    %123 = vector.load %arg12[%c0_44, %c0_45] : memref<2x16xf32, #tpu.memory_space<vmem>>, vector<1x16xf32>
    %124 = vector.shape_cast %123 : vector<1x16xf32> to vector<16xf32>
    %125 = vector.shape_cast %124 : vector<16xf32> to vector<1x16xf32>
    %126 = vector.broadcast %125 : vector<1x16xf32> to vector<64x16xf32>
    %127 = arith.addf %122, %126 : vector<64x16xf32>
    %128 = arith.addf %77, %127 : vector<64x16xf32>
    %c1 = arith.constant 1 : index
    %c0_46 = arith.constant 0 : index
    %129 = vector.load %arg2[%c1, %c0_46] : memref<2x16xf32, #tpu.memory_space<vmem>>, vector<1x16xf32>
    %130 = vector.shape_cast %129 : vector<1x16xf32> to vector<16xf32>
    %c1_47 = arith.constant 1 : index
    %c0_48 = arith.constant 0 : index
    %131 = vector.load %arg3[%c1_47, %c0_48] : memref<2x16xf32, #tpu.memory_space<vmem>>, vector<1x16xf32>
    %132 = vector.shape_cast %131 : vector<1x16xf32> to vector<16xf32>
    %cst_49 = arith.constant dense<0.000000e+00> : vector<64xf32>
    %133 = vector.multi_reduction <add>, %128, %cst_49 [1] : vector<64x16xf32> to vector<64xf32>
    %134 = vector.shape_cast %133 : vector<64xf32> to vector<64x1xf32>
    %cst_50 = arith.constant 1.600000e+01 : f32
    %135 = vector.broadcast %cst_50 : f32 to vector<64x1xf32>
    %136 = arith.divf %134, %135 : vector<64x1xf32>
    %137 = vector.broadcast %136 : vector<64x1xf32> to vector<64x16xf32>
    %138 = arith.subf %128, %137 : vector<64x16xf32>
    %139 = arith.mulf %138, %138 : vector<64x16xf32>
    %cst_51 = arith.constant dense<0.000000e+00> : vector<64xf32>
    %140 = vector.multi_reduction <add>, %139, %cst_51 [1] : vector<64x16xf32> to vector<64xf32>
    %141 = vector.shape_cast %140 : vector<64xf32> to vector<64x1xf32>
    %cst_52 = arith.constant 1.600000e+01 : f32
    %142 = vector.broadcast %cst_52 : f32 to vector<64x1xf32>
    %143 = arith.divf %141, %142 : vector<64x1xf32>
    %144 = vector.broadcast %136 : vector<64x1xf32> to vector<64x16xf32>
    %145 = arith.subf %128, %144 : vector<64x16xf32>
    %cst_53 = arith.constant 9.99999974E-6 : f32
    %146 = vector.broadcast %cst_53 : f32 to vector<64x1xf32>
    %147 = arith.addf %143, %146 : vector<64x1xf32>
    %148 = math.rsqrt %147 : vector<64x1xf32>
    %149 = vector.broadcast %148 : vector<64x1xf32> to vector<64x16xf32>
    %150 = arith.mulf %145, %149 : vector<64x16xf32>
    %151 = vector.shape_cast %130 : vector<16xf32> to vector<1x16xf32>
    %152 = vector.broadcast %151 : vector<1x16xf32> to vector<64x16xf32>
    %153 = arith.mulf %150, %152 : vector<64x16xf32>
    %154 = vector.shape_cast %132 : vector<16xf32> to vector<1x16xf32>
    %155 = vector.broadcast %154 : vector<1x16xf32> to vector<64x16xf32>
    %156 = arith.addf %153, %155 : vector<64x16xf32>
    %c1_54 = arith.constant 1 : index
    %c0_55 = arith.constant 0 : index
    %c0_56 = arith.constant 0 : index
    %157 = vector.load %arg4[%c1_54, %c0_55, %c0_56] : memref<2x16x48xf32, #tpu.memory_space<vmem>>, vector<1x16x48xf32>
    %158 = vector.shape_cast %157 : vector<1x16x48xf32> to vector<16x48xf32>
    %cst_57 = arith.constant dense<0.000000e+00> : vector<64x48xf32>
    %159 = tpu.matmul %156, %158, %cst_57 {dimension_numbers = #tpu.dot_dimension_numbers<[1], [0], [0], [1], [0, 0, 1, 1], [], []>} : vector<64x16xf32>, vector<16x48xf32>, vector<64x48xf32> -> vector<64x48xf32>
    %160 = vector.extract_strided_slice %159 {offsets = [0, 0], sizes = [64, 16], strides = [1, 1]} : vector<64x48xf32> to vector<64x16xf32>
    %cst_58 = arith.constant 0.353553385 : f32
    %161 = vector.broadcast %cst_58 : f32 to vector<64x16xf32>
    %162 = arith.mulf %160, %161 : vector<64x16xf32>
    %163 = vector.extract_strided_slice %162 {offsets = [0, 0], sizes = [64, 8], strides = [1, 1]} : vector<64x16xf32> to vector<64x8xf32>
    %164 = vector.shape_cast %163 : vector<64x8xf32> to vector<8x8x8xf32>
    %165 = vector.extract_strided_slice %162 {offsets = [0, 8], sizes = [64, 8], strides = [1, 1]} : vector<64x16xf32> to vector<64x8xf32>
    %166 = vector.shape_cast %165 : vector<64x8xf32> to vector<8x8x8xf32>
    %167 = tpu.concatenate %164, %166 in 0 : vector<8x8x8xf32>, vector<8x8x8xf32> -> vector<16x8x8xf32>
    %168 = vector.extract_strided_slice %159 {offsets = [0, 16], sizes = [64, 16], strides = [1, 1]} : vector<64x48xf32> to vector<64x16xf32>
    %169 = vector.extract_strided_slice %168 {offsets = [0, 0], sizes = [64, 8], strides = [1, 1]} : vector<64x16xf32> to vector<64x8xf32>
    %170 = vector.shape_cast %169 : vector<64x8xf32> to vector<8x8x8xf32>
    %171 = vector.extract_strided_slice %168 {offsets = [0, 8], sizes = [64, 8], strides = [1, 1]} : vector<64x16xf32> to vector<64x8xf32>
    %172 = vector.shape_cast %171 : vector<64x8xf32> to vector<8x8x8xf32>
    %173 = tpu.concatenate %170, %172 in 0 : vector<8x8x8xf32>, vector<8x8x8xf32> -> vector<16x8x8xf32>
    %174 = vector.extract_strided_slice %159 {offsets = [0, 32], sizes = [64, 16], strides = [1, 1]} : vector<64x48xf32> to vector<64x16xf32>
    %175 = vector.extract_strided_slice %174 {offsets = [0, 0], sizes = [64, 8], strides = [1, 1]} : vector<64x16xf32> to vector<64x8xf32>
    %176 = vector.shape_cast %175 : vector<64x8xf32> to vector<8x8x8xf32>
    %177 = vector.extract_strided_slice %174 {offsets = [0, 8], sizes = [64, 8], strides = [1, 1]} : vector<64x16xf32> to vector<64x8xf32>
    %178 = vector.shape_cast %177 : vector<64x8xf32> to vector<8x8x8xf32>
    %179 = tpu.concatenate %176, %178 in 0 : vector<8x8x8xf32>, vector<8x8x8xf32> -> vector<16x8x8xf32>
    "tpu.trace_start"() <{level = 10 : i32, message = "bnd,bmd->bnm"}> : () -> ()
    %cst_59 = arith.constant dense<0.000000e+00> : vector<16x8x8xf32>
    %180 = tpu.matmul %167, %173, %cst_59 {dimension_numbers = #tpu.dot_dimension_numbers<[2], [2], [1], [1], [0, 0, 0, 1, 1, 1], [0], [0]>} : vector<16x8x8xf32>, vector<16x8x8xf32>, vector<16x8x8xf32> -> vector<16x8x8xf32>
    "tpu.trace_stop"() : () -> ()
    %cst_60 = arith.constant dense<0xFF800000> : vector<16x8xf32>
    %181 = vector.multi_reduction <maximumf>, %180, %cst_60 [2] : vector<16x8x8xf32> to vector<16x8xf32>
    %182 = vector.shape_cast %181 : vector<16x8xf32> to vector<16x8x1xf32>
    %183 = vector.broadcast %182 : vector<16x8x1xf32> to vector<16x8x8xf32>
    %184 = arith.subf %180, %183 : vector<16x8x8xf32>
    %185 = math.exp %184 : vector<16x8x8xf32>
    %cst_61 = arith.constant dense<0.000000e+00> : vector<16x8xf32>
    %186 = vector.multi_reduction <add>, %185, %cst_61 [2] : vector<16x8x8xf32> to vector<16x8xf32>
    %187 = vector.shape_cast %186 : vector<16x8xf32> to vector<16x8x1xf32>
    %188 = tpu.reciprocal %187 {approx = true} : vector<16x8x1xf32> -> vector<16x8x1xf32>
    %189 = vector.broadcast %188 : vector<16x8x1xf32> to vector<16x8x8xf32>
    %190 = arith.mulf %185, %189 : vector<16x8x8xf32>
    "tpu.trace_start"() <{level = 10 : i32, message = "bnm,bmd->bnd"}> : () -> ()
    %cst_62 = arith.constant dense<0.000000e+00> : vector<16x8x8xf32>
    %191 = tpu.matmul %190, %179, %cst_62 {dimension_numbers = #tpu.dot_dimension_numbers<[2], [1], [1], [2], [0, 0, 0, 1, 1, 2], [0], [0]>} : vector<16x8x8xf32>, vector<16x8x8xf32>, vector<16x8x8xf32> -> vector<16x8x8xf32>
    "tpu.trace_stop"() : () -> ()
    %192 = vector.extract_strided_slice %191 {offsets = [0, 0, 0], sizes = [8, 8, 8], strides = [1, 1, 1]} : vector<16x8x8xf32> to vector<8x8x8xf32>
    %193 = vector.shape_cast %192 : vector<8x8x8xf32> to vector<64x8xf32>
    %194 = vector.extract_strided_slice %191 {offsets = [8, 0, 0], sizes = [8, 8, 8], strides = [1, 1, 1]} : vector<16x8x8xf32> to vector<8x8x8xf32>
    %195 = vector.shape_cast %194 : vector<8x8x8xf32> to vector<64x8xf32>
    %196 = tpu.concatenate %193, %195 in 1 : vector<64x8xf32>, vector<64x8xf32> -> vector<64x16xf32>
    %c1_63 = arith.constant 1 : index
    %c0_64 = arith.constant 0 : index
    %c0_65 = arith.constant 0 : index
    %197 = vector.load %arg5[%c1_63, %c0_64, %c0_65] : memref<2x16x16xf32, #tpu.memory_space<vmem>>, vector<1x16x16xf32>
    %198 = vector.shape_cast %197 : vector<1x16x16xf32> to vector<16x16xf32>
    %cst_66 = arith.constant dense<0.000000e+00> : vector<64x16xf32>
    %199 = tpu.matmul %196, %198, %cst_66 {dimension_numbers = #tpu.dot_dimension_numbers<[1], [0], [0], [1], [0, 0, 1, 1], [], []>} : vector<64x16xf32>, vector<16x16xf32>, vector<64x16xf32> -> vector<64x16xf32>
    %200 = arith.addf %128, %199 : vector<64x16xf32>
    %c1_67 = arith.constant 1 : index
    %c0_68 = arith.constant 0 : index
    %201 = vector.load %arg6[%c1_67, %c0_68] : memref<2x16xf32, #tpu.memory_space<vmem>>, vector<1x16xf32>
    %202 = vector.shape_cast %201 : vector<1x16xf32> to vector<16xf32>
    %203 = vector.shape_cast %202 : vector<16xf32> to vector<1x16xf32>
    %204 = vector.broadcast %203 : vector<1x16xf32> to vector<64x16xf32>
    %205 = arith.addf %200, %204 : vector<64x16xf32>
    %c1_69 = arith.constant 1 : index
    %c0_70 = arith.constant 0 : index
    %206 = vector.load %arg7[%c1_69, %c0_70] : memref<2x16xf32, #tpu.memory_space<vmem>>, vector<1x16xf32>
    %207 = vector.shape_cast %206 : vector<1x16xf32> to vector<16xf32>
    %c1_71 = arith.constant 1 : index
    %c0_72 = arith.constant 0 : index
    %208 = vector.load %arg8[%c1_71, %c0_72] : memref<2x16xf32, #tpu.memory_space<vmem>>, vector<1x16xf32>
    %209 = vector.shape_cast %208 : vector<1x16xf32> to vector<16xf32>
    %cst_73 = arith.constant dense<0.000000e+00> : vector<64xf32>
    %210 = vector.multi_reduction <add>, %205, %cst_73 [1] : vector<64x16xf32> to vector<64xf32>
    %211 = vector.shape_cast %210 : vector<64xf32> to vector<64x1xf32>
    %cst_74 = arith.constant 1.600000e+01 : f32
    %212 = vector.broadcast %cst_74 : f32 to vector<64x1xf32>
    %213 = arith.divf %211, %212 : vector<64x1xf32>
    %214 = vector.broadcast %213 : vector<64x1xf32> to vector<64x16xf32>
    %215 = arith.subf %205, %214 : vector<64x16xf32>
    %216 = arith.mulf %215, %215 : vector<64x16xf32>
    %cst_75 = arith.constant dense<0.000000e+00> : vector<64xf32>
    %217 = vector.multi_reduction <add>, %216, %cst_75 [1] : vector<64x16xf32> to vector<64xf32>
    %218 = vector.shape_cast %217 : vector<64xf32> to vector<64x1xf32>
    %cst_76 = arith.constant 1.600000e+01 : f32
    %219 = vector.broadcast %cst_76 : f32 to vector<64x1xf32>
    %220 = arith.divf %218, %219 : vector<64x1xf32>
    %221 = vector.broadcast %213 : vector<64x1xf32> to vector<64x16xf32>
    %222 = arith.subf %205, %221 : vector<64x16xf32>
    %cst_77 = arith.constant 9.99999974E-6 : f32
    %223 = vector.broadcast %cst_77 : f32 to vector<64x1xf32>
    %224 = arith.addf %220, %223 : vector<64x1xf32>
    %225 = math.rsqrt %224 : vector<64x1xf32>
    %226 = vector.broadcast %225 : vector<64x1xf32> to vector<64x16xf32>
    %227 = arith.mulf %222, %226 : vector<64x16xf32>
    %228 = vector.shape_cast %207 : vector<16xf32> to vector<1x16xf32>
    %229 = vector.broadcast %228 : vector<1x16xf32> to vector<64x16xf32>
    %230 = arith.mulf %227, %229 : vector<64x16xf32>
    %231 = vector.shape_cast %209 : vector<16xf32> to vector<1x16xf32>
    %232 = vector.broadcast %231 : vector<1x16xf32> to vector<64x16xf32>
    %233 = arith.addf %230, %232 : vector<64x16xf32>
    %c1_78 = arith.constant 1 : index
    %c0_79 = arith.constant 0 : index
    %c0_80 = arith.constant 0 : index
    %234 = vector.load %arg9[%c1_78, %c0_79, %c0_80] : memref<2x16x32xf32, #tpu.memory_space<vmem>>, vector<1x16x32xf32>
    %235 = vector.shape_cast %234 : vector<1x16x32xf32> to vector<16x32xf32>
    %cst_81 = arith.constant dense<0.000000e+00> : vector<64x32xf32>
    %236 = tpu.matmul %233, %235, %cst_81 {dimension_numbers = #tpu.dot_dimension_numbers<[1], [0], [0], [1], [0, 0, 1, 1], [], []>} : vector<64x16xf32>, vector<16x32xf32>, vector<64x32xf32> -> vector<64x32xf32>
    %c1_82 = arith.constant 1 : index
    %c0_83 = arith.constant 0 : index
    %237 = vector.load %arg10[%c1_82, %c0_83] : memref<2x32xf32, #tpu.memory_space<vmem>>, vector<1x32xf32>
    %238 = vector.shape_cast %237 : vector<1x32xf32> to vector<32xf32>
    %239 = vector.shape_cast %238 : vector<32xf32> to vector<1x32xf32>
    %240 = vector.broadcast %239 : vector<1x32xf32> to vector<64x32xf32>
    %241 = arith.addf %236, %240 : vector<64x32xf32>
    %242 = arith.negf %241 : vector<64x32xf32>
    %243 = math.exp %242 : vector<64x32xf32>
    %cst_84 = arith.constant 1.000000e+00 : f32
    %244 = vector.broadcast %cst_84 : f32 to vector<64x32xf32>
    %245 = arith.addf %244, %243 : vector<64x32xf32>
    %246 = arith.divf %244, %245 : vector<64x32xf32>
    %247 = arith.mulf %241, %246 : vector<64x32xf32>
    %c1_85 = arith.constant 1 : index
    %c0_86 = arith.constant 0 : index
    %c0_87 = arith.constant 0 : index
    %248 = vector.load %arg11[%c1_85, %c0_86, %c0_87] : memref<2x32x16xf32, #tpu.memory_space<vmem>>, vector<1x32x16xf32>
    %249 = vector.shape_cast %248 : vector<1x32x16xf32> to vector<32x16xf32>
    %cst_88 = arith.constant dense<0.000000e+00> : vector<64x16xf32>
    %250 = tpu.matmul %247, %249, %cst_88 {dimension_numbers = #tpu.dot_dimension_numbers<[1], [0], [0], [1], [0, 0, 1, 1], [], []>} : vector<64x32xf32>, vector<32x16xf32>, vector<64x16xf32> -> vector<64x16xf32>
    %c1_89 = arith.constant 1 : index
    %c0_90 = arith.constant 0 : index
    %251 = vector.load %arg12[%c1_89, %c0_90] : memref<2x16xf32, #tpu.memory_space<vmem>>, vector<1x16xf32>
    %252 = vector.shape_cast %251 : vector<1x16xf32> to vector<16xf32>
    %253 = vector.shape_cast %252 : vector<16xf32> to vector<1x16xf32>
    %254 = vector.broadcast %253 : vector<1x16xf32> to vector<64x16xf32>
    %255 = arith.addf %250, %254 : vector<64x16xf32>
    %256 = arith.addf %205, %255 : vector<64x16xf32>
    %c0_91 = arith.constant 0 : index
    %c0_92 = arith.constant 0 : index
    %257 = vector.load %arg13[%c0_91, %c0_92] : memref<64x16xf32, #tpu.memory_space<vmem>>, vector<64x16xf32>
    tpu.vector_store %arg13[%c0_91, %c0_92], %256 {strides = array<i32>} : memref<64x16xf32, #tpu.memory_space<vmem>>, vector<64x16xf32>,
    return
  }
  func.func @transform_0(%arg0: i32) -> (i32, i32) {
    %c0_i32 = arith.constant 0 : i32
    %c0_i32_0 = arith.constant 0 : i32
    return %arg0, %c0_i32 : i32, i32
  }
  func.func @transform_1(%arg0: i32) -> (i32, i32) {
    %c0_i32 = arith.constant 0 : i32
    %c0_i32_0 = arith.constant 0 : i32
    %c0_i32_1 = arith.constant 0 : i32
    return %c0_i32, %c0_i32_0 : i32, i32
  }
  func.func @transform_2(%arg0: i32) -> (i32, i32) {
    %c0_i32 = arith.constant 0 : i32
    %c0_i32_0 = arith.constant 0 : i32
    %c0_i32_1 = arith.constant 0 : i32
    return %c0_i32, %c0_i32_0 : i32, i32
  }
  func.func @transform_3(%arg0: i32) -> (i32, i32, i32) {
    %c0_i32 = arith.constant 0 : i32
    %c0_i32_0 = arith.constant 0 : i32
    %c0_i32_1 = arith.constant 0 : i32
    %c0_i32_2 = arith.constant 0 : i32
    return %c0_i32, %c0_i32_0, %c0_i32_1 : i32, i32, i32
  }
  func.func @transform_4(%arg0: i32) -> (i32, i32, i32) {
    %c0_i32 = arith.constant 0 : i32
    %c0_i32_0 = arith.constant 0 : i32
    %c0_i32_1 = arith.constant 0 : i32
    %c0_i32_2 = arith.constant 0 : i32
    return %c0_i32, %c0_i32_0, %c0_i32_1 : i32, i32, i32
  }
  func.func @transform_5(%arg0: i32) -> (i32, i32) {
    %c0_i32 = arith.constant 0 : i32
    %c0_i32_0 = arith.constant 0 : i32
    %c0_i32_1 = arith.constant 0 : i32
    return %c0_i32, %c0_i32_0 : i32, i32
  }
  func.func @transform_6(%arg0: i32) -> (i32, i32) {
    %c0_i32 = arith.constant 0 : i32
    %c0_i32_0 = arith.constant 0 : i32
    %c0_i32_1 = arith.constant 0 : i32
    return %c0_i32, %c0_i32_0 : i32, i32
  }
  func.func @transform_7(%arg0: i32) -> (i32, i32) {
    %c0_i32 = arith.constant 0 : i32
    %c0_i32_0 = arith.constant 0 : i32
    %c0_i32_1 = arith.constant 0 : i32
    return %c0_i32, %c0_i32_0 : i32, i32
  }
  func.func @transform_8(%arg0: i32) -> (i32, i32, i32) {
    %c0_i32 = arith.constant 0 : i32
    %c0_i32_0 = arith.constant 0 : i32
    %c0_i32_1 = arith.constant 0 : i32
    %c0_i32_2 = arith.constant 0 : i32
    return %c0_i32, %c0_i32_0, %c0_i32_1 : i32, i32, i32
  }
  func.func @transform_9(%arg0: i32) -> (i32, i32) {
    %c0_i32 = arith.constant 0 : i32
    %c0_i32_0 = arith.constant 0 : i32
    %c0_i32_1 = arith.constant 0 : i32
    return %c0_i32, %c0_i32_0 : i32, i32
  }
  func.func @transform_10(%arg0: i32) -> (i32, i32, i32) {
    %c0_i32 = arith.constant 0 : i32
    %c0_i32_0 = arith.constant 0 : i32
    %c0_i32_1 = arith.constant 0 : i32
    %c0_i32_2 = arith.constant 0 : i32
    return %c0_i32, %c0_i32_0, %c0_i32_1 : i32, i32, i32
  }
  func.func @transform_11(%arg0: i32) -> (i32, i32) {
    %c0_i32 = arith.constant 0 : i32
    %c0_i32_0 = arith.constant 0 : i32
    %c0_i32_1 = arith.constant 0 : i32
    return %c0_i32, %c0_i32_0 : i32, i32
  }
  func.func @transform_12(%arg0: i32) -> (i32, i32) {
    %c0_i32 = arith.constant 0 : i32
    %c0_i32_0 = arith.constant 0 : i32
    return %arg0, %c0_i32 : i32, i32
  }
}

</mosaic_0001>

<bundles_post_ra>
// kernel: tpu_custom_call.1
= control target key start
LH: loop header
LB: loop body
LE: loop exit
PB: predicated region body
PF: predicated region fallthrough
CT: control target
= control target key end

     0   :  { %vm51_vm0 = vcmask 130048   ;;  %s8419_s27 = smov 120   ;;  %vm8421_vm1 = vmmov 0   ;;  %s8422_s28 = smov 112   ;;  %vm370_vm2 = vcmask 64512   ;;  %vm3500_vm3 = vcmask 261120   ;;  %s10015_s0 = inlined_call_operand.vmem [shape: f32[64,16], index: 0, kind: input, shape index: {}]   ;;  %s10016_s3 = inlined_call_operand.vmem [shape: f32[2,16,48], index: 3, kind: input, shape index: {}]   ;;  %s10017_s1 = inlined_call_operand.vmem [shape: f32[2,16], index: 1, kind: input, shape index: {}]   ;;  %s10018_s2 = inlined_call_operand.vmem [shape: f32[2,16], index: 2, kind: input, shape index: {}]   ;;  %s10019_s4 = inlined_call_operand.vmem [shape: f32[2,16,16], index: 4, kind: input, shape index: {}]   ;;  %s10020_s5 = inlined_call_operand.vmem [shape: f32[2,16], index: 5, kind: input, shape index: {}]   ;;  %s10021_s8 = inlined_call_operand.vmem [shape: f32[2,16,32], index: 8, kind: input, shape index: {}]   ;;  %s10022_s6 = inlined_call_operand.vmem [shape: f32[2,16], index: 6, kind: input, shape index: {}]   ;;  %s10023_s7 = inlined_call_operand.vmem [shape: f32[2,16], index: 7, kind: input, shape index: {}]   ;;  %s10024_s10 = inlined_call_operand.vmem [shape: f32[2,32,16], index: 10, kind: input, shape index: {}]   ;;  %s10025_s9 = inlined_call_operand.vmem [shape: f32[2,32], index: 9, kind: input, shape index: {}]   ;;  %s10026_s11 = inlined_call_operand.vmem [shape: f32[2,16], index: 11, kind: input, shape index: {}]   ;;  %s10027_s12 = inlined_call_operand.vmem [shape: f32[64,16], index: 12, kind: output, shape index: {}]  }
   0x1   :  { %v41_v0 = vld [vmem:[%s10015_s0] sm:$0xff]  ;;  %v43_v1 = vld [vmem:[%s10015_s0 + $0x10] sm:$0xff]  ;;  %v42_v2 = vld [vmem:[%s10015_s0 + $0x8] sm:$0xff]  ;;  %s8423_s29 = smov 96   ;;  %s8424_s16 = smov 8  }
   0x2   :  { %v52_v3 = vsel %vm51_vm0, %v41_v0, 0.0  ;;  %v58_v4 = vsel %vm51_vm0, %v43_v1, 0.0  ;;  %v44_v5 = vld [vmem:[%s10015_s0 + $0x18] sm:$0xff]  ;;  %v55_v6 = vsel %vm51_vm0, %v42_v2, 0.0  ;;  %v45_v8 = vld [vmem:[%s10015_s0 + $0x20] sm:$0xff]  ;;  %v46_v9 = vld [vmem:[%s10015_s0 + $0x28] sm:$0xff] }
   0x3   :  { %53 = vadd.xlane.f32.xlu0 %v52_v3  ;;  %59 = vadd.xlane.f32.xlu1 %v58_v4  ;;  %v61_v7 = vsel %vm51_vm0, %v44_v5, 0.0  ;;  %v64_v10 = vsel %vm51_vm0, %v45_v8, 0.0  ;;  %v67_v11 = vsel %vm51_vm0, %v46_v9, 0.0  ;;  %v47_v12 = vld [vmem:[%s10015_s0 + $0x30] sm:$0xff]  ;;  %v48_v13 = vld [vmem:[%s10015_s0 + $0x38] sm:$0xff]  ;;  %v181_v56 = vld [vmem:[%s10016_s3] sm:$0xff] }
   0x4   :  { %v70_v14 = vsel %vm51_vm0, %v47_v12, 0.0  ;;  %v73_v15 = vsel %vm51_vm0, %v48_v13, 0.0  ;;  %v182_v57 = vld [vmem:[%s10016_s3 + $0x8] sm:$0xff] }
   0x5   :  { %v8107_v58 = vpack.c.bf16 %v182_v57, %v181_v56 }
   0x7   :  { %56 = vadd.xlane.f32.xlu0 %v55_v6  ;;  %62 = vadd.xlane.f32.xlu1 %v61_v7 }
   0x8   :  { %8108 = vmatprep.subr.bf16.mxu0 %v8107_v58  ;;  %8147 = vmatprep.subr.bf16.mxu1 %v8107_v58 }
   0x9   :  { %8110 = vmatpush3.bf16.msra.mxu0 %v8107_v58  ;;  %8148 = vmatpush3.bf16.msra.mxu1 %v8107_v58 }
   0xb   :  { %65 = vadd.xlane.f32.xlu0 %v64_v10  ;;  %68 = vadd.xlane.f32.xlu1 %v67_v11 }
   0xf   :  { %71 = vadd.xlane.f32.xlu0 %v70_v14  ;;  %74 = vadd.xlane.f32.xlu1 %v73_v15 }
  0x90   :  { %v54_v16 = vpop.xlane.xlu0 %53  ;;  %v60_v17 = vpop.xlane.xlu1 %59 }
  0x91   :  { %v77_v18 = vmul.f32 0.0625, %v54_v16  ;;  %v79_v19 = vmul.f32 0.0625, %v60_v17  ;;  %v7239_v17 = vld [vmem:[%s10017_s1] ss:$0 sm:$0xff] }
  0x93   :  { %v8522_v20 = vsub.f32 %v41_v0, %v77_v18  ;;  %v8524_v21 = vsub.f32 %v43_v1, %v79_v19 }
  0x94   :  { %v57_v22 = vpop.xlane.xlu0 %56  ;;  %v63_v23 = vpop.xlane.xlu1 %62 }
  0x95   :  { %v78_v24 = vmul.f32 0.0625, %v57_v22  ;;  %v80_v25 = vmul.f32 0.0625, %v63_v23  ;;  %v93_v26 = vmul.f32 %v8522_v20, %v8522_v20  ;;  %v95_v27 = vmul.f32 %v8524_v21, %v8524_v21  ;;  %v7240_v23 = vld [vmem:[%s10018_s2] ss:$0 sm:$0xff] }
  0x97   :  { %v8530_v28 = vsub.f32 %v42_v2, %v78_v24  ;;  %v8532_v29 = vsub.f32 %v44_v5, %v80_v25  ;;  %v101_v30 = vsel %vm51_vm0, %v93_v26, 0.0  ;;  %v107_v33 = vsel %vm51_vm0, %v95_v27, 0.0 }
  0x98   :  { %102 = vadd.xlane.f32.xlu0 %v101_v30  ;;  %v66_v31 = vpop.xlane.xlu0 %65  ;;  %v69_v32 = vpop.xlane.xlu1 %68 }
  0x99   :  { %v81_v34 = vmul.f32 0.0625, %v66_v31  ;;  %v82_v35 = vmul.f32 0.0625, %v69_v32  ;;  %v94_v36 = vmul.f32 %v8530_v28, %v8530_v28  ;;  %v96_v37 = vmul.f32 %v8532_v29, %v8532_v29 }
  0x9b   :  { %v8540_v38 = vsub.f32 %v45_v8, %v81_v34  ;;  %v8542_v39 = vsub.f32 %v46_v9, %v82_v35  ;;  %v104_v40 = vsel %vm51_vm0, %v94_v36, 0.0  ;;  %v110_v43 = vsel %vm51_vm0, %v96_v37, 0.0 }
  0x9c   :  { %108 = vadd.xlane.f32.xlu0 %v107_v33  ;;  %105 = vadd.xlane.f32.xlu1 %v104_v40  ;;  %v72_v41 = vpop.xlane.xlu0 %71  ;;  %v75_v42 = vpop.xlane.xlu1 %74 }
  0x9d   :  { %v83_v44 = vmul.f32 0.0625, %v72_v41  ;;  %v84_v45 = vmul.f32 0.0625, %v75_v42  ;;  %v97_v46 = vmul.f32 %v8540_v38, %v8540_v38  ;;  %v98_v47 = vmul.f32 %v8542_v39, %v8542_v39 }
  0x9f   :  { %v8550_v48 = vsub.f32 %v47_v12, %v83_v44  ;;  %v8552_v49 = vsub.f32 %v48_v13, %v84_v45  ;;  %v113_v50 = vsel %vm51_vm0, %v97_v46, 0.0  ;;  %v116_v51 = vsel %vm51_vm0, %v98_v47, 0.0 }
  0xa0   :  { %111 = vadd.xlane.f32.xlu1 %v110_v43  ;;  %114 = vadd.xlane.f32.xlu0 %v113_v50 }
  0xa1   :  { %v99_v52 = vmul.f32 %v8550_v48, %v8550_v48  ;;  %v100_v53 = vmul.f32 %v8552_v49, %v8552_v49 }
  0xa3   :  { %v119_v54 = vsel %vm51_vm0, %v99_v52, 0.0  ;;  %v122_v55 = vsel %vm51_vm0, %v100_v53, 0.0 }
  0xa4   :  { %117 = vadd.xlane.f32.xlu1 %v116_v51  ;;  %120 = vadd.xlane.f32.xlu0 %v119_v54 }
  0xa8   :  { %123 = vadd.xlane.f32.xlu1 %v122_v55 }
 0x125   :  { %v103_v59 = vpop.xlane.xlu0 %102 }
 0x126   :  { %v125_v60 = vmul.f32 0.0625, %v103_v59 }
 0x128   :  { %v133_v61 = vadd.f32 1e-05, %v125_v60 }
 0x129   :  { %v106_v62 = vpop.xlane.xlu1 %105  ;;  %v109_v63 = vpop.xlane.xlu0 %108 }
 0x12a   :  { %8155 = vrsqrt.f32 %v133_v61  ;;  %v126_v0 = vmul.f32 0.0625, %v106_v62  ;;  %v127_v1 = vmul.f32 0.0625, %v109_v63 }
 0x12c   :  { %v134_v2 = vadd.f32 1e-05, %v126_v0  ;;  %v135_v3 = vadd.f32 1e-05, %v127_v1 }
 0x12d   :  { %v112_v4 = vpop.xlane.xlu1 %111  ;;  %v115_v5 = vpop.xlane.xlu0 %114 }
 0x12e   :  { %8157 = vrsqrt.f32 %v134_v2  ;;  %v128_v6 = vmul.f32 0.0625, %v112_v4  ;;  %v129_v7 = vmul.f32 0.0625, %v115_v5 }
 0x12f   :  { %8159 = vrsqrt.f32 %v135_v3 }
 0x130   :  { %v136_v8 = vadd.f32 1e-05, %v128_v6  ;;  %v137_v9 = vadd.f32 1e-05, %v129_v7 }
 0x131   :  { %v118_v10 = vpop.xlane.xlu1 %117  ;;  %v121_v11 = vpop.xlane.xlu0 %120 }
 0x132   :  { %8161 = vrsqrt.f32 %v136_v8  ;;  %v130_v12 = vmul.f32 0.0625, %v118_v10  ;;  %v131_v13 = vmul.f32 0.0625, %v121_v11 }
 0x133   :  { %8163 = vrsqrt.f32 %v137_v9 }
 0x134   :  { %v8156_v14 = vpop.eup %8155  ;;  %v138_v15 = vadd.f32 1e-05, %v130_v12  ;;  %v139_v16 = vadd.f32 1e-05, %v131_v13 }
 0x135   :  { %v124_v18 = vpop.xlane.xlu1 %123  ;;  %v149_v19 = vmul.f32 %v8156_v14, %v8522_v20 }
 0x136   :  { %8165 = vrsqrt.f32 %v138_v15  ;;  %v132_v22 = vmul.f32 0.0625, %v124_v18 }
 0x137   :  { %8167 = vrsqrt.f32 %v139_v16  ;;  %v161_v24 = vmul.f32 %v7239_v17, %v149_v19 }
 0x138   :  { %v8158_v25 = vpop.eup %8157  ;;  %v140_v26 = vadd.f32 1e-05, %v132_v22 }
 0x139   :  { %v8160_v27 = vpop.eup %8159  ;;  %v173_v30 = vadd.f32 %v7240_v23, %v161_v24  ;;  %v150_v31 = vmul.f32 %v8158_v25, %v8530_v28 }
 0x13a   :  { %8169 = vrsqrt.f32 %v140_v26  ;;  %v151_v32 = vmul.f32 %v8160_v27, %v8524_v21 }
 0x13b   :  { %7655 = vmatprep.mubr.msk.f32.mxu0 %vm51_vm0, %v173_v30  ;;  %v162_v20 = vmul.f32 %v7239_v17, %v150_v31 }
 0x13c   :  { %v8162_v33 = vpop.eup %8161  ;;  %v163_v34 = vmul.f32 %v7239_v17, %v151_v32 }
 0x13d   :  { %v8164_v35 = vpop.eup %8163  ;;  %v174_v36 = vadd.f32 %v7240_v23, %v162_v20  ;;  %v152_v37 = vmul.f32 %v8162_v33, %v8532_v29 }
 0x13e   :  { %v175_v40 = vadd.f32 %v7240_v23, %v163_v34  ;;  %v153_v41 = vmul.f32 %v8164_v35, %v8540_v38 }
 0x13f   :  { %7656 = vmatmul.mubr.msk.f32.vlgmr.msra.gmra.mrb[0].mxu0 %vm51_vm0, %v174_v36  ;;  %v164_v42 = vmul.f32 %v7239_v17, %v152_v37 }
 0x140   :  { %v8166_v43 = vpop.eup %8165  ;;  %7658 = vmatprep.mubr.msk.f32.mxu0 %vm51_vm0, %v175_v40  ;;  %v165_v28 = vmul.f32 %v7239_v17, %v153_v41 }
 0x141   :  { %v8168_v21 = vpop.eup %8167  ;;  %v176_v44 = vadd.f32 %v7240_v23, %v164_v42  ;;  %v154_v45 = vmul.f32 %v8166_v43, %v8542_v39 }
 0x142   :  { %v177_v46 = vadd.f32 %v7240_v23, %v165_v28  ;;  %v155_v47 = vmul.f32 %v8168_v21, %v8550_v48 }
 0x143   :  { %7659 = vmatmul.mubr.msk.f32.gmra.mrb[2].mxu0 %vm51_vm0, %v176_v44  ;;  %v166_v29 = vmul.f32 %v7239_v17, %v154_v45 }
 0x144   :  { %v8170_v50 = vpop.eup %8169  ;;  %7661 = vmatprep.mubr.msk.f32.mxu1 %vm51_vm0, %v177_v46  ;;  %v167_v38 = vmul.f32 %v7239_v17, %v155_v47 }
 0x145   :  { %v178_v51 = vadd.f32 %v7240_v23, %v166_v29  ;;  %v156_v52 = vmul.f32 %v8170_v50, %v8552_v49  ;;  %v8420_v49 = vmov 0.0  }
 0x146   :  { %v179_v53 = vadd.f32 %v7240_v23, %v167_v38  ;;  %7667 = vmatprep.subr.mxu1 %v8420_v49  ;;  %7687 = vmatprep.subr.mxu0 %v8420_v49 }
 0x147   :  { %7662 = vmatmul.mubr.msk.f32.vlgmr.msra.gmra.mrb[0].mxu1 %vm51_vm0, %v178_v51  ;;  %v168_v54 = vmul.f32 %v7239_v17, %v156_v52  ;;  %7689 = vmatprep.mubr.msk.f32.mxu0 %vm8421_vm1, %v8420_v49 }
 0x148   :  { %7664 = vmatprep.mubr.msk.f32.mxu1 %vm51_vm0, %v179_v53 }
 0x149   :  { %v180_v39 = vadd.f32 %v7240_v23, %v168_v54 }
 0x14b   :  { %7665 = vmatmul.mubr.msk.f32.gmra.mrb[2].mxu1 %vm51_vm0, %v180_v39 }
 0x14c   :  { %7669 = vmatprep.mubr.msk.f32.mxu1 %vm8421_vm1, %v8420_v49 }
 0x212   :  { %v8590_v48 = vpop.f32.mrb[0].mxu0 }
 0x213   :  { %354 = vrot.lane.b32.xlu1 %v8590_v48, %s8419_s27  ;;  %v8594_v55 = vpop.f32.mrb[1].mxu0  ;;  %v313_v63 = vmul.f32 0.35355338, %v8590_v48 }
 0x214   :  { %352 = vrot.lane.b32.xlu0 %v8594_v55, %s8419_s27  ;;  %v312_v62 = vmul.f32 0.35355338, %v8594_v55 }
 0x216   :  { %v8600_v56 = vpop.f32.mrb[2].mxu0 }
 0x217   :  { %v8602_v57 = vpop.f32.mrb[3].mxu0  ;;  %v315_v1 = vmul.f32 0.35355338, %v8600_v56 }
 0x218   :  { %356 = vrot.lane.b32.xlu1 %v8602_v57, %s8419_s27  ;;  %v314_v0 = vmul.f32 0.35355338, %v8602_v57 }
 0x21a   :  { %v8610_v58 = vpop.f32.mrb[0].mxu1 }
 0x21b   :  { %v8612_v59 = vpop.f32.mrb[1].mxu1  ;;  %v317_v12 = vmul.f32 0.35355338, %v8610_v58 }
 0x21c   :  { %358 = vrot.lane.b32.xlu1 %v8600_v56, %s8419_s27  ;;  %360 = vrot.lane.b32.xlu0 %v8612_v59, %s8419_s27  ;;  %v316_v9 = vmul.f32 0.35355338, %v8612_v59 }
 0x21e   :  { %v8618_v60 = vpop.f32.mrb[2].mxu1 }
 0x21f   :  { %v8620_v61 = vpop.f32.mrb[3].mxu1  ;;  %v319_v17 = vmul.f32 0.35355338, %v8618_v60 }
 0x220   :  { %362 = vrot.lane.b32.xlu1 %v8610_v58, %s8419_s27  ;;  %364 = vrot.lane.b32.xlu0 %v8620_v61, %s8419_s27  ;;  %v318_v16 = vmul.f32 0.35355338, %v8620_v61 }
 0x224   :  { %366 = vrot.lane.b32.xlu1 %v8618_v60, %s8419_s27  ;;  %368 = vrot.lane.b32.xlu0 %v8594_v55, %s8422_s28 }
 0x228   :  { %445 = vrot.lane.b32.xlu1 %v8590_v48, %s8422_s28  ;;  %673 = vrot.lane.b32.xlu0 %v8612_v59, %s8422_s28 }
 0x22c   :  { %597 = vrot.lane.b32.xlu1 %v8600_v56, %s8422_s28  ;;  %328 = vrot.lane.b32.xlu0 %v312_v62, %s8419_s27 }
 0x230   :  { %749 = vrot.lane.b32.xlu1 %v8610_v58, %s8422_s28  ;;  %521 = vrot.lane.b32.xlu0 %v8602_v57, %s8422_s28 }
 0x234   :  { %901 = vrot.lane.b32.xlu1 %v8618_v60, %s8422_s28  ;;  %825 = vrot.lane.b32.xlu0 %v8620_v61, %s8422_s28 }
 0x238   :  { %330 = vrot.lane.b32.xlu1 %v313_v63, %s8419_s27  ;;  %332 = vrot.lane.b32.xlu0 %v314_v0, %s8419_s27 }
 0x23c   :  { %334 = vrot.lane.b32.xlu1 %v315_v1, %s8419_s27 }
 0x285   :  { %v8652_v2 = vpop.permute.xlu1 %354 }
 0x286   :  { %1053 = vrot.lane.b32.xlu1 %v8652_v2, %s8422_s28  ;;  %v8656_v3 = vpop.permute.xlu0 %352 }
 0x287   :  { %977 = vrot.lane.b32.xlu0 %v8656_v3, %s8422_s28 }
 0x28a   :  { %v8660_v4 = vpop.permute.xlu1 %356 }
 0x28e   :  { %v8662_v5 = vpop.permute.xlu1 %358  ;;  %v8664_v6 = vpop.permute.xlu0 %360 }
 0x28f   :  { %1281 = vrot.lane.b32.xlu0 %v8664_v6, %s8422_s28 }
 0x292   :  { %v8668_v7 = vpop.permute.xlu1 %362  ;;  %v8670_v8 = vpop.permute.xlu0 %364 }
 0x293   :  { %1357 = vrot.lane.b32.xlu1 %v8668_v7, %s8422_s28  ;;  %1129 = vrot.lane.b32.xlu0 %v8660_v4, %s8422_s28 }
 0x296   :  { %v8677_v10 = vpop.permute.xlu1 %366  ;;  %v369_v11 = vpop.permute.xlu0 %368 }
 0x297   :  { %1205 = vrot.lane.b32.xlu1 %v8662_v5, %s8422_s28  ;;  %336 = vrot.lane.b32.xlu0 %v316_v9, %s8419_s27 }
 0x298   :  { %7668 = vmatpush3.xpose.msk.msra.mxu1 %vm370_vm2, %v369_v11 }
 0x299   :  { %7672 = vmatprep.subr.mxu1 %v8420_v49 }
 0x29a   :  { %v446_v13 = vpop.permute.xlu1 %445  ;;  %v674_v14 = vpop.permute.xlu0 %673 }
 0x29b   :  { %7670 = vmatmul.mubr.msk.f32.vlgmr.msra.gmra.mrb[4].mxu1 %vm370_vm2, %v312_v62  ;;  %338 = vrot.lane.b32.xlu1 %v317_v12, %s8419_s27 }
 0x29c   :  { %1433 = vrot.lane.b32.xlu0 %v8670_v8, %s8422_s28  ;;  %7673 = vmatpush3.xpose.msk.msra.mxu1 %vm370_vm2, %v446_v13 }
 0x29d   :  { %7688 = vmatpush3.xpose.msk.msra.mxu0 %vm370_vm2, %v674_v14  ;;  %7674 = vmatprep.mubr.msk.f32.mxu1 %vm8421_vm1, %v8420_v49 }
 0x29e   :  { %v329_v15 = vpop.permute.xlu0 %328  ;;  %7677 = vmatprep.subr.mxu1 %v8420_v49  ;;  %7697 = vmatprep.subr.mxu0 %v8420_v49  ;;  %v598_v19 = vpop.permute.xlu1 %597 }
 0x29f   :  { %7675 = vmatmul.mubr.msk.f32.vlgmr.msra.gmra.mrb[6].mxu1 %vm370_vm2, %v313_v63  ;;  %1509 = vrot.lane.b32.xlu1 %v8677_v10, %s8422_s28 }
 0x2a0   :  { %7690 = vmatmul.mubr.msk.f32.vlgmr.msra.gmra.mrb[4].mxu0 %vm370_vm2, %v316_v9  ;;  %340 = vrot.lane.b32.xlu0 %v318_v16, %s8419_s27 }
 0x2a1   :  { %7679 = vmatprep.mubr.msk.f32.mxu1 %vm8421_vm1, %v8420_v49  ;;  %7699 = vmatprep.mubr.msk.f32.mxu0 %vm8421_vm1, %v8420_v49 }
 0x2a2   :  { %v522_v18 = vpop.permute.xlu0 %521  ;;  %v750_v23 = vpop.permute.xlu1 %749 }
 0x2a3   :  { %342 = vrot.lane.b32.xlu1 %v319_v17, %s8419_s27  ;;  %7678 = vmatpush3.xpose.msk.msra.mxu1 %vm370_vm2, %v522_v18 }
 0x2a4   :  { %1761 = vrot.lane.b32.xlu0 %v8594_v55, %s8423_s29  ;;  %7682 = vmatprep.subr.mxu1 %v8420_v49 }
 0x2a6   :  { %7680 = vmatmul.mubr.msk.f32.vlgmr.msra.gmra.mrb[8].mxu1 %vm370_vm2, %v314_v0  ;;  %v826_v22 = vpop.permute.xlu0 %825  ;;  %v902_v24 = vpop.permute.xlu1 %901 }
 0x2a7   :  { %1837 = vrot.lane.b32.xlu1 %v8590_v48, %s8423_s29  ;;  %7683 = vmatpush3.xpose.msk.msra.mxu1 %vm370_vm2, %v598_v19 }
 0x2a8   :  { %1913 = vrot.lane.b32.xlu0 %v8602_v57, %s8423_s29  ;;  %7698 = vmatpush3.xpose.msk.msra.mxu0 %vm370_vm2, %v826_v22 }
 0x2a9   :  { %7684 = vmatprep.mubr.msk.f32.mxu1 %vm8421_vm1, %v8420_v49  ;;  %7692 = vmatprep.subr.mxu1 %v8420_v49 }
 0x2aa   :  { %7685 = vmatmul.mubr.msk.f32.vlgmr.msra.gmra.mrb[10].mxu1 %vm370_vm2, %v315_v1  ;;  %7707 = vmatprep.subr.mxu0 %v8420_v49  ;;  %v331_v25 = vpop.permute.xlu1 %330  ;;  %v333_v27 = vpop.permute.xlu0 %332 }
 0x2ab   :  { %7700 = vmatmul.mubr.msk.f32.vlgmr.msra.gmra.mrb[6].mxu0 %vm370_vm2, %v318_v16  ;;  %1989 = vrot.lane.b32.xlu1 %v8600_v56, %s8423_s29 }
 0x2ac   :  { %2217 = vrot.lane.b32.xlu0 %v8620_v61, %s8423_s29  ;;  %7693 = vmatpush3.xpose.msk.msra.mxu1 %vm370_vm2, %v750_v23 }
 0x2ad   :  { %7694 = vmatprep.mubr.msk.f32.mxu1 %vm8421_vm1, %v8420_v49  ;;  %7702 = vmatprep.subr.mxu1 %v8420_v49 }
 0x2ae   :  { %7709 = vmatprep.mubr.msk.f32.mxu0 %vm8421_vm1, %v8420_v49  ;;  %v335_v26 = vpop.permute.xlu1 %334 }
 0x2af   :  { %7695 = vmatmul.mubr.msk.f32.vlgmr.msra.gmra.mrb[12].mxu1 %vm370_vm2, %v317_v12  ;;  %2065 = vrot.lane.b32.xlu1 %v8612_v59, %s8423_s29 }
 0x2b0   :  { %2369 = vrot.lane.b32.xlu0 %v8656_v3, %s8423_s29  ;;  %7703 = vmatpush3.xpose.msk.msra.mxu1 %vm370_vm2, %v902_v24 }
 0x2b1   :  { %7704 = vmatprep.mubr.msk.f32.mxu1 %vm8421_vm1, %v8420_v49  ;;  %7712 = vmatprep.subr.mxu1 %v8420_v49 }
 0x2b3   :  { %7705 = vmatmul.mubr.msk.f32.vlgmr.msra.gmra.mrb[14].mxu1 %vm370_vm2, %v319_v17  ;;  %2141 = vrot.lane.b32.xlu1 %v8610_v58, %s8423_s29 }
 0x2b4   :  { %7714 = vmatprep.mubr.msk.f32.mxu1 %vm8421_vm1, %v8420_v49 }
 0x2b7   :  { %2293 = vrot.lane.b32.xlu1 %v8618_v60, %s8423_s29 }
 0x2bb   :  { %2445 = vrot.lane.b32.xlu1 %v8652_v2, %s8423_s29 }
 0x2f8   :  { %v1054_v30 = vpop.permute.xlu1 %1053 }
 0x2f9   :  { %7713 = vmatpush3.xpose.msk.msra.mxu1 %vm370_vm2, %v1054_v30  ;;  %v978_v31 = vpop.permute.xlu0 %977 }
 0x2fa   :  { %7708 = vmatpush3.xpose.msk.msra.mxu0 %vm370_vm2, %v978_v31  ;;  %7722 = vmatprep.subr.mxu1 %v8420_v49 }
 0x2fb   :  { %7717 = vmatprep.subr.mxu0 %v8420_v49 }
 0x2fc   :  { %7715 = vmatmul.mubr.msk.f32.vlgmr.msra.gmra.mrb[16].mxu1 %vm370_vm2, %v331_v25 }
 0x2fd   :  { %7710 = vmatmul.mubr.msk.f32.vlgmr.msra.gmra.mrb[8].mxu0 %vm370_vm2, %v329_v15  ;;  %7724 = vmatprep.mubr.msk.f32.mxu1 %vm8421_vm1, %v8420_v49 }
 0x2fe   :  { %7719 = vmatprep.mubr.msk.f32.mxu0 %vm8421_vm1, %v8420_v49 }
 0x301   :  { %v1282_v32 = vpop.permute.xlu0 %1281 }
 0x305   :  { %v1358_v20 = vpop.permute.xlu1 %1357  ;;  %v1130_v33 = vpop.permute.xlu0 %1129 }
 0x306   :  { %7718 = vmatpush3.xpose.msk.msra.mxu0 %vm370_vm2, %v1130_v33 }
 0x307   :  { %7727 = vmatprep.subr.mxu0 %v8420_v49 }
 0x309   :  { %v1206_v34 = vpop.permute.xlu1 %1205  ;;  %7720 = vmatmul.mubr.msk.f32.vlgmr.msra.gmra.mrb[10].mxu0 %vm370_vm2, %v333_v27  ;;  %v337_v35 = vpop.permute.xlu0 %336 }
 0x30a   :  { %7723 = vmatpush3.xpose.msk.msra.mxu1 %vm370_vm2, %v1206_v34  ;;  %7728 = vmatpush3.xpose.msk.msra.mxu0 %vm370_vm2, %v1282_v32 }
 0x30b   :  { %7729 = vmatprep.mubr.msk.f32.mxu0 %vm8421_vm1, %v8420_v49  ;;  %7732 = vmatprep.subr.mxu1 %v8420_v49 }
 0x30c   :  { %7737 = vmatprep.subr.mxu0 %v8420_v49 }
 0x30d   :  { %v339_v36 = vpop.permute.xlu1 %338  ;;  %7725 = vmatmul.mubr.msk.f32.vlgmr.msra.gmra.mrb[18].mxu1 %vm370_vm2, %v335_v26  ;;  %7730 = vmatmul.mubr.msk.f32.vlgmr.msra.gmra.mrb[12].mxu0 %vm370_vm2, %v337_v35 }
 0x30e   :  { %v1434_v37 = vpop.permute.xlu0 %1433  ;;  %7733 = vmatpush3.xpose.msk.msra.mxu1 %vm370_vm2, %v1358_v20  ;;  %7734 = vmatprep.mubr.msk.f32.mxu1 %vm8421_vm1, %v8420_v49 }
 0x30f   :  { %7738 = vmatpush3.xpose.msk.msra.mxu0 %vm370_vm2, %v1434_v37  ;;  %7739 = vmatprep.mubr.msk.f32.mxu0 %vm8421_vm1, %v8420_v49 }
 0x310   :  { %7742 = vmatprep.subr.mxu1 %v8420_v49  ;;  %7747 = vmatprep.subr.mxu0 %v8420_v49 }
 0x311   :  { %v1510_v40 = vpop.permute.xlu1 %1509  ;;  %7735 = vmatmul.mubr.msk.f32.vlgmr.msra.gmra.mrb[20].mxu1 %vm370_vm2, %v339_v36 }
 0x312   :  { %v341_v41 = vpop.permute.xlu0 %340  ;;  %7743 = vmatpush3.xpose.msk.msra.mxu1 %vm370_vm2, %v1510_v40  ;;  %7744 = vmatprep.mubr.msk.f32.mxu1 %vm8421_vm1, %v8420_v49 }
 0x313   :  { %7740 = vmatmul.mubr.msk.f32.vlgmr.msra.gmra.mrb[14].mxu0 %vm370_vm2, %v341_v41  ;;  %7752 = vmatprep.subr.mxu1 %v8420_v49 }
 0x314   :  { %7749 = vmatprep.mubr.msk.f32.mxu0 %vm8421_vm1, %v8420_v49 }
 0x315   :  { %v343_v42 = vpop.permute.xlu1 %342 }
 0x316   :  { %v1762_v43 = vpop.permute.xlu0 %1761  ;;  %7745 = vmatmul.mubr.msk.f32.vlgmr.msra.gmra.mrb[22].mxu1 %vm370_vm2, %v343_v42 }
 0x317   :  { %7748 = vmatpush3.msra.mxu0 %v1762_v43  ;;  %7754 = vmatprep.mubr.msk.f32.mxu1 %vm8421_vm1, %v8420_v49 }
 0x318   :  { %7757 = vmatprep.subr.mxu0 %v8420_v49 }
 0x319   :  { %v1838_v28 = vpop.permute.xlu1 %1837 }
 0x31a   :  { %7753 = vmatpush3.msra.mxu1 %v1838_v28  ;;  %v8862_v36 = vpop.permute.xlu0 %1913 }
 0x31b   :  { %7762 = vmatprep.subr.mxu1 %v8420_v49 }
 0x31d   :  { %v8858_v34 = vpop.permute.xlu1 %1989 }
 0x31e   :  { %v8866_v40 = vpop.permute.xlu0 %2217 }
 0x321   :  { %v8860_v35 = vpop.permute.xlu1 %2065 }
 0x322   :  { %v8872_v42 = vpop.permute.xlu0 %2369 }
 0x325   :  { %v8864_v37 = vpop.permute.xlu1 %2141 }
 0x329   :  { %v8870_v41 = vpop.permute.xlu1 %2293 }
 0x32d   :  { %v8876_v28 = vpop.permute.xlu1 %2445 }
 0x36e   :  { %v8794_v21 = vpop.f32.mrb[4].mxu1 }
 0x36f   :  { %v7671_v44 = vpop.f32.mrb[5].mxu1  ;;  %v1585_v45 = vsel %vm370_vm2, %v8794_v21, -inf }
 0x370   :  { %1586 = vmax.xlane.f32.xlu0 %v1585_v45 }
 0x372   :  { %v8798_v46 = vpop.f32.mrb[6].mxu1 }
 0x373   :  { %v8800_v47 = vpop.f32.mrb[4].mxu0  ;;  %v7676_v29 = vpop.f32.mrb[7].mxu1  ;;  %v1588_v50 = vsel %vm370_vm2, %v8798_v46, -inf }
 0x374   :  { %v7691_v38 = vpop.f32.mrb[5].mxu0  ;;  %1589 = vmax.xlane.f32.xlu1 %v1588_v50  ;;  %v1597_v51 = vsel %vm370_vm2, %v8800_v47, -inf }
 0x375   :  { %1598 = vmax.xlane.f32.xlu0 %v1597_v51 }
 0x379   :  { %v8806_v52 = vpop.f32.mrb[8].mxu1 }
 0x37a   :  { %v7681_v53 = vpop.f32.mrb[9].mxu1  ;;  %v1591_v60 = vsel %vm370_vm2, %v8806_v52, -inf }
 0x37d   :  { %v8808_v54 = vpop.f32.mrb[10].mxu1 }
 0x37e   :  { %v8810_v39 = vpop.f32.mrb[6].mxu0  ;;  %v7686_v48 = vpop.f32.mrb[11].mxu1  ;;  %v1594_v0 = vsel %vm370_vm2, %v8808_v54, -inf }
 0x37f   :  { %v7701_v55 = vpop.f32.mrb[7].mxu0  ;;  %v1603_v56 = vsel %vm370_vm2, %v8810_v39, -inf }
 0x380   :  { %1604 = vmax.xlane.f32.xlu0 %v1603_v56 }
 0x382   :  { %v8814_v57 = vpop.f32.mrb[12].mxu1 }
 0x383   :  { %v7696_v58 = vpop.f32.mrb[13].mxu1  ;;  %v1600_v59 = vsel %vm370_vm2, %v8814_v57, -inf }
 0x384   :  { %1601 = vmax.xlane.f32.xlu1 %v1600_v59  ;;  %1592 = vmax.xlane.f32.xlu0 %v1591_v60 }
 0x386   :  { %v8820_v61 = vpop.f32.mrb[14].mxu1 }
 0x387   :  { %v7706_v62 = vpop.f32.mrb[15].mxu1  ;;  %v1606_v63 = vsel %vm370_vm2, %v8820_v61, -inf }
 0x388   :  { %1607 = vmax.xlane.f32.xlu1 %v1606_v63  ;;  %1595 = vmax.xlane.f32.xlu0 %v1594_v0 }
 0x3cf   :  { %v8826_v1 = vpop.f32.mrb[16].mxu1 }
 0x3d0   :  { %v8828_v2 = vpop.f32.mrb[8].mxu0  ;;  %v7716_v3 = vpop.f32.mrb[17].mxu1  ;;  %v1612_v9 = vsel %vm370_vm2, %v8826_v1, -inf }
 0x3d1   :  { %1613 = vmax.xlane.f32.xlu1 %v1612_v9  ;;  %v7711_v11 = vpop.f32.mrb[9].mxu0  ;;  %v1609_v12 = vsel %vm370_vm2, %v8828_v2, -inf }
 0x3d2   :  { %1610 = vmax.xlane.f32.xlu0 %v1609_v12 }
 0x3dc   :  { %v8834_v13 = vpop.f32.mrb[10].mxu0 }
 0x3dd   :  { %v7721_v14 = vpop.f32.mrb[11].mxu0  ;;  %v1615_v15 = vsel %vm370_vm2, %v8834_v13, -inf }
 0x3de   :  { %1616 = vmax.xlane.f32.xlu0 %v1615_v15 }
 0x3e0   :  { %v8838_v16 = vpop.f32.mrb[18].mxu1  ;;  %v8840_v17 = vpop.f32.mrb[12].mxu0 }
 0x3e1   :  { %v7726_v18 = vpop.f32.mrb[19].mxu1  ;;  %v7731_v19 = vpop.f32.mrb[13].mxu0  ;;  %v1618_v22 = vsel %vm370_vm2, %v8838_v16, -inf  ;;  %v1621_v23 = vsel %vm370_vm2, %v8840_v17, -inf }
 0x3e2   :  { %1619 = vmax.xlane.f32.xlu1 %v1618_v22  ;;  %1622 = vmax.xlane.f32.xlu0 %v1621_v23 }
 0x3e4   :  { %v8846_v24 = vpop.f32.mrb[20].mxu1 }
 0x3e5   :  { %v7736_v25 = vpop.f32.mrb[21].mxu1  ;;  %v1624_v26 = vsel %vm370_vm2, %v8846_v24, -inf }
 0x3e6   :  { %v8850_v27 = vpop.f32.mrb[14].mxu0  ;;  %1625 = vmax.xlane.f32.xlu1 %v1624_v26 }
 0x3e7   :  { %v7741_v30 = vpop.f32.mrb[15].mxu0  ;;  %v1627_v31 = vsel %vm370_vm2, %v8850_v27, -inf }
 0x3e8   :  { %1628 = vmax.xlane.f32.xlu0 %v1627_v31 }
 0x3e9   :  { %v8854_v32 = vpop.f32.mrb[22].mxu1 }
 0x3ea   :  { %v7746_v20 = vpop.f32.mrb[23].mxu1  ;;  %v1630_v33 = vsel %vm370_vm2, %v8854_v32, -inf }
 0x3eb   :  { %1631 = vmax.xlane.f32.xlu1 %v1630_v33 }
 0x3fc   :  { %2597 = vrot.lane.b32.xlu1 %v8662_v5, %s8423_s29 }
 0x3fd   :  { %v1587_v43 = vpop.xlane.xlu0 %1586 }
 0x3fe   :  { %2521 = vrot.lane.b32.xlu0 %v8660_v4, %s8423_s29  ;;  %v1633_v44 = vsub.f32 %v8794_v21, %v1587_v43 }
 0x400   :  { %v1649_v38 = vmul.f32 1.442695, %v1633_v44 }
 0x401   :  { %v1590_v45 = vpop.xlane.xlu1 %1589 }
 0x402   :  { %v1599_v29 = vpop.xlane.xlu0 %1598  ;;  %v1634_v50 = vsub.f32 %v8798_v46, %v1590_v45  ;;  %8171 = vpow2.f32 %v1649_v38 }
 0x403   :  { %v1637_v51 = vsub.f32 %v8800_v47, %v1599_v29 }
 0x404   :  { %v1651_v53 = vmul.f32 1.442695, %v1634_v50 }
 0x405   :  { %v1657_v48 = vmul.f32 1.442695, %v1637_v51 }
 0x406   :  { %8173 = vpow2.f32 %v1651_v53 }
 0x407   :  { %8175 = vpow2.f32 %v1657_v48 }
 0x40c   :  { %v8883_v59 = vpop.eup %8171 }
 0x40d   :  { %v1605_v5 = vpop.xlane.xlu0 %1604  ;;  %v1681_v47 = vsel %vm370_vm2, %v8883_v59, 0.0 }
 0x40e   :  { %v1639_v55 = vsub.f32 %v8810_v39, %v1605_v5 }
 0x410   :  { %v1661_v4 = vmul.f32 1.442695, %v1639_v55  ;;  %v8885_v46 = vpop.eup %8173 }
 0x411   :  { %v1593_v56 = vpop.xlane.xlu0 %1592  ;;  %v8889_v60 = vpop.eup %8175  ;;  %v1684_v39 = vsel %vm370_vm2, %v8885_v46, 0.0 }
 0x412   :  { %v1635_v58 = vsub.f32 %v8806_v52, %v1593_v56  ;;  %8177 = vpow2.f32 %v1661_v4  ;;  %v1693_v52 = vsel %vm370_vm2, %v8889_v60, 0.0  ;;  %v1602_v11 = vpop.xlane.xlu1 %1601 }
 0x413   :  { %v1638_v14 = vsub.f32 %v8814_v57, %v1602_v11 }
 0x414   :  { %v1653_v21 = vmul.f32 1.442695, %v1635_v58 }
 0x415   :  { %v1596_v9 = vpop.xlane.xlu0 %1595  ;;  %v1659_v19 = vmul.f32 1.442695, %v1638_v14 }
 0x416   :  { %8179 = vpow2.f32 %v1653_v21  ;;  %v1636_v12 = vsub.f32 %v8808_v54, %v1596_v9  ;;  %v1608_v18 = vpop.xlane.xlu1 %1607 }
 0x417   :  { %v1640_v22 = vsub.f32 %v8820_v61, %v1608_v18 }
 0x418   :  { %v1655_v15 = vmul.f32 1.442695, %v1636_v12 }
 0x419   :  { %v1663_v23 = vmul.f32 1.442695, %v1640_v22 }
 0x41a   :  { %8181 = vpow2.f32 %v1655_v15 }
 0x41b   :  { %8183 = vpow2.f32 %v1659_v19 }
 0x41c   :  { %v8895_v62 = vpop.eup %8177  ;;  %8185 = vpow2.f32 %v1663_v23 }
 0x41d   :  { %1682 = vadd.xlane.f32.xlu0 %v1681_v47  ;;  %v1699_v63 = vsel %vm370_vm2, %v8895_v62, 0.0 }
 0x420   :  { %1685 = vadd.xlane.f32.xlu1 %v1684_v39  ;;  %v8899_v0 = vpop.eup %8179 }
 0x421   :  { %1694 = vadd.xlane.f32.xlu0 %v1693_v52  ;;  %v1687_v3 = vsel %vm370_vm2, %v8899_v0, 0.0 }
 0x424   :  { %v8910_v25 = vpop.eup %8181 }
 0x425   :  { %1700 = vadd.xlane.f32.xlu0 %v1699_v63  ;;  %v8914_v54 = vpop.eup %8183 }
 0x426   :  { %v8918_v57 = vpop.eup %8185 }
 0x427   :  { %v1702_v61 = vsel %vm370_vm2, %v8918_v57, 0.0 }
 0x429   :  { %1688 = vadd.xlane.f32.xlu0 %v1687_v3 }
 0x431   :  { %2749 = vrot.lane.b32.xlu1 %v8668_v7, %s8423_s29  ;;  %v1690_v7 = vsel %vm370_vm2, %v8910_v25, 0.0 }
 0x43f   :  { %2673 = vrot.lane.b32.xlu0 %v8664_v6, %s8423_s29  ;;  %v1696_v6 = vsel %vm370_vm2, %v8914_v54, 0.0 }
 0x455   :  { %1691 = vadd.xlane.f32.xlu1 %v1690_v7 }
 0x459   :  { %1697 = vadd.xlane.f32.xlu1 %v1696_v6 }
 0x45d   :  { %1703 = vadd.xlane.f32.xlu1 %v1702_v61 }
 0x45e   :  { %v1614_v26 = vpop.xlane.xlu1 %1613 }
 0x45f   :  { %v1642_v30 = vsub.f32 %v8826_v1, %v1614_v26  ;;  %v1611_v31 = vpop.xlane.xlu0 %1610 }
 0x460   :  { %v1641_v20 = vsub.f32 %v8828_v2, %v1611_v31 }
 0x461   :  { %v1667_v33 = vmul.f32 1.442695, %v1642_v30 }
 0x462   :  { %v1665_v43 = vmul.f32 1.442695, %v1641_v20 }
 0x463   :  { %8187 = vpow2.f32 %v1667_v33 }
 0x464   :  { %8189 = vpow2.f32 %v1665_v43 }
 0x46b   :  { %v1617_v44 = vpop.xlane.xlu0 %1616 }
 0x46c   :  { %v1643_v45 = vsub.f32 %v8834_v13, %v1617_v44 }
 0x46d   :  { %v8925_v29 = vpop.eup %8187 }
 0x46e   :  { %v8927_v50 = vpop.eup %8189  ;;  %v1669_v38 = vmul.f32 1.442695, %v1643_v45  ;;  %v1708_v51 = vsel %vm370_vm2, %v8925_v29, 0.0 }
 0x46f   :  { %v1620_v5 = vpop.xlane.xlu1 %1619  ;;  %1709 = vadd.xlane.f32.xlu1 %v1708_v51  ;;  %v1623_v1 = vpop.xlane.xlu0 %1622  ;;  %v1705_v2 = vsel %vm370_vm2, %v8927_v50, 0.0 }
 0x470   :  { %8191 = vpow2.f32 %v1669_v38  ;;  %v1644_v53 = vsub.f32 %v8838_v16, %v1620_v5  ;;  %v1645_v48 = vsub.f32 %v8840_v17, %v1623_v1  ;;  %1706 = vadd.xlane.f32.xlu0 %v1705_v2 }
 0x472   :  { %v1671_v13 = vmul.f32 1.442695, %v1644_v53  ;;  %v1673_v55 = vmul.f32 1.442695, %v1645_v48 }
 0x473   :  { %v1626_v56 = vpop.xlane.xlu1 %1625 }
 0x474   :  { %8193 = vpow2.f32 %v1671_v13  ;;  %v1646_v4 = vsub.f32 %v8846_v24, %v1626_v56 }
 0x475   :  { %8195 = vpow2.f32 %v1673_v55  ;;  %v1629_v58 = vpop.xlane.xlu0 %1628 }
 0x476   :  { %v1675_v21 = vmul.f32 1.442695, %v1646_v4  ;;  %v1647_v47 = vsub.f32 %v8850_v27, %v1629_v58 }
 0x478   :  { %8197 = vpow2.f32 %v1675_v21  ;;  %v1677_v39 = vmul.f32 1.442695, %v1647_v47  ;;  %v1632_v52 = vpop.xlane.xlu1 %1631 }
 0x479   :  { %v1648_v63 = vsub.f32 %v8854_v32, %v1632_v52  ;;  %v8966_v22 = vpop.permute.xlu0 %2521 }
 0x47a   :  { %v8938_v16 = vpop.eup %8191  ;;  %8199 = vpow2.f32 %v1677_v39 }
 0x47b   :  { %v1679_v17 = vmul.f32 1.442695, %v1648_v63  ;;  %v1711_v3 = vsel %vm370_vm2, %v8938_v16, 0.0 }
 0x47c   :  { %1712 = vadd.xlane.f32.xlu0 %v1711_v3  ;;  %v8968_v23 = vpop.permute.xlu1 %2597 }
 0x47d   :  { %8201 = vpow2.f32 %v1679_v17 }
 0x47e   :  { %v8942_v24 = vpop.eup %8193 }
 0x47f   :  { %v8944_v9 = vpop.eup %8195  ;;  %v1714_v27 = vsel %vm370_vm2, %v8942_v24, 0.0 }
 0x480   :  { %1715 = vadd.xlane.f32.xlu1 %v1714_v27  ;;  %v1717_v32 = vsel %vm370_vm2, %v8944_v9, 0.0 }
 0x481   :  { %1718 = vadd.xlane.f32.xlu0 %v1717_v32 }
 0x482   :  { %v8950_v11 = vpop.eup %8197 }
 0x483   :  { %v1720_v12 = vsel %vm370_vm2, %v8950_v11, 0.0 }
 0x484   :  { %v8954_v14 = vpop.eup %8199  ;;  %1721 = vadd.xlane.f32.xlu1 %v1720_v12 }
 0x485   :  { %v1723_v18 = vsel %vm370_vm2, %v8954_v14, 0.0 }
 0x487   :  { %v8956_v15 = vpop.eup %8201 }
 0x488   :  { %1724 = vadd.xlane.f32.xlu1 %v1723_v18  ;;  %v1726_v19 = vsel %vm370_vm2, %v8956_v15, 0.0 }
 0x489   :  { %1727 = vadd.xlane.f32.xlu0 %v1726_v19 }
 0x499   :  { %2901 = vrot.lane.b32.xlu1 %v8677_v10, %s8423_s29 }
 0x49f   :  { %2825 = vrot.lane.b32.xlu0 %v8670_v8, %s8423_s29 }
 0x4aa   :  { %v1683_v7 = vpop.xlane.xlu0 %1682 }
 0x4ab   :  { %8203 = vrcp.f32 %v1683_v7 }
 0x4ad   :  { %v1686_v6 = vpop.xlane.xlu1 %1685 }
 0x4ae   :  { %8205 = vrcp.f32 %v1686_v6  ;;  %v1695_v61 = vpop.xlane.xlu0 %1694 }
 0x4b2   :  { %v1701_v26 = vpop.xlane.xlu0 %1700 }
 0x4b5   :  { %v8204_v30 = vpop.eup %8203 }
 0x4b6   :  { %v1689_v31 = vpop.xlane.xlu0 %1688  ;;  %v1745_v20 = vmul.f32 %v8204_v30, %v8883_v59 }
 0x4b7   :  { %8207 = vrcp.f32 %v1689_v31  ;;  %v3017_v31 = vld [vmem:[%s10019_s4] sm:$0xff] }
 0x4b8   :  { %v8206_v33 = vpop.eup %8205  ;;  %7750 = vmatmul.mubr.msk.f32.vlgmr.msra.gmra.mrb[16].mxu0 %vm370_vm2, %v1745_v20  ;;  %8209 = vrcp.f32 %v1695_v61  ;;  %v3018_v20 = vld [vmem:[%s10019_s4 + $0x8] sm:$0xff] }
 0x4b9   :  { %7758 = vmatpush3.msra.mxu0 %v8862_v36  ;;  %v1746_v8 = vmul.f32 %v8206_v33, %v8885_v46  ;;  %7759 = vmatprep.mubr.msk.f32.mxu0 %vm8421_vm1, %v8420_v49  ;;  %8211 = vrcp.f32 %v1701_v26  ;;  %v8111_v33 = vpack.c.bf16 %v3018_v20, %v3017_v31 }
 0x4ba   :  { %7767 = vmatprep.subr.mxu0 %v8420_v49 }
 0x4bb   :  { %7755 = vmatmul.mubr.msk.f32.vlgmr.msra.gmra.mrb[24].mxu1 %vm370_vm2, %v1746_v8 }
 0x4bc   :  { %7763 = vmatpush3.msra.mxu1 %v8858_v34  ;;  %7764 = vmatprep.mubr.msk.f32.mxu1 %vm8421_vm1, %v8420_v49 }
 0x4bd   :  { %7772 = vmatprep.subr.mxu1 %v8420_v49 }
 0x4c1   :  { %v8208_v10 = vpop.eup %8207 }
 0x4c2   :  { %v1747_v36 = vmul.f32 %v8208_v10, %v8899_v0  ;;  %v8210_v59 = vpop.eup %8209 }
 0x4c3   :  { %v1749_v34 = vmul.f32 %v8210_v59, %v8889_v60  ;;  %v8212_v46 = vpop.eup %8211 }
 0x4c4   :  { %7760 = vmatmul.mubr.msk.f32.vlgmr.msra.gmra.mrb[18].mxu0 %vm370_vm2, %v1747_v36  ;;  %v1751_v0 = vmul.f32 %v8212_v46, %v8895_v62 }
 0x4c5   :  { %7768 = vmatpush3.msra.mxu0 %v8860_v35  ;;  %7769 = vmatprep.mubr.msk.f32.mxu0 %vm8421_vm1, %v8420_v49  ;;  %v9000_v35 = vpop.permute.xlu1 %2749 }
 0x4c6   :  { %7777 = vmatprep.subr.mxu0 %v8420_v49 }
 0x4c8   :  { %7770 = vmatmul.mubr.msk.f32.vlgmr.msra.gmra.mrb[20].mxu0 %vm370_vm2, %v1749_v34 }
 0x4c9   :  { %7778 = vmatpush3.msra.mxu0 %v8866_v40  ;;  %7779 = vmatprep.mubr.msk.f32.mxu0 %vm8421_vm1, %v8420_v49 }
 0x4ca   :  { %7787 = vmatprep.subr.mxu0 %v8420_v49 }
 0x4cc   :  { %7780 = vmatmul.mubr.msk.f32.vlgmr.msra.gmra.mrb[22].mxu0 %vm370_vm2, %v1751_v0 }
 0x4cd   :  { %7788 = vmatpush3.msra.mxu0 %v8872_v42  ;;  %7789 = vmatprep.mubr.msk.f32.mxu0 %vm8421_vm1, %v8420_v49 }
 0x4ce   :  { %7797 = vmatprep.subr.mxu0 %v8420_v49 }
 0x4e2   :  { %v1692_v60 = vpop.xlane.xlu1 %1691 }
 0x4e3   :  { %8213 = vrcp.f32 %v1692_v60 }
 0x4e6   :  { %v1698_v40 = vpop.xlane.xlu1 %1697 }
 0x4e7   :  { %8215 = vrcp.f32 %v1698_v40 }
 0x4ea   :  { %v1704_v43 = vpop.xlane.xlu1 %1703 }
 0x4eb   :  { %8217 = vrcp.f32 %v1704_v43 }
 0x4ed   :  { %v8214_v44 = vpop.eup %8213 }
 0x4ee   :  { %v1748_v62 = vmul.f32 %v8214_v44, %v8910_v25 }
 0x4f0   :  { %7765 = vmatmul.mubr.msk.f32.vlgmr.msra.gmra.mrb[26].mxu1 %vm370_vm2, %v1748_v62 }
 0x4f1   :  { %v8216_v45 = vpop.eup %8215  ;;  %7773 = vmatpush3.msra.mxu1 %v8864_v37  ;;  %7774 = vmatprep.mubr.msk.f32.mxu1 %vm8421_vm1, %v8420_v49  ;;  %v2674_v37 = vpop.permute.xlu0 %2673 }
 0x4f2   :  { %7782 = vmatprep.subr.mxu1 %v8420_v49  ;;  %v1750_v42 = vmul.f32 %v8216_v45, %v8914_v54 }
 0x4f4   :  { %7775 = vmatmul.mubr.msk.f32.vlgmr.msra.gmra.mrb[28].mxu1 %vm370_vm2, %v1750_v42 }
 0x4f5   :  { %v8218_v38 = vpop.eup %8217  ;;  %7783 = vmatpush3.msra.mxu1 %v8870_v41  ;;  %7784 = vmatprep.mubr.msk.f32.mxu1 %vm8421_vm1, %v8420_v49 }
 0x4f6   :  { %7792 = vmatprep.subr.mxu1 %v8420_v49  ;;  %v1752_v25 = vmul.f32 %v8218_v38, %v8918_v57 }
 0x4f8   :  { %7785 = vmatmul.mubr.msk.f32.vlgmr.msra.gmra.mrb[30].mxu1 %vm370_vm2, %v1752_v25 }
 0x4f9   :  { %7793 = vmatpush3.msra.mxu1 %v8876_v28  ;;  %7794 = vmatprep.mubr.msk.f32.mxu1 %vm8421_vm1, %v8420_v49 }
 0x4fa   :  { %7802 = vmatprep.subr.mxu1 %v8420_v49 }
 0x4fc   :  { %v1710_v54 = vpop.xlane.xlu1 %1709 }
 0x4fd   :  { %8219 = vrcp.f32 %v1710_v54  ;;  %v1707_v41 = vpop.xlane.xlu0 %1706 }
 0x4fe   :  { %8221 = vrcp.f32 %v1707_v41 }
 0x507   :  { %v8220_v51 = vpop.eup %8219 }
 0x508   :  { %v8222_v5 = vpop.eup %8221  ;;  %v1754_v1 = vmul.f32 %v8220_v51, %v8925_v29 }
 0x509   :  { %v1713_v2 = vpop.xlane.xlu0 %1712  ;;  %v1753_v57 = vmul.f32 %v8222_v5, %v8927_v50 }
 0x50a   :  { %8223 = vrcp.f32 %v1713_v2  ;;  %7795 = vmatmul.mubr.msk.f32.vlgmr.msra.gmra.mrb[32].mxu1 %vm370_vm2, %v1754_v1 }
 0x50b   :  { %7803 = vmatpush3.msra.mxu1 %v8968_v23  ;;  %7790 = vmatmul.mubr.msk.f32.vlgmr.msra.gmra.mrb[24].mxu0 %vm370_vm2, %v1753_v57 }
 0x50c   :  { %7798 = vmatpush3.msra.mxu0 %v8966_v22  ;;  %7799 = vmatprep.mubr.msk.f32.mxu0 %vm8421_vm1, %v8420_v49 }
 0x50d   :  { %v1716_v28 = vpop.xlane.xlu1 %1715  ;;  %7807 = vmatprep.subr.mxu0 %v8420_v49  ;;  %7804 = vmatprep.mubr.msk.f32.mxu1 %vm8421_vm1, %v8420_v49 }
 0x50e   :  { %8225 = vrcp.f32 %v1716_v28  ;;  %v1719_v29 = vpop.xlane.xlu0 %1718  ;;  %7812 = vmatprep.subr.mxu1 %v8420_v49 }
 0x50f   :  { %8227 = vrcp.f32 %v1719_v29 }
 0x511   :  { %v1722_v50 = vpop.xlane.xlu1 %1721 }
 0x512   :  { %8229 = vrcp.f32 %v1722_v50 }
 0x514   :  { %v8224_v53 = vpop.eup %8223 }
 0x515   :  { %v1725_v48 = vpop.xlane.xlu1 %1724  ;;  %v1755_v13 = vmul.f32 %v8224_v53, %v8938_v16 }
 0x516   :  { %8231 = vrcp.f32 %v1725_v48  ;;  %v1728_v55 = vpop.xlane.xlu0 %1727 }
 0x517   :  { %8233 = vrcp.f32 %v1728_v55  ;;  %7800 = vmatmul.mubr.msk.f32.vlgmr.msra.gmra.mrb[26].mxu0 %vm370_vm2, %v1755_v13 }
 0x518   :  { %v8226_v56 = vpop.eup %8225  ;;  %7808 = vmatpush3.msra.mxu0 %v2674_v37  ;;  %7809 = vmatprep.mubr.msk.f32.mxu0 %vm8421_vm1, %v8420_v49 }
 0x519   :  { %v8228_v4 = vpop.eup %8227  ;;  %7817 = vmatprep.subr.mxu0 %v8420_v49  ;;  %v1756_v58 = vmul.f32 %v8226_v56, %v8942_v24  ;;  %v2902_v63 = vpop.permute.xlu1 %2901 }
 0x51a   :  { %v2826_v21 = vpop.permute.xlu0 %2825  ;;  %v1757_v47 = vmul.f32 %v8228_v4, %v8944_v9  ;;  %v7305_v4 = vld [vmem:[%s10020_s5] ss:$0 sm:$0xff] }
 0x51b   :  { %7805 = vmatmul.mubr.msk.f32.vlgmr.msra.gmra.mrb[34].mxu1 %vm370_vm2, %v1756_v58  ;;  %v8411_v58 = vld [vmem:[%s10015_s0 + $0x8] sm:$0xff] }
 0x51c   :  { %v8230_v39 = vpop.eup %8229  ;;  %7810 = vmatmul.mubr.msk.f32.vlgmr.msra.gmra.mrb[28].mxu0 %vm370_vm2, %v1757_v47  ;;  %7813 = vmatpush3.msra.mxu1 %v9000_v35 }
 0x51d   :  { %7818 = vmatpush3.msra.mxu0 %v2826_v21  ;;  %7814 = vmatprep.mubr.msk.f32.mxu1 %vm8421_vm1, %v8420_v49  ;;  %v1758_v52 = vmul.f32 %v8230_v39, %v8950_v11  ;;  %v8412_v39 = vld [vmem:[%s10015_s0] sm:$0xff] }
 0x51e   :  { %7822 = vmatprep.subr.mxu1 %v8420_v49  ;;  %7819 = vmatprep.mubr.msk.f32.mxu0 %vm8421_vm1, %v8420_v49 }
 0x51f   :  { %7815 = vmatmul.mubr.msk.f32.vlgmr.msra.gmra.mrb[36].mxu1 %vm370_vm2, %v1758_v52  ;;  %8112 = vmatprep.subr.bf16.mxu0 %v8111_v33 }
 0x520   :  { %v8232_v16 = vpop.eup %8231  ;;  %7823 = vmatpush3.msra.mxu1 %v2902_v63  ;;  %7824 = vmatprep.mubr.msk.f32.mxu1 %vm8421_vm1, %v8420_v49 }
 0x521   :  { %v8234_v17 = vpop.eup %8233  ;;  %v1759_v3 = vmul.f32 %v8232_v16, %v8954_v14 }
 0x522   :  { %v1760_v24 = vmul.f32 %v8234_v17, %v8956_v15 }
 0x523   :  { %7820 = vmatmul.mubr.msk.f32.vlgmr.msra.gmra.mrb[30].mxu0 %vm370_vm2, %v1759_v3 }
 0x524   :  { %7825 = vmatmul.mubr.msk.f32.vlgmr.msra.gmra.mrb[38].mxu1 %vm370_vm2, %v1760_v24  ;;  %8114 = vmatpush3.bf16.msra.mxu0 %v8111_v33 }
 0x58b   :  { %v1833_v9 = vpop.f32.mrb[16].mxu0 }
 0x58c   :  { %v7751_v27 = vpop.f32.mrb[17].mxu0 }
 0x58e   :  { %v1909_v32 = vpop.f32.mrb[24].mxu1 }
 0x58f   :  { %v7756_v11 = vpop.f32.mrb[25].mxu1 }
 0x590   :  { %v8414_v11 = vld [vmem:[%s10015_s0 + $0x10] sm:$0xff] }
 0x597   :  { %v1985_v12 = vpop.f32.mrb[18].mxu0 }
 0x598   :  { %v7761_v18 = vpop.f32.mrb[19].mxu0 }
 0x59b   :  { %v2137_v19 = vpop.f32.mrb[20].mxu0 }
 0x59c   :  { %v7771_v22 = vpop.f32.mrb[21].mxu0 }
 0x59f   :  { %v2289_v23 = vpop.f32.mrb[22].mxu0 }
 0x5a0   :  { %v7781_v7 = vpop.f32.mrb[23].mxu0 }
 0x5c3   :  { %v2061_v6 = vpop.f32.mrb[26].mxu1 }
 0x5c4   :  { %v7766_v61 = vpop.f32.mrb[27].mxu1 }
 0x5c7   :  { %v2213_v26 = vpop.f32.mrb[28].mxu1 }
 0x5c8   :  { %v7776_v14 = vpop.f32.mrb[29].mxu1 }
 0x5cb   :  { %v2365_v30 = vpop.f32.mrb[30].mxu1 }
 0x5cc   :  { %v7786_v15 = vpop.f32.mrb[31].mxu1 }
 0x5dd   :  { %v2517_v8 = vpop.f32.mrb[32].mxu1 }
 0x5de   :  { %v7796_v10 = vpop.f32.mrb[33].mxu1  ;;  %2987 = vrot.lane.b32.xlu1 %v2517_v8, %s8424_s16  ;;  %v2441_v36 = vpop.f32.mrb[24].mxu0  ;;  %v8417_v8 = vld [vmem:[%s10015_s0 + $0x38] sm:$0xff] }
 0x5df   :  { %2985 = vrot.lane.b32.xlu0 %v2441_v36, %s8424_s16  ;;  %v7791_v59 = vpop.f32.mrb[25].mxu0 }
 0x5e0   :  { %v8418_v59 = vld [vmem:[%s10015_s0 + $0x30] sm:$0xff] }
 0x5ea   :  { %v2593_v34 = vpop.f32.mrb[26].mxu0 }
 0x5eb   :  { %2989 = vrot.lane.b32.xlu0 %v2593_v34, %s8424_s16  ;;  %v7801_v46 = vpop.f32.mrb[27].mxu0 }
 0x5ee   :  { %v2669_v0 = vpop.f32.mrb[34].mxu1 }
 0x5ef   :  { %v2745_v35 = vpop.f32.mrb[28].mxu0  ;;  %v7806_v60 = vpop.f32.mrb[35].mxu1  ;;  %2991 = vrot.lane.b32.xlu1 %v2669_v0, %s8424_s16 }
 0x5f0   :  { %2993 = vrot.lane.b32.xlu0 %v2745_v35, %s8424_s16  ;;  %v7811_v40 = vpop.f32.mrb[29].mxu0 }
 0x5f2   :  { %v2821_v43 = vpop.f32.mrb[36].mxu1 }
 0x5f3   :  { %v7816_v44 = vpop.f32.mrb[37].mxu1  ;;  %2995 = vrot.lane.b32.xlu1 %v2821_v43, %s8424_s16 }
 0x5f6   :  { %v2897_v62 = vpop.f32.mrb[30].mxu0 }
 0x5f7   :  { %v2973_v45 = vpop.f32.mrb[38].mxu1  ;;  %2997 = vrot.lane.b32.xlu0 %v2897_v62, %s8424_s16  ;;  %v7821_v42 = vpop.f32.mrb[31].mxu0 }
 0x5f8   :  { %2999 = vrot.lane.b32.xlu1 %v2973_v45, %s8424_s16  ;;  %v7826_v38 = vpop.f32.mrb[39].mxu1 }
 0x650   :  { %v2988_v25 = vpop.permute.xlu1 %2987 }
 0x651   :  { %v2986_v37 = vpop.permute.xlu0 %2985  ;;  %v3010_v41 = vsel %vm370_vm2, %v1909_v32, %v2988_v25 }
 0x652   :  { %v3009_v54 = vsel %vm370_vm2, %v1833_v9, %v2986_v37  ;;  %v8413_v9 = vld [vmem:[%s10015_s0 + $0x18] sm:$0xff] }
 0x653   :  { %7831 = vmatprep.mubr.msk.f32.mxu0 %vm51_vm0, %v3009_v54 }
 0x654   :  { %7832 = vmatmul.mubr.msk.f32.vlgmr.msra.gmra.mrb[32].mxu0 %vm51_vm0, %v3010_v41 }
 0x65d   :  { %v2990_v51 = vpop.permute.xlu0 %2989 }
 0x65e   :  { %v3011_v5 = vsel %vm370_vm2, %v1985_v12, %v2990_v51 }
 0x65f   :  { %7834 = vmatprep.mubr.msk.f32.mxu0 %vm51_vm0, %v3011_v5 }
 0x661   :  { %v2992_v1 = vpop.permute.xlu1 %2991 }
 0x662   :  { %v3012_v2 = vsel %vm370_vm2, %v2061_v6, %v2992_v1  ;;  %v2994_v57 = vpop.permute.xlu0 %2993 }
 0x663   :  { %v3013_v28 = vsel %vm370_vm2, %v2137_v19, %v2994_v57  ;;  %7835 = vmatmul.mubr.msk.f32.gmra.mrb[34].mxu0 %vm51_vm0, %v3012_v2 }
 0x664   :  { %7837 = vmatprep.mubr.msk.f32.mxu0 %vm51_vm0, %v3013_v28 }
 0x665   :  { %v2996_v29 = vpop.permute.xlu1 %2995 }
 0x666   :  { %v3014_v50 = vsel %vm370_vm2, %v2213_v26, %v2996_v29  ;;  %v8416_v26 = vld [vmem:[%s10015_s0 + $0x20] sm:$0xff] }
 0x667   :  { %7838 = vmatmul.mubr.msk.f32.gmra.mrb[36].mxu0 %vm51_vm0, %v3014_v50 }
 0x669   :  { %v2998_v53 = vpop.permute.xlu0 %2997 }
 0x66a   :  { %v3015_v48 = vsel %vm370_vm2, %v2289_v23, %v2998_v53  ;;  %v3000_v13 = vpop.permute.xlu1 %2999  ;;  %v8415_v23 = vld [vmem:[%s10015_s0 + $0x28] sm:$0xff] }
 0x66b   :  { %v3016_v55 = vsel %vm370_vm2, %v2365_v30, %v3000_v13  ;;  %7840 = vmatprep.mubr.msk.f32.mxu0 %vm51_vm0, %v3015_v48 }
 0x66c   :  { %7841 = vmatmul.mubr.msk.f32.gmra.mrb[38].mxu0 %vm51_vm0, %v3016_v55 }
 0x727   :  { %v7833_v56 = vpop.f32.mrb[32].mxu0 }
 0x728   :  { %v3149_v21 = vadd.f32 %v8411_v58, %v7833_v56  ;;  %v3109_v47 = vpop.f32.mrb[33].mxu0 }
 0x729   :  { %v3148_v52 = vadd.f32 %v8412_v39, %v3109_v47 }
 0x72a   :  { %v9094_v63 = vadd.f32 %v7305_v4, %v3149_v21 }
 0x72b   :  { %v9096_v16 = vadd.f32 %v7305_v4, %v3148_v52 }
 0x72c   :  { %v3174_v17 = vsel %vm51_vm0, %v9094_v63, 0.0 }
 0x72d   :  { %3175 = vadd.xlane.f32.xlu1 %v3174_v17  ;;  %v3171_v3 = vsel %vm51_vm0, %v9096_v16, 0.0 }
 0x72e   :  { %3172 = vadd.xlane.f32.xlu0 %v3171_v3 }
 0x736   :  { %v7836_v24 = vpop.f32.mrb[34].mxu0 }
 0x737   :  { %v3151_v27 = vadd.f32 %v8413_v9, %v7836_v24  ;;  %v3119_v32 = vpop.f32.mrb[35].mxu0 }
 0x738   :  { %v3150_v12 = vadd.f32 %v8414_v11, %v3119_v32 }
 0x739   :  { %v9108_v18 = vadd.f32 %v7305_v4, %v3151_v27 }
 0x73a   :  { %v7839_v19 = vpop.f32.mrb[36].mxu0  ;;  %v9110_v22 = vadd.f32 %v7305_v4, %v3150_v12 }
 0x73b   :  { %v3153_v7 = vadd.f32 %v8415_v23, %v7839_v19  ;;  %v3129_v6 = vpop.f32.mrb[37].mxu0  ;;  %v3180_v61 = vsel %vm51_vm0, %v9108_v18, 0.0 }
 0x73c   :  { %v3152_v14 = vadd.f32 %v8416_v26, %v3129_v6  ;;  %3181 = vadd.xlane.f32.xlu0 %v3180_v61  ;;  %v3177_v20 = vsel %vm51_vm0, %v9110_v22, 0.0  ;;  %v3299_v6 = vld [vmem:[%s10021_s8] sm:$0xff]  ;;  %v3300_v61 = vld [vmem:[%s10021_s8 + $0x8] sm:$0xff] }
 0x73d   :  { %v9120_v30 = vadd.f32 %v7305_v4, %v3153_v7  ;;  %v8115_v26 = vpack.c.bf16 %v3300_v61, %v3299_v6 }
 0x73e   :  { %v9122_v15 = vadd.f32 %v7305_v4, %v3152_v14 }
 0x73f   :  { %v7842_v31 = vpop.f32.mrb[38].mxu0  ;;  %v3186_v33 = vsel %vm51_vm0, %v9120_v30, 0.0  ;;  %8116 = vmatprep.subr.bf16.mxu1 %v8115_v26 }
 0x740   :  { %v3155_v10 = vadd.f32 %v8417_v8, %v7842_v31  ;;  %3178 = vadd.xlane.f32.xlu0 %v3177_v20  ;;  %3187 = vadd.xlane.f32.xlu1 %v3186_v33  ;;  %v3139_v36 = vpop.f32.mrb[39].mxu0  ;;  %v3183_v35 = vsel %vm51_vm0, %v9122_v15, 0.0 }
 0x741   :  { %v3154_v34 = vadd.f32 %v8418_v59, %v3139_v36  ;;  %8118 = vmatpush3.bf16.msra.mxu1 %v8115_v26 }
 0x742   :  { %v9134_v46 = vadd.f32 %v7305_v4, %v3155_v10 }
 0x743   :  { %v9136_v0 = vadd.f32 %v7305_v4, %v3154_v34  ;;  %v7306_v34 = vld [vmem:[%s10022_s6] ss:$0 sm:$0xff] }
 0x744   :  { %3184 = vadd.xlane.f32.xlu0 %v3183_v35  ;;  %v3192_v60 = vsel %vm51_vm0, %v9134_v46, 0.0 }
 0x745   :  { %3193 = vadd.xlane.f32.xlu1 %v3192_v60  ;;  %v3189_v40 = vsel %vm51_vm0, %v9136_v0, 0.0 }
 0x748   :  { %3190 = vadd.xlane.f32.xlu0 %v3189_v40 }
 0x7ba   :  { %v3176_v43 = vpop.xlane.xlu1 %3175 }
 0x7bb   :  { %v3196_v44 = vmul.f32 0.0625, %v3176_v43  ;;  %v3173_v62 = vpop.xlane.xlu0 %3172 }
 0x7bc   :  { %v3195_v45 = vmul.f32 0.0625, %v3173_v62  ;;  %v7307_v62 = vld [vmem:[%s10023_s7] ss:$0 sm:$0xff] }
 0x7bd   :  { %v9145_v42 = vsub.f32 %v9094_v63, %v3196_v44 }
 0x7be   :  { %v9148_v38 = vsub.f32 %v9096_v16, %v3195_v45 }
 0x7bf   :  { %v3212_v25 = vmul.f32 %v9145_v42, %v9145_v42 }
 0x7c0   :  { %v3211_v37 = vmul.f32 %v9148_v38, %v9148_v38 }
 0x7c1   :  { %v3222_v54 = vsel %vm51_vm0, %v3212_v25, 0.0 }
 0x7c2   :  { %3223 = vadd.xlane.f32.xlu1 %v3222_v54  ;;  %v3219_v41 = vsel %vm51_vm0, %v3211_v37, 0.0 }
 0x7c3   :  { %3220 = vadd.xlane.f32.xlu0 %v3219_v41 }
 0x7c9   :  { %v3182_v51 = vpop.xlane.xlu0 %3181 }
 0x7ca   :  { %v3198_v5 = vmul.f32 0.0625, %v3182_v51 }
 0x7cc   :  { %v9157_v1 = vsub.f32 %v9108_v18, %v3198_v5 }
 0x7cd   :  { %v3188_v2 = vpop.xlane.xlu1 %3187  ;;  %v3179_v57 = vpop.xlane.xlu0 %3178 }
 0x7ce   :  { %v3200_v28 = vmul.f32 0.0625, %v3188_v2  ;;  %v3197_v29 = vmul.f32 0.0625, %v3179_v57  ;;  %v3214_v50 = vmul.f32 %v9157_v1, %v9157_v1 }
 0x7d0   :  { %v9162_v53 = vsub.f32 %v9120_v30, %v3200_v28  ;;  %v9165_v48 = vsub.f32 %v9110_v22, %v3197_v29  ;;  %v3228_v13 = vsel %vm51_vm0, %v3214_v50, 0.0 }
 0x7d1   :  { %3229 = vadd.xlane.f32.xlu1 %v3228_v13  ;;  %v3185_v55 = vpop.xlane.xlu0 %3184 }
 0x7d2   :  { %v3199_v56 = vmul.f32 0.0625, %v3185_v55  ;;  %v3194_v4 = vpop.xlane.xlu1 %3193  ;;  %v3216_v58 = vmul.f32 %v9162_v53, %v9162_v53  ;;  %v3213_v21 = vmul.f32 %v9165_v48, %v9165_v48 }
 0x7d3   :  { %v3202_v47 = vmul.f32 0.0625, %v3194_v4 }
 0x7d4   :  { %v9173_v39 = vsub.f32 %v9122_v15, %v3199_v56  ;;  %v3234_v52 = vsel %vm51_vm0, %v3216_v58, 0.0  ;;  %v3225_v17 = vsel %vm51_vm0, %v3213_v21, 0.0 }
 0x7d5   :  { %v9178_v3 = vsub.f32 %v9134_v46, %v3202_v47  ;;  %3235 = vadd.xlane.f32.xlu1 %v3234_v52  ;;  %3226 = vadd.xlane.f32.xlu0 %v3225_v17  ;;  %v3191_v24 = vpop.xlane.xlu0 %3190 }
 0x7d6   :  { %v3201_v9 = vmul.f32 0.0625, %v3191_v24  ;;  %v3215_v27 = vmul.f32 %v9173_v39, %v9173_v39 }
 0x7d7   :  { %v3218_v32 = vmul.f32 %v9178_v3, %v9178_v3 }
 0x7d8   :  { %v9185_v11 = vsub.f32 %v9136_v0, %v3201_v9  ;;  %v3231_v12 = vsel %vm51_vm0, %v3215_v27, 0.0 }
 0x7d9   :  { %3232 = vadd.xlane.f32.xlu0 %v3231_v12  ;;  %v3240_v19 = vsel %vm51_vm0, %v3218_v32, 0.0 }
 0x7da   :  { %3241 = vadd.xlane.f32.xlu1 %v3240_v19  ;;  %v3217_v23 = vmul.f32 %v9185_v11, %v9185_v11 }
 0x7dc   :  { %v3237_v7 = vsel %vm51_vm0, %v3217_v23, 0.0 }
 0x7dd   :  { %3238 = vadd.xlane.f32.xlu0 %v3237_v7 }
 0x84f   :  { %v3224_v14 = vpop.xlane.xlu1 %3223 }
 0x850   :  { %v3244_v31 = vmul.f32 0.0625, %v3224_v14  ;;  %v3221_v20 = vpop.xlane.xlu0 %3220 }
 0x851   :  { %v3243_v33 = vmul.f32 0.0625, %v3221_v20 }
 0x852   :  { %v3252_v8 = vadd.f32 1e-05, %v3244_v31 }
 0x853   :  { %v3251_v10 = vadd.f32 1e-05, %v3243_v33 }
 0x854   :  { %8235 = vrsqrt.f32 %v3252_v8 }
 0x855   :  { %8237 = vrsqrt.f32 %v3251_v10 }
 0x85e   :  { %v8236_v36 = vpop.eup %8235  ;;  %v3230_v59 = vpop.xlane.xlu1 %3229 }
 0x85f   :  { %v8238_v35 = vpop.eup %8237  ;;  %v3268_v60 = vmul.f32 %v8236_v36, %v9145_v42  ;;  %v3246_v40 = vmul.f32 0.0625, %v3230_v59  ;;  %v3493_v36 = vld [vmem:[%s10024_s10 + $0x10] sm:$0xff]  ;;  %v3494_v59 = vld [vmem:[%s10024_s10 + $0x18] sm:$0xff] }
 0x860   :  { %v3267_v43 = vmul.f32 %v8238_v35, %v9148_v38  ;;  %v7308_v35 = vld [vmem:[%s10025_s9] ss:$0 sm:$0xff] }
 0x861   :  { %v3254_v44 = vadd.f32 1e-05, %v3246_v40  ;;  %v3280_v45 = vmul.f32 %v7306_v34, %v3268_v60 }
 0x862   :  { %v3236_v25 = vpop.xlane.xlu1 %3235  ;;  %v3227_v37 = vpop.xlane.xlu0 %3226  ;;  %v3279_v54 = vmul.f32 %v7306_v34, %v3267_v43 }
 0x863   :  { %8239 = vrsqrt.f32 %v3254_v44  ;;  %v3248_v41 = vmul.f32 0.0625, %v3236_v25  ;;  %v3245_v51 = vmul.f32 0.0625, %v3227_v37  ;;  %v3292_v28 = vadd.f32 %v7307_v62, %v3280_v45 }
 0x864   :  { %v3291_v5 = vadd.f32 %v7307_v62, %v3279_v54 }
 0x865   :  { %v3256_v2 = vadd.f32 1e-05, %v3248_v41  ;;  %v3253_v57 = vadd.f32 1e-05, %v3245_v51 }
 0x866   :  { %7847 = vmatprep.mubr.msk.f32.mxu1 %vm51_vm0, %v3291_v5  ;;  %v3233_v42 = vpop.xlane.xlu0 %3232 }
 0x867   :  { %8241 = vrsqrt.f32 %v3256_v2  ;;  %v3247_v38 = vmul.f32 0.0625, %v3233_v42  ;;  %v3242_v29 = vpop.xlane.xlu1 %3241  ;;  %7848 = vmatmul.mubr.msk.f32.vlgmr.msra.gmra.mrb[40].mxu1 %vm51_vm0, %v3292_v28 }
 0x868   :  { %8243 = vrsqrt.f32 %v3253_v57  ;;  %v3250_v50 = vmul.f32 0.0625, %v3242_v29 }
 0x869   :  { %v3255_v13 = vadd.f32 1e-05, %v3247_v38 }
 0x86a   :  { %v3258_v55 = vadd.f32 1e-05, %v3250_v50  ;;  %v3239_v56 = vpop.xlane.xlu0 %3238 }
 0x86b   :  { %8245 = vrsqrt.f32 %v3255_v13  ;;  %v3249_v4 = vmul.f32 0.0625, %v3239_v56 }
 0x86c   :  { %8247 = vrsqrt.f32 %v3258_v55 }
 0x86d   :  { %v8240_v58 = vpop.eup %8239  ;;  %v3257_v21 = vadd.f32 1e-05, %v3249_v4 }
 0x86e   :  { %v3270_v47 = vmul.f32 %v8240_v58, %v9157_v1 }
 0x86f   :  { %8249 = vrsqrt.f32 %v3257_v21 }
 0x870   :  { %v3282_v9 = vmul.f32 %v7306_v34, %v3270_v47 }
 0x871   :  { %v8242_v52 = vpop.eup %8241 }
 0x872   :  { %v8244_v17 = vpop.eup %8243  ;;  %v3272_v27 = vmul.f32 %v8242_v52, %v9162_v53  ;;  %v3294_v6 = vadd.f32 %v7307_v62, %v3282_v9 }
 0x873   :  { %v3269_v24 = vmul.f32 %v8244_v17, %v9165_v48 }
 0x874   :  { %v3284_v26 = vmul.f32 %v7306_v34, %v3272_v27 }
 0x875   :  { %v8246_v32 = vpop.eup %8245  ;;  %v3281_v12 = vmul.f32 %v7306_v34, %v3269_v24 }
 0x876   :  { %v8248_v19 = vpop.eup %8247  ;;  %v3271_v23 = vmul.f32 %v8246_v32, %v9173_v39  ;;  %v3296_v53 = vadd.f32 %v7307_v62, %v3284_v26 }
 0x877   :  { %v3293_v7 = vadd.f32 %v7307_v62, %v3281_v12  ;;  %v3274_v14 = vmul.f32 %v8248_v19, %v9178_v3  ;;  %v3491_v3 = vld [vmem:[%s10024_s10] sm:$0xff] }
 0x878   :  { %v3283_v61 = vmul.f32 %v7306_v34, %v3271_v23 }
 0x879   :  { %v8250_v31 = vpop.eup %8249  ;;  %7850 = vmatprep.mubr.msk.f32.mxu1 %vm51_vm0, %v3293_v7  ;;  %v3286_v33 = vmul.f32 %v7306_v34, %v3274_v14 }
 0x87a   :  { %7851 = vmatmul.mubr.msk.f32.gmra.mrb[42].mxu1 %vm51_vm0, %v3294_v6  ;;  %v3295_v1 = vadd.f32 %v7307_v62, %v3283_v61  ;;  %v3273_v48 = vmul.f32 %v8250_v31, %v9185_v11  ;;  %v3492_v11 = vld [vmem:[%s10024_s10 + $0x8] sm:$0xff] }
 0x87b   :  { %v3298_v8 = vadd.f32 %v7307_v62, %v3286_v33  ;;  %v8119_v10 = vpack.c.bf16 %v3492_v11, %v3491_v3 }
 0x87c   :  { %7853 = vmatprep.mubr.msk.f32.mxu1 %vm51_vm0, %v3295_v1  ;;  %v3285_v20 = vmul.f32 %v7306_v34, %v3273_v48  ;;  %v8123_v34 = vpack.c.bf16 %v3494_v59, %v3493_v36 }
 0x87d   :  { %8120 = vmatprep.subr.bf16.mxu0 %v8119_v10 }
 0x87e   :  { %7854 = vmatmul.mubr.msk.f32.gmra.mrb[44].mxu1 %vm51_vm0, %v3296_v53  ;;  %v3297_v39 = vadd.f32 %v7307_v62, %v3285_v20  ;;  %8122 = vmatpush3.bf16.msra.mxu0 %v8119_v10 }
 0x87f   :  { %8124 = vmatprep.subr.bf16.mxu0 %v8123_v34 }
 0x880   :  { %7856 = vmatprep.mubr.msk.f32.mxu1 %vm51_vm0, %v3297_v39 }
 0x882   :  { %7857 = vmatmul.mubr.msk.f32.gmra.mrb[46].mxu1 %vm51_vm0, %v3298_v8  ;;  %8126 = vmatpush3.bf16.msra.mxu0 %v8123_v34 }
 0x883   :  { %7895 = vmatprep.subr.mxu0 %v8420_v49 }
 0x93a   :  { %v7849_v60 = vpop.f32.mrb[40].mxu1 }
 0x93b   :  { %v3402_v40 = vadd.f32 %v7849_v60, %v7308_v35  ;;  %v3396_v43 = vpop.f32.mrb[41].mxu1 }
 0x93c   :  { %v3397_v44 = vadd.f32 %v7308_v35, %v3396_v43 }
 0x93d   :  { %v7318_v62 = vmul.f32 -1.442695, %v3402_v40 }
 0x93e   :  { %v7317_v45 = vmul.f32 -1.442695, %v3397_v44 }
 0x93f   :  { %8251 = vpow2.f32 %v7318_v62 }
 0x940   :  { %8253 = vpow2.f32 %v7317_v45 }
 0x949   :  { %v8252_v25 = vpop.eup %8251 }
 0x94a   :  { %v8254_v37 = vpop.eup %8253  ;;  %v3460_v54 = vadd.f32 1.0, %v8252_v25 }
 0x94b   :  { %v3459_v41 = vadd.f32 1.0, %v8254_v37 }
 0x94c   :  { %8255 = vrcp.f32 %v3460_v54 }
 0x94d   :  { %8257 = vrcp.f32 %v3459_v41  ;;  %v7852_v51 = vpop.f32.mrb[42].mxu1 }
 0x94e   :  { %v3412_v5 = vadd.f32 %v7852_v51, %v7308_v35  ;;  %v3406_v2 = vpop.f32.mrb[43].mxu1 }
 0x94f   :  { %v3407_v57 = vadd.f32 %v7308_v35, %v3406_v2 }
 0x950   :  { %v7320_v28 = vmul.f32 -1.442695, %v3412_v5 }
 0x951   :  { %v7319_v42 = vmul.f32 -1.442695, %v3407_v57  ;;  %v7855_v38 = vpop.f32.mrb[44].mxu1 }
 0x952   :  { %8259 = vpow2.f32 %v7320_v28  ;;  %v3422_v29 = vadd.f32 %v7855_v38, %v7308_v35  ;;  %v3416_v50 = vpop.f32.mrb[45].mxu1 }
 0x953   :  { %8261 = vpow2.f32 %v7319_v42  ;;  %v3417_v13 = vadd.f32 %v7308_v35, %v3416_v50 }
 0x954   :  { %v7322_v55 = vmul.f32 -1.442695, %v3422_v29 }
 0x955   :  { %v7321_v56 = vmul.f32 -1.442695, %v3417_v13  ;;  %v7858_v4 = vpop.f32.mrb[46].mxu1 }
 0x956   :  { %v8256_v58 = vpop.eup %8255  ;;  %8263 = vpow2.f32 %v7322_v55  ;;  %v3432_v21 = vadd.f32 %v7858_v4, %v7308_v35  ;;  %v3426_v47 = vpop.f32.mrb[47].mxu1 }
 0x957   :  { %v8258_v52 = vpop.eup %8257  ;;  %8265 = vpow2.f32 %v7321_v56  ;;  %v3427_v17 = vadd.f32 %v7308_v35, %v3426_v47  ;;  %v3484_v27 = vmul.f32 %v8256_v58, %v3402_v40  ;;  %v7325_v40 = vld [vmem:[%s10026_s11] ss:$0 sm:$0xff] }
 0x958   :  { %v3483_v24 = vmul.f32 %v8258_v52, %v3397_v44  ;;  %v7324_v9 = vmul.f32 -1.442695, %v3432_v21 }
 0x959   :  { %v7323_v32 = vmul.f32 -1.442695, %v3427_v17 }
 0x95a   :  { %8267 = vpow2.f32 %v7324_v9  ;;  %7867 = vmatprep.mubr.msk.f32.mxu0 %vm3500_vm3, %v3483_v24 }
 0x95b   :  { %8269 = vpow2.f32 %v7323_v32  ;;  %7868 = vmatmul.mubr.msk.f32.vlgmr.msra.gmra.mrb[40].mxu0 %vm3500_vm3, %v3484_v27 }
 0x95c   :  { %v8260_v12 = vpop.eup %8259 }
 0x95d   :  { %v8262_v19 = vpop.eup %8261  ;;  %v3462_v23 = vadd.f32 1.0, %v8260_v12 }
 0x95e   :  { %v3461_v7 = vadd.f32 1.0, %v8262_v19 }
 0x95f   :  { %8271 = vrcp.f32 %v3462_v23 }
 0x960   :  { %v8264_v6 = vpop.eup %8263  ;;  %8273 = vrcp.f32 %v3461_v7 }
 0x961   :  { %v8266_v61 = vpop.eup %8265  ;;  %v3464_v26 = vadd.f32 1.0, %v8264_v6 }
 0x962   :  { %v3463_v14 = vadd.f32 1.0, %v8266_v61 }
 0x963   :  { %8275 = vrcp.f32 %v3464_v26 }
 0x964   :  { %v8268_v31 = vpop.eup %8267  ;;  %8277 = vrcp.f32 %v3463_v14 }
 0x965   :  { %v8270_v1 = vpop.eup %8269  ;;  %v3466_v48 = vadd.f32 1.0, %v8268_v31 }
 0x966   :  { %v3465_v53 = vadd.f32 1.0, %v8270_v1 }
 0x967   :  { %8279 = vrcp.f32 %v3466_v48 }
 0x968   :  { %8281 = vrcp.f32 %v3465_v53 }
 0x969   :  { %v8272_v20 = vpop.eup %8271 }
 0x96a   :  { %v8274_v33 = vpop.eup %8273  ;;  %v3486_v8 = vmul.f32 %v8272_v20, %v3412_v5 }
 0x96b   :  { %v3485_v39 = vmul.f32 %v8274_v33, %v3407_v57 }
 0x96d   :  { %v8276_v3 = vpop.eup %8275  ;;  %7870 = vmatprep.mubr.msk.f32.mxu0 %vm3500_vm3, %v3485_v39 }
 0x96e   :  { %v8278_v11 = vpop.eup %8277  ;;  %7871 = vmatmul.mubr.msk.f32.gmra.mrb[42].mxu0 %vm3500_vm3, %v3486_v8  ;;  %v3488_v36 = vmul.f32 %v8276_v3, %v3422_v29 }
 0x96f   :  { %v3487_v10 = vmul.f32 %v8278_v11, %v3417_v13 }
 0x971   :  { %v8280_v59 = vpop.eup %8279  ;;  %7873 = vmatprep.mubr.msk.f32.mxu0 %vm3500_vm3, %v3487_v10 }
 0x972   :  { %v8282_v34 = vpop.eup %8281  ;;  %7874 = vmatmul.mubr.msk.f32.gmra.mrb[44].mxu0 %vm3500_vm3, %v3488_v36  ;;  %v3490_v60 = vmul.f32 %v8280_v59, %v3432_v21 }
 0x973   :  { %v3489_v35 = vmul.f32 %v8282_v34, %v3427_v17 }
 0x975   :  { %7876 = vmatprep.mubr.msk.f32.mxu0 %vm3500_vm3, %v3489_v35 }
 0x976   :  { %7877 = vmatmul.mubr.msk.f32.gmra.mrb[46].mxu0 %vm3500_vm3, %v3490_v60 }
 0x977   :  { %7897 = vmatprep.mubr.msk.f32.mxu0 %vm8421_vm1, %v8420_v49 }
 0xa2e   :  { %v7869_v43 = vpop.f32.mrb[40].mxu0 }
 0xa2f   :  { %v3597_v44 = vadd.f32 %v7869_v43, %v7325_v40  ;;  %v3591_v62 = vpop.f32.mrb[41].mxu0 }
 0xa30   :  { %v3592_v45 = vadd.f32 %v7325_v40, %v3591_v62 }
 0xa31   :  { %v9250_v25 = vadd.f32 %v3597_v44, %v9094_v63 }
 0xa32   :  { %v9253_v37 = vadd.f32 %v3592_v45, %v9096_v16 }
 0xa33   :  { %v3643_v54 = vsel %vm51_vm0, %v9250_v25, 0.0 }
 0xa34   :  { %3644 = vadd.xlane.f32.xlu1 %v3643_v54  ;;  %v3640_v41 = vsel %vm51_vm0, %v9253_v37, 0.0 }
 0xa35   :  { %3641 = vadd.xlane.f32.xlu0 %v3640_v41 }
 0xa41   :  { %v7872_v51 = vpop.f32.mrb[42].mxu0 }
 0xa42   :  { %v3607_v5 = vadd.f32 %v7872_v51, %v7325_v40  ;;  %v3601_v2 = vpop.f32.mrb[43].mxu0 }
 0xa43   :  { %v3602_v57 = vadd.f32 %v7325_v40, %v3601_v2 }
 0xa44   :  { %v9260_v28 = vadd.f32 %v3607_v5, %v9108_v18 }
 0xa45   :  { %v9263_v63 = vadd.f32 %v3602_v57, %v9110_v22  ;;  %v7875_v16 = vpop.f32.mrb[44].mxu0  ;;  %v7336_v57 = vld [vmem:[%s10016_s3 + $0x10] sm:$0xff] }
 0xa46   :  { %v3617_v42 = vadd.f32 %v7875_v16, %v7325_v40  ;;  %v3611_v38 = vpop.f32.mrb[45].mxu0  ;;  %v3649_v29 = vsel %vm51_vm0, %v9260_v28, 0.0  ;;  %v7337_v16 = vld [vmem:[%s10016_s3 + $0x18] sm:$0xff] }
 0xa47   :  { %v3612_v50 = vadd.f32 %v7325_v40, %v3611_v38  ;;  %3650 = vadd.xlane.f32.xlu1 %v3649_v29  ;;  %v3646_v13 = vsel %vm51_vm0, %v9263_v63, 0.0 }
 0xa48   :  { %v9270_v55 = vadd.f32 %v3617_v42, %v9120_v30  ;;  %3647 = vadd.xlane.f32.xlu0 %v3646_v13  ;;  %v8127_v42 = vpack.c.bf16 %v7337_v16, %v7336_v57 }
 0xa49   :  { %v9273_v18 = vadd.f32 %v3612_v50, %v9122_v15  ;;  %v7878_v22 = vpop.f32.mrb[46].mxu0 }
 0xa4a   :  { %v3627_v56 = vadd.f32 %v7878_v22, %v7325_v40  ;;  %v3621_v4 = vpop.f32.mrb[47].mxu0  ;;  %v3655_v58 = vsel %vm51_vm0, %v9270_v55, 0.0  ;;  %8128 = vmatprep.subr.bf16.mxu1 %v8127_v42 }
 0xa4b   :  { %v3622_v21 = vadd.f32 %v7325_v40, %v3621_v4  ;;  %3656 = vadd.xlane.f32.xlu1 %v3655_v58  ;;  %v3652_v47 = vsel %vm51_vm0, %v9273_v18, 0.0  ;;  %8130 = vmatpush3.bf16.msra.mxu1 %v8127_v42  ;;  %v7334_v58 = vld [vmem:[%s10017_s1 + $0x1] ss:$0 sm:$0xff] }
 0xa4c   :  { %v9280_v52 = vadd.f32 %v3627_v56, %v9134_v46  ;;  %3653 = vadd.xlane.f32.xlu0 %v3652_v47  ;;  %7900 = vmatprep.subr.mxu1 %v8420_v49 }
 0xa4d   :  { %v9283_v30 = vadd.f32 %v3622_v21, %v9136_v0 }
 0xa4e   :  { %v3661_v15 = vsel %vm51_vm0, %v9280_v52, 0.0 }
 0xa4f   :  { %3662 = vadd.xlane.f32.xlu1 %v3661_v15  ;;  %v3658_v17 = vsel %vm51_vm0, %v9283_v30, 0.0  ;;  %v7335_v15 = vld [vmem:[%s10018_s2 + $0x1] ss:$0 sm:$0xff] }
 0xa50   :  { %3659 = vadd.xlane.f32.xlu0 %v3658_v17 }
 0xac1   :  { %v3645_v24 = vpop.xlane.xlu1 %3644 }
 0xac2   :  { %v3665_v9 = vmul.f32 0.0625, %v3645_v24  ;;  %v3642_v27 = vpop.xlane.xlu0 %3641 }
 0xac3   :  { %v3664_v32 = vmul.f32 0.0625, %v3642_v27 }
 0xac4   :  { %v3673_v12 = vsub.f32 %v9250_v25, %v3665_v9 }
 0xac5   :  { %v3672_v46 = vsub.f32 %v9253_v37, %v3664_v32 }
 0xac6   :  { %v3681_v19 = vmul.f32 %v3673_v12, %v3673_v12 }
 0xac7   :  { %v3680_v23 = vmul.f32 %v3672_v46, %v3672_v46 }
 0xac8   :  { %v3691_v0 = vsel %vm51_vm0, %v3681_v19, 0.0 }
 0xac9   :  { %3692 = vadd.xlane.f32.xlu1 %v3691_v0  ;;  %v3688_v7 = vsel %vm51_vm0, %v3680_v23, 0.0 }
 0xaca   :  { %3689 = vadd.xlane.f32.xlu0 %v3688_v7 }
 0xad4   :  { %v3651_v6 = vpop.xlane.xlu1 %3650 }
 0xad5   :  { %v3667_v61 = vmul.f32 0.0625, %v3651_v6  ;;  %v3648_v26 = vpop.xlane.xlu0 %3647 }
 0xad6   :  { %v3666_v14 = vmul.f32 0.0625, %v3648_v26 }
 0xad7   :  { %v9294_v31 = vsub.f32 %v9260_v28, %v3667_v61 }
 0xad8   :  { %v9297_v1 = vsub.f32 %v9263_v63, %v3666_v14  ;;  %v3657_v48 = vpop.xlane.xlu1 %3656 }
 0xad9   :  { %v3669_v53 = vmul.f32 0.0625, %v3657_v48  ;;  %v3654_v20 = vpop.xlane.xlu0 %3653  ;;  %v3683_v33 = vmul.f32 %v9294_v31, %v9294_v31 }
 0xada   :  { %v3668_v39 = vmul.f32 0.0625, %v3654_v20  ;;  %v3682_v8 = vmul.f32 %v9297_v1, %v9297_v1 }
 0xadb   :  { %v9304_v3 = vsub.f32 %v9270_v55, %v3669_v53  ;;  %v3697_v11 = vsel %vm51_vm0, %v3683_v33, 0.0 }
 0xadc   :  { %v9308_v10 = vsub.f32 %v9273_v18, %v3668_v39  ;;  %3698 = vadd.xlane.f32.xlu1 %v3697_v11  ;;  %v3663_v36 = vpop.xlane.xlu1 %3662  ;;  %v3694_v59 = vsel %vm51_vm0, %v3682_v8, 0.0 }
 0xadd   :  { %v3671_v34 = vmul.f32 0.0625, %v3663_v36  ;;  %3695 = vadd.xlane.f32.xlu0 %v3694_v59  ;;  %v3660_v35 = vpop.xlane.xlu0 %3659  ;;  %v3685_v60 = vmul.f32 %v9304_v3, %v9304_v3 }
 0xade   :  { %v3670_v40 = vmul.f32 0.0625, %v3660_v35  ;;  %v3684_v43 = vmul.f32 %v9308_v10, %v9308_v10 }
 0xadf   :  { %v9316_v44 = vsub.f32 %v9280_v52, %v3671_v34  ;;  %v3703_v62 = vsel %vm51_vm0, %v3685_v60, 0.0 }
 0xae0   :  { %v9320_v45 = vsub.f32 %v9283_v30, %v3670_v40  ;;  %3704 = vadd.xlane.f32.xlu1 %v3703_v62  ;;  %v3700_v54 = vsel %vm51_vm0, %v3684_v43, 0.0 }
 0xae1   :  { %3701 = vadd.xlane.f32.xlu0 %v3700_v54  ;;  %v3687_v41 = vmul.f32 %v9316_v44, %v9316_v44 }
 0xae2   :  { %v3686_v51 = vmul.f32 %v9320_v45, %v9320_v45 }
 0xae3   :  { %v3709_v5 = vsel %vm51_vm0, %v3687_v41, 0.0 }
 0xae4   :  { %3710 = vadd.xlane.f32.xlu1 %v3709_v5  ;;  %v3706_v2 = vsel %vm51_vm0, %v3686_v51, 0.0 }
 0xae5   :  { %3707 = vadd.xlane.f32.xlu0 %v3706_v2 }
 0xb56   :  { %v3693_v38 = vpop.xlane.xlu1 %3692 }
 0xb57   :  { %v3713_v29 = vmul.f32 0.0625, %v3693_v38  ;;  %v3690_v50 = vpop.xlane.xlu0 %3689 }
 0xb58   :  { %v3712_v13 = vmul.f32 0.0625, %v3690_v50 }
 0xb59   :  { %v3721_v22 = vadd.f32 1e-05, %v3713_v29 }
 0xb5a   :  { %v3720_v56 = vadd.f32 1e-05, %v3712_v13 }
 0xb5b   :  { %8283 = vrsqrt.f32 %v3721_v22 }
 0xb5c   :  { %8285 = vrsqrt.f32 %v3720_v56 }
 0xb65   :  { %v8284_v4 = vpop.eup %8283 }
 0xb66   :  { %v8286_v21 = vpop.eup %8285  ;;  %v3737_v47 = vmul.f32 %v8284_v4, %v3673_v12 }
 0xb67   :  { %v3736_v17 = vmul.f32 %v8286_v21, %v3672_v46 }
 0xb68   :  { %v3749_v24 = vmul.f32 %v7334_v58, %v3737_v47 }
 0xb69   :  { %v3699_v9 = vpop.xlane.xlu1 %3698  ;;  %v3748_v27 = vmul.f32 %v7334_v58, %v3736_v17 }
 0xb6a   :  { %v3715_v32 = vmul.f32 0.0625, %v3699_v9  ;;  %v3696_v19 = vpop.xlane.xlu0 %3695  ;;  %v3761_v23 = vadd.f32 %v7335_v15, %v3749_v24 }
 0xb6b   :  { %v3714_v0 = vmul.f32 0.0625, %v3696_v19  ;;  %v3760_v7 = vadd.f32 %v7335_v15, %v3748_v27 }
 0xb6c   :  { %v3723_v6 = vadd.f32 1e-05, %v3715_v32 }
 0xb6d   :  { %v3722_v61 = vadd.f32 1e-05, %v3714_v0  ;;  %v3705_v26 = vpop.xlane.xlu1 %3704  ;;  %7883 = vmatprep.mubr.msk.f32.mxu1 %vm51_vm0, %v3760_v7 }
 0xb6e   :  { %8287 = vrsqrt.f32 %v3723_v6  ;;  %v3717_v12 = vmul.f32 0.0625, %v3705_v26  ;;  %v3702_v14 = vpop.xlane.xlu0 %3701  ;;  %7884 = vmatmul.mubr.msk.f32.vlgmr.msra.gmra.mrb[48].mxu1 %vm51_vm0, %v3761_v23 }
 0xb6f   :  { %8289 = vrsqrt.f32 %v3722_v61  ;;  %v3716_v46 = vmul.f32 0.0625, %v3702_v14 }
 0xb70   :  { %v3725_v48 = vadd.f32 1e-05, %v3717_v12 }
 0xb71   :  { %v3724_v53 = vadd.f32 1e-05, %v3716_v46  ;;  %v3711_v20 = vpop.xlane.xlu1 %3710 }
 0xb72   :  { %8291 = vrsqrt.f32 %v3725_v48  ;;  %v3719_v33 = vmul.f32 0.0625, %v3711_v20  ;;  %v3708_v39 = vpop.xlane.xlu0 %3707 }
 0xb73   :  { %8293 = vrsqrt.f32 %v3724_v53  ;;  %v3718_v8 = vmul.f32 0.0625, %v3708_v39 }
 0xb74   :  { %v3727_v11 = vadd.f32 1e-05, %v3719_v33 }
 0xb75   :  { %v3726_v36 = vadd.f32 1e-05, %v3718_v8 }
 0xb76   :  { %8295 = vrsqrt.f32 %v3727_v11 }
 0xb77   :  { %8297 = vrsqrt.f32 %v3726_v36 }
 0xb78   :  { %v8288_v59 = vpop.eup %8287 }
 0xb79   :  { %v8290_v34 = vpop.eup %8289  ;;  %v3739_v35 = vmul.f32 %v8288_v59, %v9294_v31 }
 0xb7a   :  { %v3738_v60 = vmul.f32 %v8290_v34, %v9297_v1 }
 0xb7b   :  { %v3751_v40 = vmul.f32 %v7334_v58, %v3739_v35 }
 0xb7c   :  { %v8292_v43 = vpop.eup %8291  ;;  %v3750_v62 = vmul.f32 %v7334_v58, %v3738_v60 }
 0xb7d   :  { %v8294_v54 = vpop.eup %8293  ;;  %v3763_v41 = vadd.f32 %v7335_v15, %v3751_v40  ;;  %v3741_v51 = vmul.f32 %v8292_v43, %v9304_v3 }
 0xb7e   :  { %v3762_v5 = vadd.f32 %v7335_v15, %v3750_v62  ;;  %v3740_v2 = vmul.f32 %v8294_v54, %v9308_v10 }
 0xb7f   :  { %v3753_v57 = vmul.f32 %v7334_v58, %v3741_v51 }
 0xb80   :  { %v8296_v16 = vpop.eup %8295  ;;  %7886 = vmatprep.mubr.msk.f32.mxu1 %vm51_vm0, %v3762_v5  ;;  %v3752_v42 = vmul.f32 %v7334_v58, %v3740_v2 }
 0xb81   :  { %v8298_v38 = vpop.eup %8297  ;;  %7887 = vmatmul.mubr.msk.f32.gmra.mrb[50].mxu1 %vm51_vm0, %v3763_v41  ;;  %v3765_v31 = vadd.f32 %v7335_v15, %v3753_v57  ;;  %v3743_v1 = vmul.f32 %v8296_v16, %v9316_v44 }
 0xb82   :  { %v3764_v29 = vadd.f32 %v7335_v15, %v3752_v42  ;;  %v3742_v50 = vmul.f32 %v8298_v38, %v9320_v45 }
 0xb83   :  { %v3755_v13 = vmul.f32 %v7334_v58, %v3743_v1 }
 0xb84   :  { %7889 = vmatprep.mubr.msk.f32.mxu1 %vm51_vm0, %v3764_v29  ;;  %v3754_v3 = vmul.f32 %v7334_v58, %v3742_v50 }
 0xb85   :  { %7890 = vmatmul.mubr.msk.f32.gmra.mrb[52].mxu1 %vm51_vm0, %v3765_v31  ;;  %v3767_v10 = vadd.f32 %v7335_v15, %v3755_v13 }
 0xb86   :  { %v3766_v22 = vadd.f32 %v7335_v15, %v3754_v3 }
 0xb88   :  { %7892 = vmatprep.mubr.msk.f32.mxu1 %vm51_vm0, %v3766_v22 }
 0xb89   :  { %7893 = vmatmul.mubr.msk.f32.gmra.mrb[54].mxu1 %vm51_vm0, %v3767_v10 }
 0xb8a   :  { %7902 = vmatprep.mubr.msk.f32.mxu1 %vm8421_vm1, %v8420_v49 }
 0xc41   :  { %v9358_v56 = vpop.f32.mrb[48].mxu1 }
 0xc42   :  { %3942 = vrot.lane.b32.xlu1 %v9358_v56, %s8419_s27  ;;  %v3861_v44 = vpop.f32.mrb[49].mxu1  ;;  %v3901_v9 = vmul.f32 0.35355338, %v9358_v56 }
 0xc43   :  { %3940 = vrot.lane.b32.xlu0 %v3861_v44, %s8419_s27  ;;  %v3900_v17 = vmul.f32 0.35355338, %v3861_v44 }
 0xc54   :  { %v9363_v45 = vpop.f32.mrb[50].mxu1 }
 0xc55   :  { %v9365_v4 = vpop.f32.mrb[51].mxu1  ;;  %v3903_v32 = vmul.f32 0.35355338, %v9363_v45 }
 0xc56   :  { %3944 = vrot.lane.b32.xlu1 %v9365_v4, %s8419_s27  ;;  %v3902_v24 = vmul.f32 0.35355338, %v9365_v4 }
 0xc58   :  { %v9369_v58 = vpop.f32.mrb[52].mxu1 }
 0xc59   :  { %v9371_v21 = vpop.f32.mrb[53].mxu1  ;;  %v3905_v19 = vmul.f32 0.35355338, %v9369_v58 }
 0xc5a   :  { %3946 = vrot.lane.b32.xlu1 %v9363_v45, %s8419_s27  ;;  %3948 = vrot.lane.b32.xlu0 %v9371_v21, %s8419_s27  ;;  %v3904_v27 = vmul.f32 0.35355338, %v9371_v21 }
 0xc5c   :  { %v9377_v47 = vpop.f32.mrb[54].mxu1 }
 0xc5d   :  { %v9379_v15 = vpop.f32.mrb[55].mxu1  ;;  %v3907_v53 = vmul.f32 0.35355338, %v9377_v47 }
 0xc5e   :  { %3950 = vrot.lane.b32.xlu1 %v9369_v58, %s8419_s27  ;;  %3952 = vrot.lane.b32.xlu0 %v9379_v15, %s8419_s27  ;;  %v3906_v14 = vmul.f32 0.35355338, %v9379_v15 }
 0xc62   :  { %3954 = vrot.lane.b32.xlu1 %v9377_v47, %s8419_s27  ;;  %3956 = vrot.lane.b32.xlu0 %v3861_v44, %s8422_s28 }
 0xc66   :  { %4032 = vrot.lane.b32.xlu1 %v9358_v56, %s8422_s28  ;;  %4108 = vrot.lane.b32.xlu0 %v9365_v4, %s8422_s28 }
 0xc6a   :  { %4184 = vrot.lane.b32.xlu1 %v9363_v45, %s8422_s28  ;;  %4260 = vrot.lane.b32.xlu0 %v9371_v21, %s8422_s28 }
 0xc6e   :  { %4336 = vrot.lane.b32.xlu1 %v9369_v58, %s8422_s28  ;;  %3916 = vrot.lane.b32.xlu0 %v3900_v17, %s8419_s27 }
 0xc72   :  { %4488 = vrot.lane.b32.xlu1 %v9377_v47, %s8422_s28  ;;  %3920 = vrot.lane.b32.xlu0 %v3902_v24, %s8419_s27 }
 0xc76   :  { %3918 = vrot.lane.b32.xlu1 %v3901_v9, %s8419_s27  ;;  %3924 = vrot.lane.b32.xlu0 %v3904_v27, %s8419_s27 }
 0xc7a   :  { %3922 = vrot.lane.b32.xlu1 %v3903_v32, %s8419_s27  ;;  %4412 = vrot.lane.b32.xlu0 %v9379_v15, %s8422_s28 }
 0xc7e   :  { %3926 = vrot.lane.b32.xlu1 %v3905_v19, %s8419_s27 }
 0xcb4   :  { %v9413_v23 = vpop.permute.xlu1 %3942 }
 0xcb5   :  { %4640 = vrot.lane.b32.xlu1 %v9413_v23, %s8422_s28  ;;  %v3941_v0 = vpop.permute.xlu0 %3940 }
 0xcb6   :  { %4564 = vrot.lane.b32.xlu0 %v3941_v0, %s8422_s28 }
 0xcc8   :  { %v9418_v7 = vpop.permute.xlu1 %3944 }
 0xcc9   :  { %4716 = vrot.lane.b32.xlu0 %v9418_v7, %s8422_s28 }
 0xccc   :  { %v9422_v6 = vpop.permute.xlu1 %3946  ;;  %v9424_v61 = vpop.permute.xlu0 %3948 }
 0xccd   :  { %4792 = vrot.lane.b32.xlu1 %v9422_v6, %s8422_s28  ;;  %4868 = vrot.lane.b32.xlu0 %v9424_v61, %s8422_s28 }
 0xcd0   :  { %v9430_v26 = vpop.permute.xlu1 %3950  ;;  %v9432_v12 = vpop.permute.xlu0 %3952 }
 0xcd1   :  { %4944 = vrot.lane.b32.xlu1 %v9430_v26, %s8422_s28  ;;  %5020 = vrot.lane.b32.xlu0 %v9432_v12, %s8422_s28 }
 0xcd4   :  { %v9439_v46 = vpop.permute.xlu1 %3954  ;;  %v3957_v48 = vpop.permute.xlu0 %3956 }
 0xcd5   :  { %5096 = vrot.lane.b32.xlu1 %v9439_v46, %s8422_s28  ;;  %3928 = vrot.lane.b32.xlu0 %v3906_v14, %s8419_s27 }
 0xcd6   :  { %7896 = vmatpush3.xpose.msk.msra.mxu0 %vm370_vm2, %v3957_v48 }
 0xcd7   :  { %7905 = vmatprep.subr.mxu0 %v8420_v49 }
 0xcd8   :  { %v4033_v20 = vpop.permute.xlu1 %4032  ;;  %v4109_v33 = vpop.permute.xlu0 %4108 }
 0xcd9   :  { %7898 = vmatmul.mubr.msk.f32.vlgmr.msra.gmra.mrb[48].mxu0 %vm370_vm2, %v3900_v17  ;;  %7901 = vmatpush3.xpose.msk.msra.mxu1 %vm370_vm2, %v4033_v20 }
 0xcda   :  { %3930 = vrot.lane.b32.xlu1 %v3907_v53, %s8419_s27  ;;  %5348 = vrot.lane.b32.xlu0 %v3861_v44, %s8423_s29 }
 0xcdb   :  { %7906 = vmatpush3.xpose.msk.msra.mxu0 %vm370_vm2, %v4109_v33  ;;  %7907 = vmatprep.mubr.msk.f32.mxu0 %vm8421_vm1, %v8420_v49 }
 0xcdc   :  { %7903 = vmatmul.mubr.msk.f32.vlgmr.msra.gmra.mrb[56].mxu1 %vm370_vm2, %v3901_v9  ;;  %7910 = vmatprep.subr.mxu1 %v8420_v49  ;;  %v4185_v39 = vpop.permute.xlu1 %4184  ;;  %v4261_v8 = vpop.permute.xlu0 %4260 }
 0xcdd   :  { %7915 = vmatprep.subr.mxu0 %v8420_v49  ;;  %7911 = vmatpush3.xpose.msk.msra.mxu1 %vm370_vm2, %v4185_v39 }
 0xcde   :  { %7908 = vmatmul.mubr.msk.f32.vlgmr.msra.gmra.mrb[50].mxu0 %vm370_vm2, %v3902_v24  ;;  %5424 = vrot.lane.b32.xlu1 %v9358_v56, %s8423_s29 }
 0xcdf   :  { %5500 = vrot.lane.b32.xlu0 %v9365_v4, %s8423_s29  ;;  %7916 = vmatpush3.xpose.msk.msra.mxu0 %vm370_vm2, %v4261_v8 }
 0xce0   :  { %7912 = vmatprep.mubr.msk.f32.mxu1 %vm8421_vm1, %v8420_v49  ;;  %7917 = vmatprep.mubr.msk.f32.mxu0 %vm8421_vm1, %v8420_v49  ;;  %v4337_v11 = vpop.permute.xlu1 %4336  ;;  %v3917_v36 = vpop.permute.xlu0 %3916 }
 0xce1   :  { %7913 = vmatmul.mubr.msk.f32.vlgmr.msra.gmra.mrb[58].mxu1 %vm370_vm2, %v3903_v32  ;;  %7920 = vmatprep.subr.mxu1 %v8420_v49 }
 0xce2   :  { %7918 = vmatmul.mubr.msk.f32.vlgmr.msra.gmra.mrb[52].mxu0 %vm370_vm2, %v3904_v27  ;;  %7921 = vmatpush3.xpose.msk.msra.mxu1 %vm370_vm2, %v4337_v11 }
 0xce3   :  { %5576 = vrot.lane.b32.xlu1 %v9363_v45, %s8423_s29  ;;  %5804 = vrot.lane.b32.xlu0 %v9379_v15, %s8423_s29 }
 0xce4   :  { %7922 = vmatprep.mubr.msk.f32.mxu1 %vm8421_vm1, %v8420_v49  ;;  %7930 = vmatprep.subr.mxu1 %v8420_v49  ;;  %v4489_v59 = vpop.permute.xlu1 %4488  ;;  %v3921_v34 = vpop.permute.xlu0 %3920 }
 0xce5   :  { %7923 = vmatmul.mubr.msk.f32.vlgmr.msra.gmra.mrb[60].mxu1 %vm370_vm2, %v3905_v19  ;;  %7925 = vmatprep.subr.mxu0 %v8420_v49 }
 0xce6   :  { %7931 = vmatpush3.xpose.msk.msra.mxu1 %vm370_vm2, %v4489_v59  ;;  %7932 = vmatprep.mubr.msk.f32.mxu1 %vm8421_vm1, %v8420_v49 }
 0xce7   :  { %5652 = vrot.lane.b32.xlu1 %v9371_v21, %s8423_s29  ;;  %5956 = vrot.lane.b32.xlu0 %v3941_v0, %s8423_s29 }
 0xce8   :  { %v3925_v35 = vpop.permute.xlu0 %3924  ;;  %7927 = vmatprep.mubr.msk.f32.mxu0 %vm8421_vm1, %v8420_v49  ;;  %7940 = vmatprep.subr.mxu1 %v8420_v49  ;;  %v3919_v40 = vpop.permute.xlu1 %3918 }
 0xce9   :  { %7933 = vmatmul.mubr.msk.f32.vlgmr.msra.gmra.mrb[62].mxu1 %vm370_vm2, %v3907_v53 }
 0xcea   :  { %7942 = vmatprep.mubr.msk.f32.mxu1 %vm8421_vm1, %v8420_v49 }
 0xceb   :  { %5728 = vrot.lane.b32.xlu1 %v9369_v58, %s8423_s29 }
 0xcec   :  { %v4413_v60 = vpop.permute.xlu0 %4412  ;;  %v3923_v43 = vpop.permute.xlu1 %3922 }
 0xced   :  { %7926 = vmatpush3.xpose.msk.msra.mxu0 %vm370_vm2, %v4413_v60 }
 0xcee   :  { %7935 = vmatprep.subr.mxu0 %v8420_v49 }
 0xcef   :  { %5880 = vrot.lane.b32.xlu1 %v9377_v47, %s8423_s29 }
 0xcf0   :  { %7928 = vmatmul.mubr.msk.f32.vlgmr.msra.gmra.mrb[54].mxu0 %vm370_vm2, %v3906_v14  ;;  %v3927_v62 = vpop.permute.xlu1 %3926 }
 0xcf1   :  { %7937 = vmatprep.mubr.msk.f32.mxu0 %vm8421_vm1, %v8420_v49 }
 0xcf3   :  { %6032 = vrot.lane.b32.xlu1 %v9413_v23, %s8423_s29 }
 0xd27   :  { %v4641_v54 = vpop.permute.xlu1 %4640 }
 0xd28   :  { %7941 = vmatpush3.xpose.msk.msra.mxu1 %vm370_vm2, %v4641_v54  ;;  %v4565_v41 = vpop.permute.xlu0 %4564 }
 0xd29   :  { %7936 = vmatpush3.xpose.msk.msra.mxu0 %vm370_vm2, %v4565_v41  ;;  %7950 = vmatprep.subr.mxu1 %v8420_v49 }
 0xd2a   :  { %7945 = vmatprep.subr.mxu0 %v8420_v49 }
 0xd2b   :  { %7943 = vmatmul.mubr.msk.f32.vlgmr.msra.gmra.mrb[64].mxu1 %vm370_vm2, %v3919_v40 }
 0xd2c   :  { %7938 = vmatmul.mubr.msk.f32.vlgmr.msra.gmra.mrb[56].mxu0 %vm370_vm2, %v3917_v36  ;;  %7952 = vmatprep.mubr.msk.f32.mxu1 %vm8421_vm1, %v8420_v49 }
 0xd2d   :  { %7947 = vmatprep.mubr.msk.f32.mxu0 %vm8421_vm1, %v8420_v49 }
 0xd3b   :  { %v4717_v51 = vpop.permute.xlu0 %4716 }
 0xd3c   :  { %7946 = vmatpush3.xpose.msk.msra.mxu0 %vm370_vm2, %v4717_v51 }
 0xd3d   :  { %7955 = vmatprep.subr.mxu0 %v8420_v49 }
 0xd3f   :  { %v4793_v5 = vpop.permute.xlu1 %4792  ;;  %7948 = vmatmul.mubr.msk.f32.vlgmr.msra.gmra.mrb[58].mxu0 %vm370_vm2, %v3921_v34  ;;  %v4869_v2 = vpop.permute.xlu0 %4868 }
 0xd40   :  { %7951 = vmatpush3.xpose.msk.msra.mxu1 %vm370_vm2, %v4793_v5  ;;  %7956 = vmatpush3.xpose.msk.msra.mxu0 %vm370_vm2, %v4869_v2 }
 0xd41   :  { %7957 = vmatprep.mubr.msk.f32.mxu0 %vm8421_vm1, %v8420_v49  ;;  %7960 = vmatprep.subr.mxu1 %v8420_v49 }
 0xd42   :  { %7965 = vmatprep.subr.mxu0 %v8420_v49 }
 0xd43   :  { %v4945_v57 = vpop.permute.xlu1 %4944  ;;  %7953 = vmatmul.mubr.msk.f32.vlgmr.msra.gmra.mrb[66].mxu1 %vm370_vm2, %v3923_v43  ;;  %7958 = vmatmul.mubr.msk.f32.vlgmr.msra.gmra.mrb[60].mxu0 %vm370_vm2, %v3925_v35  ;;  %v5021_v16 = vpop.permute.xlu0 %5020 }
 0xd44   :  { %7961 = vmatpush3.xpose.msk.msra.mxu1 %vm370_vm2, %v4945_v57  ;;  %7966 = vmatpush3.xpose.msk.msra.mxu0 %vm370_vm2, %v5021_v16 }
 0xd45   :  { %7962 = vmatprep.mubr.msk.f32.mxu1 %vm8421_vm1, %v8420_v49  ;;  %7967 = vmatprep.mubr.msk.f32.mxu0 %vm8421_vm1, %v8420_v49 }
 0xd46   :  { %7970 = vmatprep.subr.mxu1 %v8420_v49  ;;  %7975 = vmatprep.subr.mxu0 %v8420_v49 }
 0xd47   :  { %v5097_v42 = vpop.permute.xlu1 %5096  ;;  %7963 = vmatmul.mubr.msk.f32.vlgmr.msra.gmra.mrb[68].mxu1 %vm370_vm2, %v3927_v62  ;;  %v3929_v38 = vpop.permute.xlu0 %3928 }
 0xd48   :  { %7968 = vmatmul.mubr.msk.f32.vlgmr.msra.gmra.mrb[62].mxu0 %vm370_vm2, %v3929_v38  ;;  %7971 = vmatpush3.xpose.msk.msra.mxu1 %vm370_vm2, %v5097_v42 }
 0xd49   :  { %7972 = vmatprep.mubr.msk.f32.mxu1 %vm8421_vm1, %v8420_v49  ;;  %7980 = vmatprep.subr.mxu1 %v8420_v49 }
 0xd4a   :  { %7977 = vmatprep.mubr.msk.f32.mxu0 %vm8421_vm1, %v8420_v49 }
 0xd4c   :  { %v3931_v31 = vpop.permute.xlu1 %3930  ;;  %v5349_v1 = vpop.permute.xlu0 %5348 }
 0xd4d   :  { %7973 = vmatmul.mubr.msk.f32.vlgmr.msra.gmra.mrb[70].mxu1 %vm370_vm2, %v3931_v31  ;;  %7976 = vmatpush3.msra.mxu0 %v5349_v1 }
 0xd4e   :  { %7985 = vmatprep.subr.mxu0 %v8420_v49  ;;  %7982 = vmatprep.mubr.msk.f32.mxu1 %vm8421_vm1, %v8420_v49 }
 0xd50   :  { %v5425_v29 = vpop.permute.xlu1 %5424 }
 0xd51   :  { %7981 = vmatpush3.msra.mxu1 %v5425_v29 }
 0xd52   :  { %7990 = vmatprep.subr.mxu1 %v8420_v49 }
 0xd55   :  { %v9610_v29 = vpop.permute.xlu1 %5576 }
 0xdac   :  { %v9546_v50 = vpop.f32.mrb[48].mxu0 }
 0xdad   :  { %v7899_v13 = vpop.f32.mrb[49].mxu0  ;;  %v5172_v3 = vsel %vm370_vm2, %v9546_v50, -inf }
 0xdae   :  { %5173 = vmax.xlane.f32.xlu0 %v5172_v3  ;;  %v9612_v13 = vpop.permute.xlu1 %5652  ;;  %v9614_v3 = vpop.permute.xlu0 %5500 }
 0xdaf   :  { %v9550_v10 = vpop.f32.mrb[56].mxu1 }
 0xdb0   :  { %v7904_v22 = vpop.f32.mrb[57].mxu1  ;;  %v5175_v56 = vsel %vm370_vm2, %v9550_v10, -inf }
 0xdb1   :  { %v9554_v44 = vpop.f32.mrb[50].mxu0  ;;  %5176 = vmax.xlane.f32.xlu1 %v5175_v56 }
 0xdb2   :  { %v7909_v45 = vpop.f32.mrb[51].mxu0  ;;  %v5178_v27 = vsel %vm370_vm2, %v9554_v44, -inf  ;;  %v9616_v22 = vpop.permute.xlu1 %5728 }
 0xdb3   :  { %v9618_v56 = vpop.permute.xlu0 %5804 }
 0xdb4   :  { %v9556_v4 = vpop.f32.mrb[58].mxu1 }
 0xdb5   :  { %v9558_v58 = vpop.f32.mrb[52].mxu0  ;;  %v7914_v21 = vpop.f32.mrb[59].mxu1  ;;  %v5181_v47 = vsel %vm370_vm2, %v9556_v4, -inf }
 0xdb6   :  { %v7919_v15 = vpop.f32.mrb[53].mxu0  ;;  %5182 = vmax.xlane.f32.xlu0 %v5181_v47  ;;  %v5184_v0 = vsel %vm370_vm2, %v9558_v58, -inf  ;;  %v9624_v45 = vpop.permute.xlu1 %5880 }
 0xdb7   :  { %v9630_v21 = vpop.permute.xlu0 %5956 }
 0xdb8   :  { %v9562_v17 = vpop.f32.mrb[60].mxu1 }
 0xdb9   :  { %v7924_v24 = vpop.f32.mrb[61].mxu1  ;;  %v5187_v9 = vsel %vm370_vm2, %v9562_v17, -inf }
 0xdba   :  { %5188 = vmax.xlane.f32.xlu1 %v5187_v9  ;;  %5179 = vmax.xlane.f32.xlu0 %v5178_v27  ;;  %v9632_v47 = vpop.permute.xlu1 %6032 }
 0xdbc   :  { %v9568_v32 = vpop.f32.mrb[62].mxu1 }
 0xdbd   :  { %v7934_v19 = vpop.f32.mrb[63].mxu1  ;;  %v5193_v23 = vsel %vm370_vm2, %v9568_v32, -inf }
 0xdbe   :  { %5194 = vmax.xlane.f32.xlu1 %v5193_v23  ;;  %5185 = vmax.xlane.f32.xlu0 %v5184_v0 }
 0xdc3   :  { %v9574_v14 = vpop.f32.mrb[54].mxu0 }
 0xdc4   :  { %v7929_v48 = vpop.f32.mrb[55].mxu0  ;;  %v5190_v53 = vsel %vm370_vm2, %v9574_v14, -inf }
 0xdc5   :  { %5191 = vmax.xlane.f32.xlu0 %v5190_v53 }
 0xdfe   :  { %v9578_v20 = vpop.f32.mrb[64].mxu1 }
 0xdff   :  { %v9580_v33 = vpop.f32.mrb[56].mxu0  ;;  %v7944_v39 = vpop.f32.mrb[65].mxu1  ;;  %v5199_v8 = vsel %vm370_vm2, %v9578_v20, -inf }
 0xe00   :  { %5200 = vmax.xlane.f32.xlu1 %v5199_v8  ;;  %v7939_v11 = vpop.f32.mrb[57].mxu0  ;;  %v5196_v36 = vsel %vm370_vm2, %v9580_v33, -inf }
 0xe01   :  { %5197 = vmax.xlane.f32.xlu0 %v5196_v36 }
 0xe12   :  { %v9586_v59 = vpop.f32.mrb[58].mxu0 }
 0xe13   :  { %v7949_v34 = vpop.f32.mrb[59].mxu0  ;;  %v5202_v35 = vsel %vm370_vm2, %v9586_v59, -inf }
 0xe14   :  { %5203 = vmax.xlane.f32.xlu0 %v5202_v35 }
 0xe16   :  { %v9590_v60 = vpop.f32.mrb[66].mxu1  ;;  %v9592_v40 = vpop.f32.mrb[60].mxu0 }
 0xe17   :  { %v7954_v43 = vpop.f32.mrb[67].mxu1  ;;  %v7959_v62 = vpop.f32.mrb[61].mxu0  ;;  %v5205_v54 = vsel %vm370_vm2, %v9590_v60, -inf  ;;  %v5208_v41 = vsel %vm370_vm2, %v9592_v40, -inf }
 0xe18   :  { %5206 = vmax.xlane.f32.xlu1 %v5205_v54  ;;  %5209 = vmax.xlane.f32.xlu0 %v5208_v41 }
 0xe1a   :  { %v9598_v51 = vpop.f32.mrb[68].mxu1 }
 0xe1b   :  { %v7964_v5 = vpop.f32.mrb[69].mxu1  ;;  %v9600_v2 = vpop.f32.mrb[62].mxu0  ;;  %v5211_v57 = vsel %vm370_vm2, %v9598_v51, -inf }
 0xe1c   :  { %5212 = vmax.xlane.f32.xlu1 %v5211_v57  ;;  %v7969_v16 = vpop.f32.mrb[63].mxu0  ;;  %v5214_v42 = vsel %vm370_vm2, %v9600_v2, -inf }
 0xe1d   :  { %5215 = vmax.xlane.f32.xlu0 %v5214_v42 }
 0xe20   :  { %v9606_v38 = vpop.f32.mrb[70].mxu1 }
 0xe21   :  { %v7974_v31 = vpop.f32.mrb[71].mxu1  ;;  %v5217_v1 = vsel %vm370_vm2, %v9606_v38, -inf }
 0xe22   :  { %5218 = vmax.xlane.f32.xlu1 %v5217_v1 }
 0xe33   :  { %6184 = vrot.lane.b32.xlu1 %v9422_v6, %s8423_s29  ;;  %6108 = vrot.lane.b32.xlu0 %v9418_v7, %s8423_s29 }
 0xe37   :  { %6336 = vrot.lane.b32.xlu1 %v9430_v26, %s8423_s29  ;;  %6260 = vrot.lane.b32.xlu0 %v9424_v61, %s8423_s29 }
 0xe3b   :  { %v5174_v15 = vpop.xlane.xlu0 %5173 }
 0xe3c   :  { %v5220_v24 = vsub.f32 %v9546_v50, %v5174_v15 }
 0xe3e   :  { %v5177_v9 = vpop.xlane.xlu1 %5176  ;;  %v5236_v27 = vmul.f32 1.442695, %v5220_v24 }
 0xe3f   :  { %v5221_v7 = vsub.f32 %v9550_v10, %v5177_v9 }
 0xe40   :  { %8299 = vpow2.f32 %v5236_v27 }
 0xe41   :  { %v5238_v23 = vmul.f32 1.442695, %v5221_v7 }
 0xe43   :  { %v5183_v6 = vpop.xlane.xlu0 %5182  ;;  %8301 = vpow2.f32 %v5238_v23 }
 0xe44   :  { %v5223_v26 = vsub.f32 %v9556_v4, %v5183_v6 }
 0xe46   :  { %v5242_v39 = vmul.f32 1.442695, %v5223_v26 }
 0xe47   :  { %v5180_v19 = vpop.xlane.xlu0 %5179  ;;  %v5189_v0 = vpop.xlane.xlu1 %5188 }
 0xe48   :  { %v5222_v61 = vsub.f32 %v9554_v44, %v5180_v19  ;;  %v5225_v50 = vsub.f32 %v9562_v17, %v5189_v0 }
 0xe4a   :  { %v5240_v48 = vmul.f32 1.442695, %v5222_v61  ;;  %v5246_v10 = vmul.f32 1.442695, %v5225_v50  ;;  %v9641_v4 = vpop.eup %8299 }
 0xe4b   :  { %v5186_v53 = vpop.xlane.xlu0 %5185  ;;  %v5195_v11 = vpop.xlane.xlu1 %5194 }
 0xe4c   :  { %v5224_v8 = vsub.f32 %v9558_v58, %v5186_v53  ;;  %8303 = vpow2.f32 %v5240_v48  ;;  %v5227_v34 = vsub.f32 %v9568_v32, %v5195_v11  ;;  %v5268_v58 = vsel %vm370_vm2, %v9641_v4, 0.0 }
 0xe4d   :  { %8305 = vpow2.f32 %v5242_v39  ;;  %v9646_v17 = vpop.eup %8301 }
 0xe4e   :  { %v5244_v36 = vmul.f32 1.442695, %v5224_v8  ;;  %v5250_v43 = vmul.f32 1.442695, %v5227_v34 }
 0xe50   :  { %8307 = vpow2.f32 %v5244_v36 }
 0xe51   :  { %8309 = vpow2.f32 %v5246_v10 }
 0xe52   :  { %v5192_v35 = vpop.xlane.xlu0 %5191 }
 0xe53   :  { %v5226_v44 = vsub.f32 %v9574_v14, %v5192_v35  ;;  %v5271_v14 = vsel %vm370_vm2, %v9646_v17, 0.0 }
 0xe55   :  { %v5248_v62 = vmul.f32 1.442695, %v5226_v44 }
 0xe56   :  { %5269 = vadd.xlane.f32.xlu0 %v5268_v58  ;;  %v9648_v54 = vpop.eup %8303 }
 0xe57   :  { %8311 = vpow2.f32 %v5248_v62  ;;  %v5274_v32 = vsel %vm370_vm2, %v9648_v54, 0.0  ;;  %v9652_v41 = vpop.eup %8305 }
 0xe58   :  { %8313 = vpow2.f32 %v5250_v43  ;;  %v5277_v16 = vsel %vm370_vm2, %v9652_v41, 0.0 }
 0xe5a   :  { %5275 = vadd.xlane.f32.xlu0 %v5274_v32  ;;  %v9656_v5 = vpop.eup %8307 }
 0xe5b   :  { %5272 = vadd.xlane.f32.xlu1 %v5271_v14  ;;  %v5280_v57 = vsel %vm370_vm2, %v9656_v5, 0.0  ;;  %v9662_v42 = vpop.eup %8309 }
 0xe5c   :  { %v5283_v1 = vsel %vm370_vm2, %v9662_v42, 0.0 }
 0xe5e   :  { %5281 = vadd.xlane.f32.xlu0 %v5280_v57 }
 0xe5f   :  { %5278 = vadd.xlane.f32.xlu1 %v5277_v16 }
 0xe61   :  { %v9664_v31 = vpop.eup %8311 }
 0xe62   :  { %v5286_v15 = vsel %vm370_vm2, %v9664_v31, 0.0  ;;  %v9670_v24 = vpop.eup %8313 }
 0xe63   :  { %5284 = vadd.xlane.f32.xlu1 %v5283_v1  ;;  %5287 = vadd.xlane.f32.xlu0 %v5286_v15  ;;  %v5289_v9 = vsel %vm370_vm2, %v9670_v24, 0.0 }
 0xe67   :  { %5290 = vadd.xlane.f32.xlu1 %v5289_v9 }
 0xe8d   :  { %v5201_v6 = vpop.xlane.xlu1 %5200 }
 0xe8e   :  { %v5229_v27 = vsub.f32 %v9578_v20, %v5201_v6  ;;  %v5198_v7 = vpop.xlane.xlu0 %5197 }
 0xe8f   :  { %v5228_v19 = vsub.f32 %v9580_v33, %v5198_v7 }
 0xe90   :  { %v5254_v23 = vmul.f32 1.442695, %v5229_v27 }
 0xe91   :  { %v5252_v26 = vmul.f32 1.442695, %v5228_v19 }
 0xe92   :  { %8315 = vpow2.f32 %v5254_v23 }
 0xe93   :  { %8317 = vpow2.f32 %v5252_v26 }
 0xe9c   :  { %v9676_v0 = vpop.eup %8315 }
 0xe9d   :  { %v9678_v61 = vpop.eup %8317  ;;  %v5295_v48 = vsel %vm370_vm2, %v9676_v0, 0.0 }
 0xe9e   :  { %5296 = vadd.xlane.f32.xlu1 %v5295_v48  ;;  %v5292_v53 = vsel %vm370_vm2, %v9678_v61, 0.0 }
 0xe9f   :  { %5293 = vadd.xlane.f32.xlu0 %v5292_v53 }
 0xea1   :  { %v5204_v20 = vpop.xlane.xlu0 %5203 }
 0xea2   :  { %v5230_v39 = vsub.f32 %v9586_v59, %v5204_v20 }
 0xea4   :  { %v5256_v33 = vmul.f32 1.442695, %v5230_v39 }
 0xea5   :  { %v5207_v8 = vpop.xlane.xlu1 %5206  ;;  %v5210_v50 = vpop.xlane.xlu0 %5209 }
 0xea6   :  { %8319 = vpow2.f32 %v5256_v33  ;;  %v5231_v11 = vsub.f32 %v9590_v60, %v5207_v8  ;;  %v5232_v36 = vsub.f32 %v9592_v40, %v5210_v50 }
 0xea8   :  { %v5258_v10 = vmul.f32 1.442695, %v5231_v11  ;;  %v5260_v34 = vmul.f32 1.442695, %v5232_v36 }
 0xea9   :  { %v5213_v35 = vpop.xlane.xlu1 %5212 }
 0xeaa   :  { %8321 = vpow2.f32 %v5258_v10  ;;  %v5233_v44 = vsub.f32 %v9598_v51, %v5213_v35  ;;  %v5216_v43 = vpop.xlane.xlu0 %5215 }
 0xeab   :  { %8323 = vpow2.f32 %v5260_v34  ;;  %v5234_v62 = vsub.f32 %v9600_v2, %v5216_v43 }
 0xeac   :  { %v5262_v58 = vmul.f32 1.442695, %v5233_v44 }
 0xead   :  { %v5264_v59 = vmul.f32 1.442695, %v5234_v62 }
 0xeae   :  { %8325 = vpow2.f32 %v5262_v58  ;;  %v9718_v19 = vpop.permute.xlu0 %6108 }
 0xeaf   :  { %v5219_v32 = vpop.xlane.xlu1 %5218  ;;  %8327 = vpow2.f32 %v5264_v59 }
 0xeb0   :  { %v9689_v14 = vpop.eup %8319  ;;  %v5235_v60 = vsub.f32 %v9606_v38, %v5219_v32 }
 0xeb1   :  { %v5298_v40 = vsel %vm370_vm2, %v9689_v14, 0.0 }
 0xeb2   :  { %v5266_v57 = vmul.f32 1.442695, %v5235_v60  ;;  %5299 = vadd.xlane.f32.xlu0 %v5298_v40  ;;  %v9722_v26 = vpop.permute.xlu0 %6260 }
 0xeb3   :  { %v9720_v23 = vpop.permute.xlu1 %6184 }
 0xeb4   :  { %v9694_v16 = vpop.eup %8321  ;;  %8329 = vpow2.f32 %v5266_v57 }
 0xeb5   :  { %v9696_v51 = vpop.eup %8323  ;;  %v5301_v2 = vsel %vm370_vm2, %v9694_v16, 0.0 }
 0xeb6   :  { %5302 = vadd.xlane.f32.xlu1 %v5301_v2  ;;  %v5304_v1 = vsel %vm370_vm2, %v9696_v51, 0.0 }
 0xeb7   :  { %5305 = vadd.xlane.f32.xlu0 %v5304_v1  ;;  %v9724_v53 = vpop.permute.xlu1 %6336 }
 0xeb8   :  { %v9702_v15 = vpop.eup %8325 }
 0xeb9   :  { %v5307_v38 = vsel %vm370_vm2, %v9702_v15, 0.0  ;;  %v9706_v9 = vpop.eup %8327 }
 0xeba   :  { %5308 = vadd.xlane.f32.xlu1 %v5307_v38  ;;  %v5310_v6 = vsel %vm370_vm2, %v9706_v9, 0.0 }
 0xebe   :  { %v9710_v27 = vpop.eup %8329  ;;  %5311 = vadd.xlane.f32.xlu1 %v5310_v6 }
 0xebf   :  { %v5313_v7 = vsel %vm370_vm2, %v9710_v27, 0.0 }
 0xec0   :  { %5314 = vadd.xlane.f32.xlu0 %v5313_v7 }
 0xecf   :  { %6488 = vrot.lane.b32.xlu1 %v9439_v46, %s8423_s29 }
 0xed6   :  { %6412 = vrot.lane.b32.xlu0 %v9432_v12, %s8423_s29 }
 0xee3   :  { %v5270_v48 = vpop.xlane.xlu0 %5269 }
 0xee4   :  { %8331 = vrcp.f32 %v5270_v48 }
 0xee7   :  { %v5276_v20 = vpop.xlane.xlu0 %5275 }
 0xee8   :  { %v5273_v39 = vpop.xlane.xlu1 %5272  ;;  %8333 = vrcp.f32 %v5276_v20 }
 0xee9   :  { %8335 = vrcp.f32 %v5273_v39 }
 0xeeb   :  { %v5282_v33 = vpop.xlane.xlu0 %5281 }
 0xeec   :  { %v5279_v8 = vpop.xlane.xlu1 %5278  ;;  %8337 = vrcp.f32 %v5282_v33 }
 0xeed   :  { %8339 = vrcp.f32 %v5279_v8 }
 0xeee   :  { %v8332_v46 = vpop.eup %8331 }
 0xeef   :  { %v5332_v12 = vmul.f32 %v8332_v46, %v9641_v4 }
 0xef0   :  { %v5285_v50 = vpop.xlane.xlu1 %5284  ;;  %v5288_v11 = vpop.xlane.xlu0 %5287 }
 0xef1   :  { %8341 = vrcp.f32 %v5285_v50  ;;  %7978 = vmatmul.mubr.msk.f32.vlgmr.msra.gmra.mrb[64].mxu0 %vm370_vm2, %v5332_v12 }
 0xef2   :  { %v8334_v36 = vpop.eup %8333  ;;  %8343 = vrcp.f32 %v5288_v11  ;;  %7986 = vmatpush3.msra.mxu0 %v9614_v3  ;;  %7987 = vmatprep.mubr.msk.f32.mxu0 %vm8421_vm1, %v8420_v49 }
 0xef3   :  { %v8336_v10 = vpop.eup %8335  ;;  %v5334_v34 = vmul.f32 %v8334_v36, %v9648_v54  ;;  %7995 = vmatprep.subr.mxu0 %v8420_v49 }
 0xef4   :  { %v5333_v35 = vmul.f32 %v8336_v10, %v9646_v17  ;;  %v5291_v4 = vpop.xlane.xlu1 %5290  ;;  %v7394_v10 = vld [vmem:[%s10019_s4 + $0x10] sm:$0xff] }
 0xef5   :  { %8345 = vrcp.f32 %v5291_v4  ;;  %7988 = vmatmul.mubr.msk.f32.vlgmr.msra.gmra.mrb[66].mxu0 %vm370_vm2, %v5334_v34  ;;  %v7395_v34 = vld [vmem:[%s10019_s4 + $0x18] sm:$0xff] }
 0xef6   :  { %v8338_v44 = vpop.eup %8337  ;;  %7983 = vmatmul.mubr.msk.f32.vlgmr.msra.gmra.mrb[72].mxu1 %vm370_vm2, %v5333_v35  ;;  %7996 = vmatpush3.msra.mxu0 %v9612_v13  ;;  %v8131_v35 = vpack.c.bf16 %v7395_v34, %v7394_v10 }
 0xef7   :  { %v8340_v3 = vpop.eup %8339  ;;  %v5336_v43 = vmul.f32 %v8338_v44, %v9656_v5  ;;  %7991 = vmatpush3.msra.mxu1 %v9610_v29  ;;  %7992 = vmatprep.mubr.msk.f32.mxu1 %vm8421_vm1, %v8420_v49 }
 0xef8   :  { %v5335_v54 = vmul.f32 %v8340_v3, %v9652_v41  ;;  %7997 = vmatprep.mubr.msk.f32.mxu0 %vm8421_vm1, %v8420_v49  ;;  %8000 = vmatprep.subr.mxu1 %v8420_v49 }
 0xef9   :  { %8005 = vmatprep.subr.mxu0 %v8420_v49  ;;  %7998 = vmatmul.mubr.msk.f32.vlgmr.msra.gmra.mrb[68].mxu0 %vm370_vm2, %v5336_v43 }
 0xefa   :  { %7993 = vmatmul.mubr.msk.f32.vlgmr.msra.gmra.mrb[74].mxu1 %vm370_vm2, %v5335_v54  ;;  %8006 = vmatpush3.msra.mxu0 %v9618_v56 }
 0xefb   :  { %v8342_v13 = vpop.eup %8341  ;;  %8001 = vmatpush3.msra.mxu1 %v9616_v22  ;;  %8002 = vmatprep.mubr.msk.f32.mxu1 %vm8421_vm1, %v8420_v49 }
 0xefc   :  { %v8344_v29 = vpop.eup %8343  ;;  %v5337_v17 = vmul.f32 %v8342_v13, %v9662_v42  ;;  %8010 = vmatprep.subr.mxu1 %v8420_v49  ;;  %8007 = vmatprep.mubr.msk.f32.mxu0 %vm8421_vm1, %v8420_v49 }
 0xefd   :  { %v5338_v41 = vmul.f32 %v8344_v29, %v9664_v31  ;;  %8015 = vmatprep.subr.mxu0 %v8420_v49 }
 0xefe   :  { %8003 = vmatmul.mubr.msk.f32.vlgmr.msra.gmra.mrb[76].mxu1 %vm370_vm2, %v5337_v17 }
 0xeff   :  { %v8346_v56 = vpop.eup %8345  ;;  %8011 = vmatpush3.msra.mxu1 %v9624_v45  ;;  %8008 = vmatmul.mubr.msk.f32.vlgmr.msra.gmra.mrb[70].mxu0 %vm370_vm2, %v5338_v41 }
 0xf00   :  { %v5339_v22 = vmul.f32 %v8346_v56, %v9670_v24  ;;  %8016 = vmatpush3.msra.mxu0 %v9630_v21  ;;  %8012 = vmatprep.mubr.msk.f32.mxu1 %vm8421_vm1, %v8420_v49 }
 0xf01   :  { %8020 = vmatprep.subr.mxu1 %v8420_v49  ;;  %8017 = vmatprep.mubr.msk.f32.mxu0 %vm8421_vm1, %v8420_v49 }
 0xf02   :  { %8013 = vmatmul.mubr.msk.f32.vlgmr.msra.gmra.mrb[78].mxu1 %vm370_vm2, %v5339_v22  ;;  %8025 = vmatprep.subr.mxu0 %v8420_v49 }
 0xf03   :  { %8021 = vmatpush3.msra.mxu1 %v9632_v47  ;;  %8022 = vmatprep.mubr.msk.f32.mxu1 %vm8421_vm1, %v8420_v49 }
 0xf04   :  { %8030 = vmatprep.subr.mxu1 %v8420_v49 }
 0xf2b   :  { %v5297_v45 = vpop.xlane.xlu1 %5296 }
 0xf2c   :  { %8347 = vrcp.f32 %v5297_v45  ;;  %v5294_v21 = vpop.xlane.xlu0 %5293 }
 0xf2d   :  { %8349 = vrcp.f32 %v5294_v21 }
 0xf36   :  { %v8348_v5 = vpop.eup %8347 }
 0xf37   :  { %v8350_v42 = vpop.eup %8349  ;;  %v5341_v31 = vmul.f32 %v8348_v5, %v9676_v0 }
 0xf38   :  { %v5340_v24 = vmul.f32 %v8350_v42, %v9678_v61 }
 0xf39   :  { %8023 = vmatmul.mubr.msk.f32.vlgmr.msra.gmra.mrb[80].mxu1 %vm370_vm2, %v5341_v31 }
 0xf3a   :  { %8031 = vmatpush3.msra.mxu1 %v9720_v23  ;;  %8018 = vmatmul.mubr.msk.f32.vlgmr.msra.gmra.mrb[72].mxu0 %vm370_vm2, %v5340_v24 }
 0xf3b   :  { %8026 = vmatpush3.msra.mxu0 %v9718_v19  ;;  %8027 = vmatprep.mubr.msk.f32.mxu0 %vm8421_vm1, %v8420_v49 }
 0xf3c   :  { %8035 = vmatprep.subr.mxu0 %v8420_v49  ;;  %8032 = vmatprep.mubr.msk.f32.mxu1 %vm8421_vm1, %v8420_v49 }
 0xf3d   :  { %8040 = vmatprep.subr.mxu1 %v8420_v49 }
 0xf3f   :  { %v5300_v47 = vpop.xlane.xlu0 %5299 }
 0xf40   :  { %8351 = vrcp.f32 %v5300_v47 }
 0xf43   :  { %v5303_v0 = vpop.xlane.xlu1 %5302 }
 0xf44   :  { %8353 = vrcp.f32 %v5303_v0  ;;  %v5306_v61 = vpop.xlane.xlu0 %5305 }
 0xf45   :  { %8355 = vrcp.f32 %v5306_v61 }
 0xf47   :  { %v5309_v62 = vpop.xlane.xlu1 %5308 }
 0xf48   :  { %8357 = vrcp.f32 %v5309_v62 }
 0xf4a   :  { %v8352_v58 = vpop.eup %8351 }
 0xf4b   :  { %v5342_v59 = vmul.f32 %v8352_v58, %v9689_v14  ;;  %v5312_v32 = vpop.xlane.xlu1 %5311 }
 0xf4c   :  { %8359 = vrcp.f32 %v5312_v32 }
 0xf4d   :  { %v5315_v60 = vpop.xlane.xlu0 %5314  ;;  %8028 = vmatmul.mubr.msk.f32.vlgmr.msra.gmra.mrb[74].mxu0 %vm370_vm2, %v5342_v59 }
 0xf4e   :  { %v8354_v40 = vpop.eup %8353  ;;  %8361 = vrcp.f32 %v5315_v60  ;;  %8036 = vmatpush3.msra.mxu0 %v9722_v26  ;;  %8037 = vmatprep.mubr.msk.f32.mxu0 %vm8421_vm1, %v8420_v49 }
 0xf4f   :  { %v8356_v57 = vpop.eup %8355  ;;  %v5343_v2 = vmul.f32 %v8354_v40, %v9694_v16  ;;  %8045 = vmatprep.subr.mxu0 %v8420_v49  ;;  %v6489_v16 = vpop.permute.xlu1 %6488 }
 0xf50   :  { %v5344_v1 = vmul.f32 %v8356_v57, %v9696_v51 }
 0xf51   :  { %v6413_v14 = vpop.permute.xlu0 %6412  ;;  %8033 = vmatmul.mubr.msk.f32.vlgmr.msra.gmra.mrb[82].mxu1 %vm370_vm2, %v5343_v2 }
 0xf52   :  { %v8358_v38 = vpop.eup %8357  ;;  %8038 = vmatmul.mubr.msk.f32.vlgmr.msra.gmra.mrb[76].mxu0 %vm370_vm2, %v5344_v1  ;;  %8041 = vmatpush3.msra.mxu1 %v9724_v53 }
 0xf53   :  { %v5345_v6 = vmul.f32 %v8358_v38, %v9702_v15  ;;  %8046 = vmatpush3.msra.mxu0 %v6413_v14  ;;  %8042 = vmatprep.mubr.msk.f32.mxu1 %vm8421_vm1, %v8420_v49 }
 0xf54   :  { %8050 = vmatprep.subr.mxu1 %v8420_v49  ;;  %8047 = vmatprep.mubr.msk.f32.mxu0 %vm8421_vm1, %v8420_v49 }
 0xf55   :  { %8043 = vmatmul.mubr.msk.f32.vlgmr.msra.gmra.mrb[84].mxu1 %vm370_vm2, %v5345_v6  ;;  %8132 = vmatprep.subr.bf16.mxu0 %v8131_v35 }
 0xf56   :  { %v8360_v51 = vpop.eup %8359  ;;  %8051 = vmatpush3.msra.mxu1 %v6489_v16  ;;  %8052 = vmatprep.mubr.msk.f32.mxu1 %vm8421_vm1, %v8420_v49 }
 0xf57   :  { %v5346_v7 = vmul.f32 %v8360_v51, %v9706_v9  ;;  %v7404_v51 = vld [vmem:[%s10020_s5 + $0x1] ss:$0 sm:$0xff] }
 0xf58   :  { %v8362_v15 = vpop.eup %8361 }
 0xf59   :  { %v5347_v19 = vmul.f32 %v8362_v15, %v9710_v27  ;;  %8048 = vmatmul.mubr.msk.f32.vlgmr.msra.gmra.mrb[78].mxu0 %vm370_vm2, %v5346_v7 }
 0xf5a   :  { %8134 = vmatpush3.bf16.msra.mxu0 %v8131_v35 }
 0xf5b   :  { %8053 = vmatmul.mubr.msk.f32.vlgmr.msra.gmra.mrb[86].mxu1 %vm370_vm2, %v5347_v19 }
 0xfc4   :  { %v5420_v23 = vpop.f32.mrb[64].mxu0 }
 0xfc5   :  { %v7979_v26 = vpop.f32.mrb[65].mxu0 }
 0xfc8   :  { %v5572_v48 = vpop.f32.mrb[66].mxu0 }
 0xfc9   :  { %v5496_v53 = vpop.f32.mrb[72].mxu1  ;;  %v7989_v20 = vpop.f32.mrb[67].mxu0 }
 0xfca   :  { %v7984_v39 = vpop.f32.mrb[73].mxu1 }
 0xfcc   :  { %v5724_v33 = vpop.f32.mrb[68].mxu0 }
 0xfcd   :  { %v5648_v8 = vpop.f32.mrb[74].mxu1  ;;  %v7999_v46 = vpop.f32.mrb[69].mxu0 }
 0xfce   :  { %v7994_v12 = vpop.f32.mrb[75].mxu1 }
 0xfd1   :  { %v5800_v49 = vpop.f32.mrb[76].mxu1 }
 0xfd2   :  { %v8004_v50 = vpop.f32.mrb[77].mxu1  ;;  %v5876_v9 = vpop.f32.mrb[70].mxu0 }
 0xfd3   :  { %v8009_v11 = vpop.f32.mrb[71].mxu0 }
 0xfd5   :  { %v5952_v36 = vpop.f32.mrb[78].mxu1 }
 0xfd6   :  { %v8014_v27 = vpop.f32.mrb[79].mxu1 }
0x100c   :  { %v6104_v4 = vpop.f32.mrb[80].mxu1 }
0x100d   :  { %v8024_v44 = vpop.f32.mrb[81].mxu1  ;;  %6574 = vrot.lane.b32.xlu1 %v6104_v4, %s8424_s16  ;;  %v6028_v3 = vpop.f32.mrb[72].mxu0 }
0x100e   :  { %6572 = vrot.lane.b32.xlu0 %v6028_v3, %s8424_s16  ;;  %v8019_v43 = vpop.f32.mrb[73].mxu0 }
0x1020   :  { %v6180_v54 = vpop.f32.mrb[74].mxu0 }
0x1021   :  { %6576 = vrot.lane.b32.xlu0 %v6180_v54, %s8424_s16  ;;  %v8029_v13 = vpop.f32.mrb[75].mxu0 }
0x1024   :  { %v6256_v29 = vpop.f32.mrb[82].mxu1 }
0x1025   :  { %v6332_v17 = vpop.f32.mrb[76].mxu0  ;;  %v8034_v41 = vpop.f32.mrb[83].mxu1  ;;  %6578 = vrot.lane.b32.xlu1 %v6256_v29, %s8424_s16 }
0x1026   :  { %6580 = vrot.lane.b32.xlu0 %v6332_v17, %s8424_s16  ;;  %v8039_v56 = vpop.f32.mrb[77].mxu0 }
0x1028   :  { %v6408_v22 = vpop.f32.mrb[84].mxu1 }
0x1029   :  { %v8044_v45 = vpop.f32.mrb[85].mxu1  ;;  %6582 = vrot.lane.b32.xlu1 %v6408_v22, %s8424_s16 }
0x102c   :  { %v6484_v21 = vpop.f32.mrb[78].mxu0 }
0x102d   :  { %6584 = vrot.lane.b32.xlu0 %v6484_v21, %s8424_s16  ;;  %v8049_v5 = vpop.f32.mrb[79].mxu0 }
0x102e   :  { %v6560_v42 = vpop.f32.mrb[86].mxu1 }
0x102f   :  { %6586 = vrot.lane.b32.xlu1 %v6560_v42, %s8424_s16  ;;  %v8054_v31 = vpop.f32.mrb[87].mxu1 }
0x107f   :  { %v6575_v24 = vpop.permute.xlu1 %6574 }
0x1080   :  { %v6573_v47 = vpop.permute.xlu0 %6572  ;;  %v6597_v61 = vsel %vm370_vm2, %v5496_v53, %v6575_v24 }
0x1081   :  { %v6596_v0 = vsel %vm370_vm2, %v5420_v23, %v6573_v47 }
0x1082   :  { %8059 = vmatprep.mubr.msk.f32.mxu0 %vm51_vm0, %v6596_v0 }
0x1083   :  { %8060 = vmatmul.mubr.msk.f32.vlgmr.msra.gmra.mrb[80].mxu0 %vm51_vm0, %v6597_v61 }
0x1093   :  { %v6577_v62 = vpop.permute.xlu0 %6576 }
0x1094   :  { %v6598_v58 = vsel %vm370_vm2, %v5572_v48, %v6577_v62 }
0x1095   :  { %8062 = vmatprep.mubr.msk.f32.mxu0 %vm51_vm0, %v6598_v58 }
0x1097   :  { %v6579_v59 = vpop.permute.xlu1 %6578 }
0x1098   :  { %v6599_v32 = vsel %vm370_vm2, %v5648_v8, %v6579_v59  ;;  %v6581_v60 = vpop.permute.xlu0 %6580 }
0x1099   :  { %v6600_v40 = vsel %vm370_vm2, %v5724_v33, %v6581_v60  ;;  %8063 = vmatmul.mubr.msk.f32.gmra.mrb[82].mxu0 %vm51_vm0, %v6599_v32 }
0x109a   :  { %8065 = vmatprep.mubr.msk.f32.mxu0 %vm51_vm0, %v6600_v40 }
0x109b   :  { %v6583_v57 = vpop.permute.xlu1 %6582 }
0x109c   :  { %v6601_v2 = vsel %vm370_vm2, %v5800_v49, %v6583_v57 }
0x109d   :  { %8066 = vmatmul.mubr.msk.f32.gmra.mrb[84].mxu0 %vm51_vm0, %v6601_v2 }
0x109f   :  { %v6585_v1 = vpop.permute.xlu0 %6584 }
0x10a0   :  { %v6602_v14 = vsel %vm370_vm2, %v5876_v9, %v6585_v1 }
0x10a1   :  { %v6587_v38 = vpop.permute.xlu1 %6586  ;;  %8068 = vmatprep.mubr.msk.f32.mxu0 %vm51_vm0, %v6602_v14 }
0x10a2   :  { %v6603_v6 = vsel %vm370_vm2, %v5952_v36, %v6587_v38 }
0x10a3   :  { %8069 = vmatmul.mubr.msk.f32.gmra.mrb[86].mxu0 %vm51_vm0, %v6603_v6 }
0x1156   :  { %v8061_v16 = vpop.f32.mrb[80].mxu0 }
0x1157   :  { %v6737_v7 = vadd.f32 %v8061_v16, %v9250_v25  ;;  %v6697_v15 = vpop.f32.mrb[81].mxu0 }
0x1158   :  { %v6736_v19 = vadd.f32 %v6697_v15, %v9253_v37 }
0x1159   :  { %v9845_v23 = vadd.f32 %v7404_v51, %v6737_v7 }
0x115a   :  { %v9847_v26 = vadd.f32 %v7404_v51, %v6736_v19 }
0x115b   :  { %v6762_v48 = vsel %vm51_vm0, %v9845_v23, 0.0 }
0x115c   :  { %6763 = vadd.xlane.f32.xlu1 %v6762_v48  ;;  %v6759_v53 = vsel %vm51_vm0, %v9847_v26, 0.0 }
0x115d   :  { %6760 = vadd.xlane.f32.xlu0 %v6759_v53  ;;  %v7407_v53 = vld [vmem:[%s10021_s8 + $0x10] sm:$0xff] }
0x116c   :  { %v8064_v20 = vpop.f32.mrb[82].mxu0 }
0x116d   :  { %v6739_v39 = vadd.f32 %v8064_v20, %v9260_v28  ;;  %v6707_v33 = vpop.f32.mrb[83].mxu0  ;;  %v7408_v20 = vld [vmem:[%s10021_s8 + $0x18] sm:$0xff] }
0x116e   :  { %v6738_v25 = vadd.f32 %v6707_v33, %v9263_v63 }
0x116f   :  { %v9855_v8 = vadd.f32 %v7404_v51, %v6739_v39  ;;  %v8135_v39 = vpack.c.bf16 %v7408_v20, %v7407_v53 }
0x1170   :  { %v8067_v37 = vpop.f32.mrb[84].mxu0  ;;  %v9857_v46 = vadd.f32 %v7404_v51, %v6738_v25 }
0x1171   :  { %v6741_v12 = vadd.f32 %v8067_v37, %v9270_v55  ;;  %v6717_v49 = vpop.f32.mrb[85].mxu0  ;;  %v6768_v50 = vsel %vm51_vm0, %v9855_v8, 0.0  ;;  %8136 = vmatprep.subr.bf16.mxu1 %v8135_v39 }
0x1172   :  { %v6740_v9 = vadd.f32 %v6717_v49, %v9273_v18  ;;  %6769 = vadd.xlane.f32.xlu0 %v6768_v50  ;;  %v6765_v63 = vsel %vm51_vm0, %v9857_v46, 0.0  ;;  %8138 = vmatpush3.bf16.msra.mxu1 %v8135_v39 }
0x1173   :  { %v9863_v11 = vadd.f32 %v7404_v51, %v6741_v12 }
0x1174   :  { %v9865_v28 = vadd.f32 %v7404_v51, %v6740_v9 }
0x1175   :  { %v6774_v36 = vsel %vm51_vm0, %v9863_v11, 0.0 }
0x1176   :  { %v8070_v27 = vpop.f32.mrb[86].mxu0  ;;  %6766 = vadd.xlane.f32.xlu0 %v6765_v63  ;;  %6775 = vadd.xlane.f32.xlu1 %v6774_v36  ;;  %v6771_v35 = vsel %vm51_vm0, %v9865_v28, 0.0 }
0x1177   :  { %v6743_v55 = vadd.f32 %v8070_v27, %v9280_v52  ;;  %v6727_v10 = vpop.f32.mrb[87].mxu0 }
0x1178   :  { %v6742_v34 = vadd.f32 %v6727_v10, %v9283_v30 }
0x1179   :  { %v9873_v18 = vadd.f32 %v7404_v51, %v6743_v55  ;;  %v7405_v55 = vld [vmem:[%s10022_s6 + $0x1] ss:$0 sm:$0xff] }
0x117a   :  { %v9877_v4 = vadd.f32 %v7404_v51, %v6742_v34  ;;  %6772 = vadd.xlane.f32.xlu0 %v6771_v35 }
0x117b   :  { %v6780_v44 = vsel %vm51_vm0, %v9873_v18, 0.0 }
0x117c   :  { %6781 = vadd.xlane.f32.xlu1 %v6780_v44  ;;  %v6777_v3 = vsel %vm51_vm0, %v9877_v4, 0.0  ;;  %v7406_v44 = vld [vmem:[%s10023_s7 + $0x1] ss:$0 sm:$0xff] }
0x117e   :  { %6778 = vadd.xlane.f32.xlu0 %v6777_v3 }
0x11e9   :  { %v6764_v52 = vpop.xlane.xlu1 %6763 }
0x11ea   :  { %v6784_v43 = vmul.f32 0.0625, %v6764_v52  ;;  %v6761_v54 = vpop.xlane.xlu0 %6760 }
0x11eb   :  { %v6783_v30 = vmul.f32 0.0625, %v6761_v54 }
0x11ec   :  { %v6792_v13 = vsub.f32 %v9845_v23, %v6784_v43 }
0x11ed   :  { %v6791_v29 = vsub.f32 %v9847_v26, %v6783_v30 }
0x11ee   :  { %v6800_v17 = vmul.f32 %v6792_v13, %v6792_v13 }
0x11ef   :  { %v6799_v41 = vmul.f32 %v6791_v29, %v6791_v29 }
0x11f0   :  { %v6810_v56 = vsel %vm51_vm0, %v6800_v17, 0.0 }
0x11f1   :  { %6811 = vadd.xlane.f32.xlu1 %v6810_v56  ;;  %v6807_v22 = vsel %vm51_vm0, %v6799_v41, 0.0 }
0x11f2   :  { %6808 = vadd.xlane.f32.xlu0 %v6807_v22 }
0x11ff   :  { %v6770_v45 = vpop.xlane.xlu0 %6769 }
0x1200   :  { %v6786_v21 = vmul.f32 0.0625, %v6770_v45 }
0x1202   :  { %v9888_v5 = vsub.f32 %v9855_v8, %v6786_v21 }
0x1203   :  { %v6776_v42 = vpop.xlane.xlu1 %6775  ;;  %v6767_v31 = vpop.xlane.xlu0 %6766 }
0x1204   :  { %v6788_v24 = vmul.f32 0.0625, %v6776_v42  ;;  %v6785_v47 = vmul.f32 0.0625, %v6767_v31  ;;  %v6802_v0 = vmul.f32 %v9888_v5, %v9888_v5 }
0x1206   :  { %v9893_v61 = vsub.f32 %v9863_v11, %v6788_v24  ;;  %v9896_v62 = vsub.f32 %v9857_v46, %v6785_v47  ;;  %v6816_v58 = vsel %vm51_vm0, %v6802_v0, 0.0 }
0x1207   :  { %6817 = vadd.xlane.f32.xlu1 %v6816_v58  ;;  %v6773_v59 = vpop.xlane.xlu0 %6772 }
0x1208   :  { %v6787_v32 = vmul.f32 0.0625, %v6773_v59  ;;  %v6804_v60 = vmul.f32 %v9893_v61, %v9893_v61  ;;  %v6801_v40 = vmul.f32 %v9896_v62, %v9896_v62 }
0x1209   :  { %v6782_v57 = vpop.xlane.xlu1 %6781 }
0x120a   :  { %v9904_v2 = vsub.f32 %v9865_v28, %v6787_v32  ;;  %v6790_v1 = vmul.f32 0.0625, %v6782_v57  ;;  %v6822_v14 = vsel %vm51_vm0, %v6804_v60, 0.0  ;;  %v6813_v38 = vsel %vm51_vm0, %v6801_v40, 0.0 }
0x120b   :  { %6823 = vadd.xlane.f32.xlu1 %v6822_v14  ;;  %6814 = vadd.xlane.f32.xlu0 %v6813_v38  ;;  %v6779_v6 = vpop.xlane.xlu0 %6778 }
0x120c   :  { %v9909_v16 = vsub.f32 %v9873_v18, %v6790_v1  ;;  %v6789_v51 = vmul.f32 0.0625, %v6779_v6  ;;  %v6803_v7 = vmul.f32 %v9904_v2, %v9904_v2 }
0x120e   :  { %v9914_v15 = vsub.f32 %v9877_v4, %v6789_v51  ;;  %v6819_v19 = vsel %vm51_vm0, %v6803_v7, 0.0  ;;  %v6806_v48 = vmul.f32 %v9909_v16, %v9909_v16 }
0x120f   :  { %6820 = vadd.xlane.f32.xlu0 %v6819_v19 }
0x1210   :  { %v6828_v33 = vsel %vm51_vm0, %v6806_v48, 0.0  ;;  %v6805_v25 = vmul.f32 %v9914_v15, %v9914_v15 }
0x1211   :  { %6829 = vadd.xlane.f32.xlu1 %v6828_v33 }
0x1212   :  { %v6825_v37 = vsel %vm51_vm0, %v6805_v25, 0.0 }
0x1213   :  { %6826 = vadd.xlane.f32.xlu0 %v6825_v37 }
0x127e   :  { %v6812_v12 = vpop.xlane.xlu1 %6811 }
0x127f   :  { %v6832_v49 = vmul.f32 0.0625, %v6812_v12  ;;  %v6809_v50 = vpop.xlane.xlu0 %6808 }
0x1280   :  { %v6831_v9 = vmul.f32 0.0625, %v6809_v50 }
0x1281   :  { %v6840_v63 = vadd.f32 1e-05, %v6832_v49 }
0x1282   :  { %v6839_v36 = vadd.f32 1e-05, %v6831_v9 }
0x1283   :  { %8363 = vrsqrt.f32 %v6840_v63 }
0x1284   :  { %8365 = vrsqrt.f32 %v6839_v36  ;;  %v7428_v36 = vld [vmem:[%s10024_s10 + $0x30] sm:$0xff] }
0x128d   :  { %v8364_v27 = vpop.eup %8363 }
0x128e   :  { %v8366_v10 = vpop.eup %8365  ;;  %v6856_v34 = vmul.f32 %v8364_v27, %v6792_v13  ;;  %v7429_v27 = vld [vmem:[%s10024_s10 + $0x38] sm:$0xff] }
0x128f   :  { %v6855_v35 = vmul.f32 %v8366_v10, %v6791_v29  ;;  %v7409_v10 = vld [vmem:[%s10025_s9 + $0x1] ss:$0 sm:$0xff] }
0x1290   :  { %v6868_v3 = vmul.f32 %v7405_v55, %v6856_v34 }
0x1291   :  { %v6867_v52 = vmul.f32 %v7405_v55, %v6855_v35 }
0x1292   :  { %v6880_v30 = vadd.f32 %v7406_v44, %v6868_v3 }
0x1293   :  { %v6879_v43 = vadd.f32 %v7406_v44, %v6867_v52 }
0x1294   :  { %v6818_v54 = vpop.xlane.xlu1 %6817 }
0x1295   :  { %v6834_v17 = vmul.f32 0.0625, %v6818_v54  ;;  %8075 = vmatprep.mubr.msk.f32.mxu1 %vm51_vm0, %v6879_v43 }
0x1296   :  { %8076 = vmatmul.mubr.msk.f32.vlgmr.msra.gmra.mrb[88].mxu1 %vm51_vm0, %v6880_v30 }
0x1297   :  { %v6842_v41 = vadd.f32 1e-05, %v6834_v17 }
0x1298   :  { %v6824_v56 = vpop.xlane.xlu1 %6823  ;;  %v6815_v22 = vpop.xlane.xlu0 %6814 }
0x1299   :  { %8367 = vrsqrt.f32 %v6842_v41  ;;  %v6836_v13 = vmul.f32 0.0625, %v6824_v56  ;;  %v6833_v29 = vmul.f32 0.0625, %v6815_v22 }
0x129b   :  { %v6844_v45 = vadd.f32 1e-05, %v6836_v13  ;;  %v6841_v21 = vadd.f32 1e-05, %v6833_v29 }
0x129c   :  { %v6821_v42 = vpop.xlane.xlu0 %6820 }
0x129d   :  { %8369 = vrsqrt.f32 %v6844_v45  ;;  %v6835_v31 = vmul.f32 0.0625, %v6821_v42 }
0x129e   :  { %8371 = vrsqrt.f32 %v6841_v21  ;;  %v6830_v24 = vpop.xlane.xlu1 %6829 }
0x129f   :  { %v6843_v47 = vadd.f32 1e-05, %v6835_v31  ;;  %v6838_v0 = vmul.f32 0.0625, %v6830_v24 }
0x12a0   :  { %v6827_v58 = vpop.xlane.xlu0 %6826 }
0x12a1   :  { %8373 = vrsqrt.f32 %v6843_v47  ;;  %v6846_v59 = vadd.f32 1e-05, %v6838_v0  ;;  %v6837_v32 = vmul.f32 0.0625, %v6827_v58 }
0x12a3   :  { %v8368_v60 = vpop.eup %8367  ;;  %8375 = vrsqrt.f32 %v6846_v59  ;;  %v6845_v40 = vadd.f32 1e-05, %v6837_v32 }
0x12a4   :  { %v6858_v57 = vmul.f32 %v8368_v60, %v9888_v5 }
0x12a5   :  { %8377 = vrsqrt.f32 %v6845_v40 }
0x12a6   :  { %v6870_v6 = vmul.f32 %v7405_v55, %v6858_v57 }
0x12a7   :  { %v8370_v1 = vpop.eup %8369 }
0x12a8   :  { %v8372_v14 = vpop.eup %8371  ;;  %v6860_v51 = vmul.f32 %v8370_v1, %v9893_v61  ;;  %v6882_v39 = vadd.f32 %v7406_v44, %v6870_v6 }
0x12a9   :  { %v6857_v38 = vmul.f32 %v8372_v14, %v9896_v62 }
0x12aa   :  { %v6872_v25 = vmul.f32 %v7405_v55, %v6860_v51 }
0x12ab   :  { %v8374_v7 = vpop.eup %8373  ;;  %v6869_v19 = vmul.f32 %v7405_v55, %v6857_v38 }
0x12ac   :  { %v6859_v48 = vmul.f32 %v8374_v7, %v9904_v2  ;;  %v6884_v61 = vadd.f32 %v7406_v44, %v6872_v25 }
0x12ad   :  { %v8376_v53 = vpop.eup %8375  ;;  %v6881_v20 = vadd.f32 %v7406_v44, %v6869_v19 }
0x12ae   :  { %v6871_v33 = vmul.f32 %v7405_v55, %v6859_v48  ;;  %v6862_v37 = vmul.f32 %v8376_v53, %v9909_v16  ;;  %v7426_v16 = vld [vmem:[%s10024_s10 + $0x20] sm:$0xff] }
0x12af   :  { %v8378_v12 = vpop.eup %8377  ;;  %8078 = vmatprep.mubr.msk.f32.mxu1 %vm51_vm0, %v6881_v20 }
0x12b0   :  { %8079 = vmatmul.mubr.msk.f32.gmra.mrb[90].mxu1 %vm51_vm0, %v6882_v39  ;;  %v6883_v5 = vadd.f32 %v7406_v44, %v6871_v33  ;;  %v6861_v62 = vmul.f32 %v8378_v12, %v9914_v15  ;;  %v6874_v2 = vmul.f32 %v7405_v55, %v6862_v37  ;;  %v7427_v15 = vld [vmem:[%s10024_s10 + $0x28] sm:$0xff] }
0x12b1   :  { %v8139_v63 = vpack.c.bf16 %v7427_v15, %v7426_v16 }
0x12b2   :  { %8081 = vmatprep.mubr.msk.f32.mxu1 %vm51_vm0, %v6883_v5  ;;  %v6873_v49 = vmul.f32 %v7405_v55, %v6861_v62  ;;  %v6886_v9 = vadd.f32 %v7406_v44, %v6874_v2  ;;  %v8143_v55 = vpack.c.bf16 %v7429_v27, %v7428_v36 }
0x12b3   :  { %8140 = vmatprep.subr.bf16.mxu0 %v8139_v63 }
0x12b4   :  { %8082 = vmatmul.mubr.msk.f32.gmra.mrb[92].mxu1 %vm51_vm0, %v6884_v61  ;;  %v6885_v50 = vadd.f32 %v7406_v44, %v6873_v49  ;;  %8142 = vmatpush3.bf16.msra.mxu0 %v8139_v63 }
0x12b5   :  { %8144 = vmatprep.subr.bf16.mxu0 %v8143_v55 }
0x12b6   :  { %8084 = vmatprep.mubr.msk.f32.mxu1 %vm51_vm0, %v6885_v50 }
0x12b8   :  { %8085 = vmatmul.mubr.msk.f32.gmra.mrb[94].mxu1 %vm51_vm0, %v6886_v9  ;;  %8146 = vmatpush3.bf16.msra.mxu0 %v8143_v55 }
0x1369   :  { %v8077_v34 = vpop.f32.mrb[88].mxu1 }
0x136a   :  { %v6991_v35 = vadd.f32 %v8077_v34, %v7409_v10  ;;  %v6985_v44 = vpop.f32.mrb[89].mxu1  ;;  %v7430_v34 = vld [vmem:[%s10026_s11 + $0x1] ss:$0 sm:$0xff] }
0x136b   :  { %v6986_v3 = vadd.f32 %v7409_v10, %v6985_v44 }
0x136c   :  { %v7419_v52 = vmul.f32 -1.442695, %v6991_v35 }
0x136d   :  { %v7418_v43 = vmul.f32 -1.442695, %v6986_v3 }
0x136e   :  { %8379 = vpow2.f32 %v7419_v52 }
0x136f   :  { %8381 = vpow2.f32 %v7418_v43 }
0x1378   :  { %v8380_v54 = vpop.eup %8379 }
0x1379   :  { %v8382_v30 = vpop.eup %8381  ;;  %v7049_v17 = vadd.f32 1.0, %v8380_v54 }
0x137a   :  { %v7048_v41 = vadd.f32 1.0, %v8382_v30 }
0x137b   :  { %8383 = vrcp.f32 %v7049_v17 }
0x137c   :  { %8385 = vrcp.f32 %v7048_v41 }
0x1383   :  { %v8080_v56 = vpop.f32.mrb[90].mxu1 }
0x1384   :  { %v7001_v22 = vadd.f32 %v8080_v56, %v7409_v10  ;;  %v6995_v13 = vpop.f32.mrb[91].mxu1 }
0x1385   :  { %v8384_v29 = vpop.eup %8383  ;;  %v6996_v45 = vadd.f32 %v7409_v10, %v6995_v13 }
0x1386   :  { %v8386_v21 = vpop.eup %8385  ;;  %v7421_v42 = vmul.f32 -1.442695, %v7001_v22  ;;  %v7073_v0 = vmul.f32 %v8384_v29, %v6991_v35 }
0x1387   :  { %v7072_v31 = vmul.f32 %v8386_v21, %v6986_v3  ;;  %v7420_v24 = vmul.f32 -1.442695, %v6996_v45  ;;  %v8083_v47 = vpop.f32.mrb[92].mxu1 }
0x1388   :  { %8387 = vpow2.f32 %v7421_v42  ;;  %v7011_v58 = vadd.f32 %v8083_v47, %v7409_v10  ;;  %v7005_v59 = vpop.f32.mrb[93].mxu1 }
0x1389   :  { %8389 = vpow2.f32 %v7420_v24  ;;  %v7006_v32 = vadd.f32 %v7409_v10, %v7005_v59  ;;  %8095 = vmatprep.mubr.msk.f32.mxu0 %vm3500_vm3, %v7072_v31 }
0x138a   :  { %v7423_v60 = vmul.f32 -1.442695, %v7011_v58  ;;  %8096 = vmatmul.mubr.msk.f32.vlgmr.msra.gmra.mrb[88].mxu0 %vm3500_vm3, %v7073_v0 }
0x138b   :  { %v7422_v40 = vmul.f32 -1.442695, %v7006_v32  ;;  %v8086_v57 = vpop.f32.mrb[94].mxu1 }
0x138c   :  { %8391 = vpow2.f32 %v7423_v60  ;;  %v7021_v1 = vadd.f32 %v8086_v57, %v7409_v10  ;;  %v7015_v14 = vpop.f32.mrb[95].mxu1 }
0x138d   :  { %8393 = vpow2.f32 %v7422_v40  ;;  %v7016_v38 = vadd.f32 %v7409_v10, %v7015_v14 }
0x138e   :  { %v7425_v6 = vmul.f32 -1.442695, %v7021_v1 }
0x138f   :  { %v7424_v51 = vmul.f32 -1.442695, %v7016_v38 }
0x1390   :  { %8395 = vpow2.f32 %v7425_v6 }
0x1391   :  { %8397 = vpow2.f32 %v7424_v51 }
0x1392   :  { %v8388_v7 = vpop.eup %8387 }
0x1393   :  { %v8390_v19 = vpop.eup %8389  ;;  %v7051_v48 = vadd.f32 1.0, %v8388_v7 }
0x1394   :  { %v7050_v53 = vadd.f32 1.0, %v8390_v19 }
0x1395   :  { %8399 = vrcp.f32 %v7051_v48 }
0x1396   :  { %v8392_v20 = vpop.eup %8391  ;;  %8401 = vrcp.f32 %v7050_v53 }
0x1397   :  { %v8394_v39 = vpop.eup %8393  ;;  %v7053_v33 = vadd.f32 1.0, %v8392_v20 }
0x1398   :  { %v7052_v25 = vadd.f32 1.0, %v8394_v39 }
0x1399   :  { %8403 = vrcp.f32 %v7053_v33 }
0x139a   :  { %v8396_v37 = vpop.eup %8395  ;;  %8405 = vrcp.f32 %v7052_v25 }
0x139b   :  { %v8398_v12 = vpop.eup %8397  ;;  %v7055_v5 = vadd.f32 1.0, %v8396_v37 }
0x139c   :  { %v7054_v62 = vadd.f32 1.0, %v8398_v12 }
0x139d   :  { %8407 = vrcp.f32 %v7055_v5 }
0x139e   :  { %8409 = vrcp.f32 %v7054_v62 }
0x139f   :  { %v8400_v61 = vpop.eup %8399 }
0x13a0   :  { %v8402_v49 = vpop.eup %8401  ;;  %v7075_v50 = vmul.f32 %v8400_v61, %v7001_v22 }
0x13a1   :  { %v7074_v2 = vmul.f32 %v8402_v49, %v6996_v45 }
0x13a3   :  { %v8404_v9 = vpop.eup %8403  ;;  %8098 = vmatprep.mubr.msk.f32.mxu0 %vm3500_vm3, %v7074_v2 }
0x13a4   :  { %v8406_v16 = vpop.eup %8405  ;;  %8099 = vmatmul.mubr.msk.f32.gmra.mrb[90].mxu0 %vm3500_vm3, %v7075_v50  ;;  %v7077_v63 = vmul.f32 %v8404_v9, %v7011_v58 }
0x13a5   :  { %v7076_v15 = vmul.f32 %v8406_v16, %v7006_v32 }
0x13a7   :  { %v8408_v36 = vpop.eup %8407  ;;  %8101 = vmatprep.mubr.msk.f32.mxu0 %vm3500_vm3, %v7076_v15 }
0x13a8   :  { %v8410_v27 = vpop.eup %8409  ;;  %8102 = vmatmul.mubr.msk.f32.gmra.mrb[92].mxu0 %vm3500_vm3, %v7077_v63  ;;  %v7079_v10 = vmul.f32 %v8408_v36, %v7021_v1 }
0x13a9   :  { %v7078_v55 = vmul.f32 %v8410_v27, %v7016_v38 }
0x13ab   :  { %8104 = vmatprep.mubr.msk.f32.mxu0 %vm3500_vm3, %v7078_v55 }
0x13ac   :  { %8105 = vmatmul.mubr.msk.f32.gmra.mrb[94].mxu0 %vm3500_vm3, %v7079_v10 }
0x145d   :  { %v8097_v35 = vpop.f32.mrb[88].mxu0 }
0x145e   :  { %v7186_v44 = vadd.f32 %v8097_v35, %v7430_v34  ;;  %v7180_v3 = vpop.f32.mrb[89].mxu0 }
0x145f   :  { %v7181_v52 = vadd.f32 %v7430_v34, %v7180_v3 }
0x1460   :  { %v7220_v43 = vadd.f32 %v7186_v44, %v9845_v23 }
0x1461   :  { %v7219_v54 = vadd.f32 %v7181_v52, %v9847_v26 }
0x1462   :  { %7228 = vst.msk [vmem:[%s10027_s12 + $0x8] sm:$0xff] %vm51_vm0, %v7220_v43 }
0x1463   :  { %7227 = vst.msk [vmem:[%s10027_s12] sm:$0xff] %vm51_vm0, %v7219_v54 }
0x1477   :  { %v8100_v30 = vpop.f32.mrb[90].mxu0 }
0x1478   :  { %v7196_v17 = vadd.f32 %v8100_v30, %v7430_v34  ;;  %v7190_v41 = vpop.f32.mrb[91].mxu0 }
0x1479   :  { %v7191_v56 = vadd.f32 %v7430_v34, %v7190_v41 }
0x147a   :  { %v7222_v22 = vadd.f32 %v7196_v17, %v9855_v8 }
0x147b   :  { %v7221_v23 = vadd.f32 %v7191_v56, %v9857_v46  ;;  %v8103_v13 = vpop.f32.mrb[92].mxu0 }
0x147c   :  { %7230 = vst.msk [vmem:[%s10027_s12 + $0x18] sm:$0xff] %vm51_vm0, %v7222_v22  ;;  %v7206_v26 = vadd.f32 %v8103_v13, %v7430_v34  ;;  %v7200_v29 = vpop.f32.mrb[93].mxu0 }
0x147d   :  { %7229 = vst.msk [vmem:[%s10027_s12 + $0x10] sm:$0xff] %vm51_vm0, %v7221_v23  ;;  %v7201_v45 = vadd.f32 %v7430_v34, %v7200_v29 }
0x147e   :  { %v7224_v21 = vadd.f32 %v7206_v26, %v9863_v11 }
0x147f   :  { %v7223_v8 = vadd.f32 %v7201_v45, %v9865_v28  ;;  %v8106_v42 = vpop.f32.mrb[94].mxu0 }
0x1480   :  { %7232 = vst.msk [vmem:[%s10027_s12 + $0x28] sm:$0xff] %vm51_vm0, %v7224_v21  ;;  %v7216_v46 = vadd.f32 %v8106_v42, %v7430_v34  ;;  %v7210_v31 = vpop.f32.mrb[95].mxu0 }
0x1481   :  { %7231 = vst.msk [vmem:[%s10027_s12 + $0x20] sm:$0xff] %vm51_vm0, %v7223_v8  ;;  %v7211_v24 = vadd.f32 %v7430_v34, %v7210_v31 }
0x1482   :  { %v7226_v47 = vadd.f32 %v7216_v46, %v9873_v18 }
0x1483   :  { %v7225_v11 = vadd.f32 %v7211_v24, %v9877_v4 }
0x1484   :  { %7234 = vst.msk [vmem:[%s10027_s12 + $0x38] sm:$0xff] %vm51_vm0, %v7226_v47 }
0x1485   :  { %7233 = vst.msk [vmem:[%s10027_s12 + $0x30] sm:$0xff] %vm51_vm0, %v7225_v11 }

</bundles_post_ra>
